<compile_context>
chip_gen: v6e
topology: v6e:2x2x1
jax: 0.10.0
libtpu: 0.0.40
codegen_flags: <defaults>
</compile_context>

<pallas_src>
import math

import jax
import jax.numpy as jnp
import numpy as np
from jax.experimental import pallas as pl
from jax.experimental.pallas import tpu as pltpu

# ----------------------------- small ViT config -----------------------------
IMG = 16            # img_size
PATCH = 4           # config.patches["size"]
IN_CH = 4           # in_channels
HIDDEN = 32         # config.hidden_size
NUM_HEADS = 4       # config.transformer["num_heads"]
HEAD_DIM = HIDDEN // NUM_HEADS
MLP_DIM = 64        # config.transformer["mlp_dim"]
NUM_LAYERS = 2      # config.transformer["num_layers"]
N_PATCH_SIDE = IMG // PATCH
N_PATCHES = N_PATCH_SIDE * N_PATCH_SIDE
SEQ = N_PATCHES + 1  # +1 for cls token
KDIM = IN_CH * PATCH * PATCH
EPS = 1e-6           # LayerNorm eps in ViT

BF16 = jnp.bfloat16


def _ln(x, w, b):
    mu = jnp.mean(x, axis=-1, keepdims=True)
    xc = x - mu
    var = jnp.mean(xc * xc, axis=-1, keepdims=True)
    return xc * jax.lax.rsqrt(var + EPS) * w + b


def _split_heads(mat, base):
    """(SEQ, 3*HIDDEN) bf16 -> (NUM_HEADS, SEQ, HEAD_DIM), head on the leading
    (batch) axis so all attention contractions are leading-batch matmuls."""
    return jnp.stack(
        [mat[:, base + h * HEAD_DIM: base + (h + 1) * HEAD_DIM]
         for h in range(NUM_HEADS)], axis=0)


# ------------------------------ fused Pallas kernel --------------------------
def transformer_kernel(xp_ref, pw_ref, pb_ref, row0_ref, posr_ref,
                       ln1w_ref, ln1b_ref,
                       wqkv_ref, bqkv_ref, wo_ref, bo_ref,
                       ln2w_ref, ln2b_ref,
                       w1_ref, b1_ref, w2_ref, b2_ref,
                       lnfw_ref, lnfb_ref,
                       o_ref, x_scr):
    # One batch element per grid step (BB=1): no in-kernel batch loop, so every
    # weight/bias ref is loaded exactly once per step (nothing to hoist).
    scale = 1.0 / math.sqrt(HEAD_DIM)

    # ---- Embeddings: Conv2d(k=s=PATCH) == per-patch matmul, cls + pos -------
    emb = jnp.dot(xp_ref[0].astype(BF16), pw_ref[...],
                  preferred_element_type=jnp.float32) + pb_ref[...]
    # no concat: row 0 = cls + pos[0] (host-precomputed), rows 1.. = emb + pos
    x_scr[0:1, :] = row0_ref[...]
    x_scr[1:SEQ, :] = emb + posr_ref[...]
    x = x_scr[...]                                   # (SEQ, HIDDEN) f32

    for l in range(NUM_LAYERS):                      # static unroll (2 layers)
        # -------- attention block (pre-LN + MHSA + residual) --------
        h = _ln(x, ln1w_ref[l], ln1b_ref[l])
        qkv = (jnp.dot(h.astype(BF16), wqkv_ref[l],
                       preferred_element_type=jnp.float32)
               + bqkv_ref[l]).astype(BF16)           # (SEQ, 3*HIDDEN)

        qh = _split_heads(qkv, 0)                    # (H, SEQ, HEAD_DIM)
        kh = _split_heads(qkv, HIDDEN)
        vh = _split_heads(qkv, 2 * HIDDEN)

        # head-batched score matmul; contraction on last dims -> no k.T
        s = jnp.einsum('hqd,hkd->hqk', qh, kh,
                       preferred_element_type=jnp.float32) * scale
        s = s - jnp.max(s, axis=-1, keepdims=True)
        e = jnp.exp(s)
        p = e * pl.reciprocal(jnp.sum(e, axis=-1, keepdims=True), approx=True)

        ctx = jnp.einsum('hqk,hkd->hqd', p.astype(BF16), vh,
                         preferred_element_type=jnp.float32)   # (H, SEQ, hd)
        # output projection without a lane concat: batched per-head matmul
        # against wo reshaped to (H, HEAD_DIM, HIDDEN), then sum over heads.
        proj = jnp.einsum('hqd,hdo->hqo', ctx.astype(BF16), wo_ref[l],
                          preferred_element_type=jnp.float32)  # (H, SEQ, D)
        x = x + jnp.sum(proj, axis=0) + bo_ref[l]

        # -------- MLP block (pre-LN + fc1 + gelu + fc2 + residual) --------
        h = _ln(x, ln2w_ref[l], ln2b_ref[l])
        h = jnp.dot(h.astype(BF16), w1_ref[l],
                    preferred_element_type=jnp.float32) + b1_ref[l]
        h = jax.nn.gelu(h, approximate=True)         # tanh GELU -> EUP
        h = jnp.dot(h.astype(BF16), w2_ref[l],
                    preferred_element_type=jnp.float32) + b2_ref[l]
        x = x + h

    # final encoder LayerNorm
    o_ref[0] = _ln(x, lnfw_ref[...], lnfb_ref[...]).astype(o_ref.dtype)


# --------------------------------- wrapper ----------------------------------
def vit_transformer(x, p):
    B = x.shape[0]

    # im2col of the stride==kernel Conv2d: (B, N_PATCHES, C*P*P)
    xp = x.reshape(B, IN_CH, N_PATCH_SIDE, PATCH, N_PATCH_SIDE, PATCH)
    xp = xp.transpose(0, 2, 4, 1, 3, 5).reshape(B, N_PATCHES, KDIM)

    # host-side weight prep: fused QKV, head-split output projection,
    # bf16 matmul weights, cls folded into pos row 0, 2-D biases.
    pw = p['patch_w'].astype(BF16)
    pb = p['patch_b'].reshape(1, HIDDEN)
    wqkv = jnp.concatenate([p['wq'], p['wk'], p['wv']], axis=-1).astype(BF16)
    bqkv = jnp.concatenate([p['bq'], p['bk'], p['bv']], axis=-1)[:, None, :]
    wo_h = p['wo'].reshape(NUM_LAYERS, NUM_HEADS, HEAD_DIM, HIDDEN).astype(BF16)
    bo = p['bo'][:, None, :]
    w1 = p['w1'].astype(BF16)
    b1 = p['b1'][:, None, :]
    w2 = p['w2'].astype(BF16)
    b2 = p['b2'][:, None, :]
    ln1w, ln1b = p['ln1_w'][:, None, :], p['ln1_b'][:, None, :]
    ln2w, ln2b = p['ln2_w'][:, None, :], p['ln2_b'][:, None, :]
    lnfw, lnfb = p['lnf_w'], p['lnf_b']
    row0 = p['cls_token'].reshape(1, HIDDEN) + p['pos_emb'][0, 0:1, :]
    posr = p['pos_emb'][0, 1:, :]

    def _full(arr):
        nd = arr.ndim
        return pl.BlockSpec(arr.shape, lambda b, _n=nd: (0,) * _n)

    operands = (xp, pw, pb, row0, posr,
                ln1w, ln1b, wqkv, bqkv, wo_h, bo,
                ln2w, ln2b, w1, b1, w2, b2, lnfw, lnfb)

    in_specs = [pl.BlockSpec((1, N_PATCHES, KDIM), lambda b: (b, 0, 0))]
    in_specs += [_full(a) for a in operands[1:]]

    out = pl.pallas_call(
        transformer_kernel,
        out_shape=jax.ShapeDtypeStruct((B, SEQ, HIDDEN), jnp.float32),
        grid=(B,),                                   # 1 batch element / step
        in_specs=in_specs,
        out_specs=pl.BlockSpec((1, SEQ, HIDDEN), lambda b: (b, 0, 0)),
        scratch_shapes=[pltpu.VMEM((SEQ, HIDDEN), jnp.float32)],
        compiler_params=pltpu.CompilerParams(
            dimension_semantics=("parallel",),       # shard batch over TCs
            vmem_limit_bytes=8 * 1024 * 1024),
    )(*operands)
    return out


# --------------------------- deterministic params ---------------------------
def init_params(key):
    ks = jax.random.split(key, 9)

    def nrm(k, shape, scale=0.02):
        return (scale * jax.random.normal(k, shape)).astype(jnp.float32)

    L, D, M = NUM_LAYERS, HIDDEN, MLP_DIM
    return {
        'patch_w': nrm(ks[0], (KDIM, D)),        # conv weight, flattened
        'patch_b': jnp.zeros((D,), jnp.float32),
        'cls_token': nrm(ks[1], (1, 1, D)),
        'pos_emb': nrm(ks[2], (1, SEQ, D)),
        'ln1_w': jnp.ones((L, D), jnp.float32),
        'ln1_b': jnp.zeros((L, D), jnp.float32),
        'wq': nrm(ks[3], (L, D, D)), 'bq': jnp.zeros((L, D), jnp.float32),
        'wk': nrm(ks[4], (L, D, D)), 'bk': jnp.zeros((L, D), jnp.float32),
        'wv': nrm(ks[5], (L, D, D)), 'bv': jnp.zeros((L, D), jnp.float32),
        'wo': nrm(ks[6], (L, D, D)), 'bo': jnp.zeros((L, D), jnp.float32),
        'ln2_w': jnp.ones((L, D), jnp.float32),
        'ln2_b': jnp.zeros((L, D), jnp.float32),
        'w1': nrm(ks[7], (L, D, M)), 'b1': jnp.zeros((L, M), jnp.float32),
        'w2': nrm(ks[8], (L, M, D)), 'b2': jnp.zeros((L, D), jnp.float32),
        'lnf_w': jnp.ones((1, D), jnp.float32),
        'lnf_b': jnp.zeros((1, D), jnp.float32),
    }


# ----------------------------- pure-JAX reference ----------------------------
def reference(x, p):
    B = x.shape[0]
    xp = x.reshape(B, IN_CH, N_PATCH_SIDE, PATCH, N_PATCH_SIDE, PATCH)
    xp = xp.transpose(0, 2, 4, 1, 3, 5).reshape(B, N_PATCHES, -1)
    emb = xp @ p['patch_w'] + p['patch_b']
    cls = jnp.broadcast_to(p['cls_token'], (B, 1, HIDDEN))
    h = jnp.concatenate([cls, emb], axis=1) + p['pos_emb']

    def ln(t, w, b):
        mu = t.mean(-1, keepdims=True)
        var = ((t - mu) ** 2).mean(-1, keepdims=True)
        return (t - mu) / jnp.sqrt(var + EPS) * w + b

    for l in range(NUM_LAYERS):
        y = ln(h, p['ln1_w'][l], p['ln1_b'][l])
        q = (y @ p['wq'][l] + p['bq'][l]).reshape(B, SEQ, NUM_HEADS, HEAD_DIM)
        k = (y @ p['wk'][l] + p['bk'][l]).reshape(B, SEQ, NUM_HEADS, HEAD_DIM)
        v = (y @ p['wv'][l] + p['bv'][l]).reshape(B, SEQ, NUM_HEADS, HEAD_DIM)
        s = jnp.einsum('bqhd,bkhd->bhqk', q, k) / math.sqrt(HEAD_DIM)
        a = jax.nn.softmax(s, axis=-1)
        c = jnp.einsum('bhqk,bkhd->bqhd', a, v).reshape(B, SEQ, HIDDEN)
        h = h + (c @ p['wo'][l] + p['bo'][l])
        y = ln(h, p['ln2_w'][l], p['ln2_b'][l])
        y = jax.nn.gelu(y @ p['w1'][l] + p['b1'][l], approximate=False)
        h = h + (y @ p['w2'][l] + p['b2'][l])
    return ln(h, p['lnf_w'][0], p['lnf_b'][0])


if __name__ == "__main__":
    key = jax.random.PRNGKey(0)
    pkey, xkey = jax.random.split(key)
    params = init_params(pkey)
    x = jax.random.normal(xkey, (2, IN_CH, IMG, IMG), dtype=jnp.float32)

    out = jax.block_until_ready(vit_transformer(x, params))
    assert out.shape == (2, SEQ, HIDDEN), out.shape

    ref = reference(x, params)
    np.testing.assert_allclose(np.asarray(out), np.asarray(ref),
                               rtol=2e-2, atol=2e-2)
    print("KERNEL_OK")
</pallas_src>

<mosaic_0001>
module attributes {stable_mosaic.version = 11 : i64} {
  func.func @transformer_kernel(%arg0: i32, %arg1: memref<1x16x64xf32, #tpu.memory_space<vmem>>, %arg2: memref<64x32xbf16, #tpu.memory_space<vmem>>, %arg3: memref<1x32xf32, #tpu.memory_space<vmem>>, %arg4: memref<1x32xf32, #tpu.memory_space<vmem>>, %arg5: memref<16x32xf32, #tpu.memory_space<vmem>>, %arg6: memref<2x1x32xf32, #tpu.memory_space<vmem>>, %arg7: memref<2x1x32xf32, #tpu.memory_space<vmem>>, %arg8: memref<2x32x96xbf16, #tpu.memory_space<vmem>>, %arg9: memref<2x1x96xf32, #tpu.memory_space<vmem>>, %arg10: memref<2x4x8x32xbf16, #tpu.memory_space<vmem>>, %arg11: memref<2x1x32xf32, #tpu.memory_space<vmem>>, %arg12: memref<2x1x32xf32, #tpu.memory_space<vmem>>, %arg13: memref<2x1x32xf32, #tpu.memory_space<vmem>>, %arg14: memref<2x32x64xbf16, #tpu.memory_space<vmem>>, %arg15: memref<2x1x64xf32, #tpu.memory_space<vmem>>, %arg16: memref<2x64x32xbf16, #tpu.memory_space<vmem>>, %arg17: memref<2x1x32xf32, #tpu.memory_space<vmem>>, %arg18: memref<1x32xf32, #tpu.memory_space<vmem>>, %arg19: memref<1x32xf32, #tpu.memory_space<vmem>>, %arg20: memref<1x17x32xf32, #tpu.memory_space<vmem>>, %arg21: memref<17x32xf32, #tpu.memory_space<vmem>>) attributes {dimension_semantics = [#tpu.dimension_semantics<parallel>], iteration_bounds = array<i64: 2>, scalar_prefetch = 0 : i64, scratch_operands = 1 : i64, tpu.core_type = #tpu.core_type<tc>, window_params = [{transform_indices = @transform_0, window_bounds = array<i64: 1, 16, 64>}, {pipeline_mode = #tpu.pipeline_mode<synchronous>, transform_indices = @transform_1, window_bounds = array<i64: 64, 32>}, {pipeline_mode = #tpu.pipeline_mode<synchronous>, transform_indices = @transform_2, window_bounds = array<i64: 1, 32>}, {pipeline_mode = #tpu.pipeline_mode<synchronous>, transform_indices = @transform_3, window_bounds = array<i64: 1, 32>}, {pipeline_mode = #tpu.pipeline_mode<synchronous>, transform_indices = @transform_4, window_bounds = array<i64: 16, 32>}, {pipeline_mode = #tpu.pipeline_mode<synchronous>, transform_indices = @transform_5, window_bounds = array<i64: 2, 1, 32>}, {pipeline_mode = #tpu.pipeline_mode<synchronous>, transform_indices = @transform_6, window_bounds = array<i64: 2, 1, 32>}, {pipeline_mode = #tpu.pipeline_mode<synchronous>, transform_indices = @transform_7, window_bounds = array<i64: 2, 32, 96>}, {pipeline_mode = #tpu.pipeline_mode<synchronous>, transform_indices = @transform_8, window_bounds = array<i64: 2, 1, 96>}, {pipeline_mode = #tpu.pipeline_mode<synchronous>, transform_indices = @transform_9, window_bounds = array<i64: 2, 4, 8, 32>}, {pipeline_mode = #tpu.pipeline_mode<synchronous>, transform_indices = @transform_10, window_bounds = array<i64: 2, 1, 32>}, {pipeline_mode = #tpu.pipeline_mode<synchronous>, transform_indices = @transform_11, window_bounds = array<i64: 2, 1, 32>}, {pipeline_mode = #tpu.pipeline_mode<synchronous>, transform_indices = @transform_12, window_bounds = array<i64: 2, 1, 32>}, {pipeline_mode = #tpu.pipeline_mode<synchronous>, transform_indices = @transform_13, window_bounds = array<i64: 2, 32, 64>}, {pipeline_mode = #tpu.pipeline_mode<synchronous>, transform_indices = @transform_14, window_bounds = array<i64: 2, 1, 64>}, {pipeline_mode = #tpu.pipeline_mode<synchronous>, transform_indices = @transform_15, window_bounds = array<i64: 2, 64, 32>}, {pipeline_mode = #tpu.pipeline_mode<synchronous>, transform_indices = @transform_16, window_bounds = array<i64: 2, 1, 32>}, {pipeline_mode = #tpu.pipeline_mode<synchronous>, transform_indices = @transform_17, window_bounds = array<i64: 1, 32>}, {pipeline_mode = #tpu.pipeline_mode<synchronous>, transform_indices = @transform_18, window_bounds = array<i64: 1, 32>}, {transform_indices = @transform_19, window_bounds = array<i64: 1, 17, 32>}]} {
    %c0 = arith.constant 0 : index
    %c0_0 = arith.constant 0 : index
    %c0_1 = arith.constant 0 : index
    %0 = vector.load %arg1[%c0, %c0_0, %c0_1] : memref<1x16x64xf32, #tpu.memory_space<vmem>>, vector<1x16x64xf32>
    %1 = vector.shape_cast %0 : vector<1x16x64xf32> to vector<16x64xf32>
    %2 = arith.truncf %1 : vector<16x64xf32> to vector<16x64xbf16>
    %c0_2 = arith.constant 0 : index
    %c0_3 = arith.constant 0 : index
    %3 = vector.load %arg2[%c0_2, %c0_3] : memref<64x32xbf16, #tpu.memory_space<vmem>>, vector<64x32xbf16>
    %cst = arith.constant dense<0.000000e+00> : vector<16x32xf32>
    %4 = tpu.matmul %2, %3, %cst {dimension_numbers = #tpu.dot_dimension_numbers<[1], [0], [0], [1], [0, 0, 1, 1], [], []>} : vector<16x64xbf16>, vector<64x32xbf16>, vector<16x32xf32> -> vector<16x32xf32>
    %c0_4 = arith.constant 0 : index
    %c0_5 = arith.constant 0 : index
    %5 = vector.load %arg3[%c0_4, %c0_5] : memref<1x32xf32, #tpu.memory_space<vmem>>, vector<1x32xf32>
    %6 = vector.broadcast %5 : vector<1x32xf32> to vector<16x32xf32>
    %7 = arith.addf %4, %6 : vector<16x32xf32>
    %c0_6 = arith.constant 0 : index
    %c0_7 = arith.constant 0 : index
    %8 = vector.load %arg4[%c0_6, %c0_7] : memref<1x32xf32, #tpu.memory_space<vmem>>, vector<1x32xf32>
    %c0_8 = arith.constant 0 : index
    %c0_9 = arith.constant 0 : index
    %9 = vector.load %arg21[%c0_8, %c0_9] : memref<17x32xf32, #tpu.memory_space<vmem>>, vector<1x32xf32>
    tpu.vector_store %arg21[%c0_8, %c0_9], %8 {strides = array<i32>} : memref<17x32xf32, #tpu.memory_space<vmem>>, vector<1x32xf32>,
    %c0_10 = arith.constant 0 : index
    %c0_11 = arith.constant 0 : index
    %10 = vector.load %arg5[%c0_10, %c0_11] : memref<16x32xf32, #tpu.memory_space<vmem>>, vector<16x32xf32>
    %11 = arith.addf %7, %10 : vector<16x32xf32>
    %c1 = arith.constant 1 : index
    %c0_12 = arith.constant 0 : index
    %12 = vector.load %arg21[%c1, %c0_12] : memref<17x32xf32, #tpu.memory_space<vmem>>, vector<16x32xf32>
    tpu.vector_store %arg21[%c1, %c0_12], %11 {strides = array<i32>} : memref<17x32xf32, #tpu.memory_space<vmem>>, vector<16x32xf32>,
    %c0_13 = arith.constant 0 : index
    %c0_14 = arith.constant 0 : index
    %13 = vector.load %arg21[%c0_13, %c0_14] : memref<17x32xf32, #tpu.memory_space<vmem>>, vector<17x32xf32>
    %c0_15 = arith.constant 0 : index
    %c0_16 = arith.constant 0 : index
    %c0_17 = arith.constant 0 : index
    %14 = vector.load %arg6[%c0_15, %c0_16, %c0_17] : memref<2x1x32xf32, #tpu.memory_space<vmem>>, vector<1x1x32xf32>
    %15 = vector.shape_cast %14 : vector<1x1x32xf32> to vector<1x32xf32>
    %c0_18 = arith.constant 0 : index
    %c0_19 = arith.constant 0 : index
    %c0_20 = arith.constant 0 : index
    %16 = vector.load %arg7[%c0_18, %c0_19, %c0_20] : memref<2x1x32xf32, #tpu.memory_space<vmem>>, vector<1x1x32xf32>
    %17 = vector.shape_cast %16 : vector<1x1x32xf32> to vector<1x32xf32>
    %cst_21 = arith.constant dense<0.000000e+00> : vector<17xf32>
    %18 = vector.multi_reduction <add>, %13, %cst_21 [1] : vector<17x32xf32> to vector<17xf32>
    %19 = vector.shape_cast %18 : vector<17xf32> to vector<17x1xf32>
    %cst_22 = arith.constant 3.200000e+01 : f32
    %20 = vector.broadcast %cst_22 : f32 to vector<17x1xf32>
    %21 = arith.divf %19, %20 : vector<17x1xf32>
    %22 = vector.broadcast %21 : vector<17x1xf32> to vector<17x32xf32>
    %23 = arith.subf %13, %22 : vector<17x32xf32>
    %24 = arith.mulf %23, %23 : vector<17x32xf32>
    %cst_23 = arith.constant dense<0.000000e+00> : vector<17xf32>
    %25 = vector.multi_reduction <add>, %24, %cst_23 [1] : vector<17x32xf32> to vector<17xf32>
    %26 = vector.shape_cast %25 : vector<17xf32> to vector<17x1xf32>
    %cst_24 = arith.constant 3.200000e+01 : f32
    %27 = vector.broadcast %cst_24 : f32 to vector<17x1xf32>
    %28 = arith.divf %26, %27 : vector<17x1xf32>
    %cst_25 = arith.constant 9.99999997E-7 : f32
    %29 = vector.broadcast %cst_25 : f32 to vector<17x1xf32>
    %30 = arith.addf %28, %29 : vector<17x1xf32>
    %31 = math.rsqrt %30 : vector<17x1xf32>
    %32 = vector.broadcast %31 : vector<17x1xf32> to vector<17x32xf32>
    %33 = arith.mulf %23, %32 : vector<17x32xf32>
    %34 = vector.broadcast %15 : vector<1x32xf32> to vector<17x32xf32>
    %35 = arith.mulf %33, %34 : vector<17x32xf32>
    %36 = vector.broadcast %17 : vector<1x32xf32> to vector<17x32xf32>
    %37 = arith.addf %35, %36 : vector<17x32xf32>
    %38 = arith.truncf %37 : vector<17x32xf32> to vector<17x32xbf16>
    %c0_26 = arith.constant 0 : index
    %c0_27 = arith.constant 0 : index
    %c0_28 = arith.constant 0 : index
    %39 = vector.load %arg8[%c0_26, %c0_27, %c0_28] : memref<2x32x96xbf16, #tpu.memory_space<vmem>>, vector<1x32x96xbf16>
    %40 = vector.shape_cast %39 : vector<1x32x96xbf16> to vector<32x96xbf16>
    %cst_29 = arith.constant dense<0.000000e+00> : vector<17x96xf32>
    %41 = tpu.matmul %38, %40, %cst_29 {dimension_numbers = #tpu.dot_dimension_numbers<[1], [0], [0], [1], [0, 0, 1, 1], [], []>} : vector<17x32xbf16>, vector<32x96xbf16>, vector<17x96xf32> -> vector<17x96xf32>
    %c0_30 = arith.constant 0 : index
    %c0_31 = arith.constant 0 : index
    %c0_32 = arith.constant 0 : index
    %42 = vector.load %arg9[%c0_30, %c0_31, %c0_32] : memref<2x1x96xf32, #tpu.memory_space<vmem>>, vector<1x1x96xf32>
    %43 = vector.shape_cast %42 : vector<1x1x96xf32> to vector<1x96xf32>
    %44 = vector.broadcast %43 : vector<1x96xf32> to vector<17x96xf32>
    %45 = arith.addf %41, %44 : vector<17x96xf32>
    %46 = arith.truncf %45 : vector<17x96xf32> to vector<17x96xbf16>
    %47 = vector.extract_strided_slice %46 {offsets = [0, 0], sizes = [17, 8], strides = [1, 1]} : vector<17x96xbf16> to vector<17x8xbf16>
    %48 = vector.extract_strided_slice %46 {offsets = [0, 8], sizes = [17, 8], strides = [1, 1]} : vector<17x96xbf16> to vector<17x8xbf16>
    %49 = vector.extract_strided_slice %46 {offsets = [0, 16], sizes = [17, 8], strides = [1, 1]} : vector<17x96xbf16> to vector<17x8xbf16>
    %50 = vector.extract_strided_slice %46 {offsets = [0, 24], sizes = [17, 8], strides = [1, 1]} : vector<17x96xbf16> to vector<17x8xbf16>
    %51 = vector.shape_cast %47 : vector<17x8xbf16> to vector<1x17x8xbf16>
    %52 = vector.shape_cast %48 : vector<17x8xbf16> to vector<1x17x8xbf16>
    %53 = vector.shape_cast %49 : vector<17x8xbf16> to vector<1x17x8xbf16>
    %54 = vector.shape_cast %50 : vector<17x8xbf16> to vector<1x17x8xbf16>
    %55 = tpu.concatenate %51, %52, %53, %54 in 0 : vector<1x17x8xbf16>, vector<1x17x8xbf16>, vector<1x17x8xbf16>, vector<1x17x8xbf16> -> vector<4x17x8xbf16>
    %56 = vector.extract_strided_slice %46 {offsets = [0, 32], sizes = [17, 8], strides = [1, 1]} : vector<17x96xbf16> to vector<17x8xbf16>
    %57 = vector.extract_strided_slice %46 {offsets = [0, 40], sizes = [17, 8], strides = [1, 1]} : vector<17x96xbf16> to vector<17x8xbf16>
    %58 = vector.extract_strided_slice %46 {offsets = [0, 48], sizes = [17, 8], strides = [1, 1]} : vector<17x96xbf16> to vector<17x8xbf16>
    %59 = vector.extract_strided_slice %46 {offsets = [0, 56], sizes = [17, 8], strides = [1, 1]} : vector<17x96xbf16> to vector<17x8xbf16>
    %60 = vector.shape_cast %56 : vector<17x8xbf16> to vector<1x17x8xbf16>
    %61 = vector.shape_cast %57 : vector<17x8xbf16> to vector<1x17x8xbf16>
    %62 = vector.shape_cast %58 : vector<17x8xbf16> to vector<1x17x8xbf16>
    %63 = vector.shape_cast %59 : vector<17x8xbf16> to vector<1x17x8xbf16>
    %64 = tpu.concatenate %60, %61, %62, %63 in 0 : vector<1x17x8xbf16>, vector<1x17x8xbf16>, vector<1x17x8xbf16>, vector<1x17x8xbf16> -> vector<4x17x8xbf16>
    %65 = vector.extract_strided_slice %46 {offsets = [0, 64], sizes = [17, 8], strides = [1, 1]} : vector<17x96xbf16> to vector<17x8xbf16>
    %66 = vector.extract_strided_slice %46 {offsets = [0, 72], sizes = [17, 8], strides = [1, 1]} : vector<17x96xbf16> to vector<17x8xbf16>
    %67 = vector.extract_strided_slice %46 {offsets = [0, 80], sizes = [17, 8], strides = [1, 1]} : vector<17x96xbf16> to vector<17x8xbf16>
    %68 = vector.extract_strided_slice %46 {offsets = [0, 88], sizes = [17, 8], strides = [1, 1]} : vector<17x96xbf16> to vector<17x8xbf16>
    %69 = vector.shape_cast %65 : vector<17x8xbf16> to vector<1x17x8xbf16>
    %70 = vector.shape_cast %66 : vector<17x8xbf16> to vector<1x17x8xbf16>
    %71 = vector.shape_cast %67 : vector<17x8xbf16> to vector<1x17x8xbf16>
    %72 = vector.shape_cast %68 : vector<17x8xbf16> to vector<1x17x8xbf16>
    %73 = tpu.concatenate %69, %70, %71, %72 in 0 : vector<1x17x8xbf16>, vector<1x17x8xbf16>, vector<1x17x8xbf16>, vector<1x17x8xbf16> -> vector<4x17x8xbf16>
    "tpu.trace_start"() <{level = 10 : i32, message = "hqd,hkd->hqk"}> : () -> ()
    %cst_33 = arith.constant dense<0.000000e+00> : vector<4x17x17xf32>
    %74 = tpu.matmul %55, %64, %cst_33 {dimension_numbers = #tpu.dot_dimension_numbers<[2], [2], [1], [1], [0, 0, 0, 1, 1, 1], [0], [0]>} : vector<4x17x8xbf16>, vector<4x17x8xbf16>, vector<4x17x17xf32> -> vector<4x17x17xf32>
    "tpu.trace_stop"() : () -> ()
    %cst_34 = arith.constant 0.353553385 : f32
    %75 = vector.broadcast %cst_34 : f32 to vector<4x17x17xf32>
    %76 = arith.mulf %74, %75 : vector<4x17x17xf32>
    %cst_35 = arith.constant dense<0xFF800000> : vector<4x17xf32>
    %77 = vector.multi_reduction <maximumf>, %76, %cst_35 [2] : vector<4x17x17xf32> to vector<4x17xf32>
    %78 = vector.shape_cast %77 : vector<4x17xf32> to vector<4x17x1xf32>
    %79 = vector.broadcast %78 : vector<4x17x1xf32> to vector<4x17x17xf32>
    %80 = arith.subf %76, %79 : vector<4x17x17xf32>
    %81 = math.exp %80 : vector<4x17x17xf32>
    %cst_36 = arith.constant dense<0.000000e+00> : vector<4x17xf32>
    %82 = vector.multi_reduction <add>, %81, %cst_36 [2] : vector<4x17x17xf32> to vector<4x17xf32>
    %83 = vector.shape_cast %82 : vector<4x17xf32> to vector<4x17x1xf32>
    %84 = tpu.reciprocal %83 {approx = true} : vector<4x17x1xf32> -> vector<4x17x1xf32>
    %85 = vector.broadcast %84 : vector<4x17x1xf32> to vector<4x17x17xf32>
    %86 = arith.mulf %81, %85 : vector<4x17x17xf32>
    %87 = arith.truncf %86 : vector<4x17x17xf32> to vector<4x17x17xbf16>
    "tpu.trace_start"() <{level = 10 : i32, message = "hqk,hkd->hqd"}> : () -> ()
    %cst_37 = arith.constant dense<0.000000e+00> : vector<4x17x8xf32>
    %88 = tpu.matmul %87, %73, %cst_37 {dimension_numbers = #tpu.dot_dimension_numbers<[2], [1], [1], [2], [0, 0, 0, 1, 1, 2], [0], [0]>} : vector<4x17x17xbf16>, vector<4x17x8xbf16>, vector<4x17x8xf32> -> vector<4x17x8xf32>
    "tpu.trace_stop"() : () -> ()
    %89 = arith.truncf %88 : vector<4x17x8xf32> to vector<4x17x8xbf16>
    %c0_38 = arith.constant 0 : index
    %c0_39 = arith.constant 0 : index
    %c0_40 = arith.constant 0 : index
    %c0_41 = arith.constant 0 : index
    %90 = vector.load %arg10[%c0_38, %c0_39, %c0_40, %c0_41] : memref<2x4x8x32xbf16, #tpu.memory_space<vmem>>, vector<1x4x8x32xbf16>
    %91 = vector.shape_cast %90 : vector<1x4x8x32xbf16> to vector<4x8x32xbf16>
    "tpu.trace_start"() <{level = 10 : i32, message = "hqd,hdo->hqo"}> : () -> ()
    %cst_42 = arith.constant dense<0.000000e+00> : vector<4x17x32xf32>
    %92 = tpu.matmul %89, %91, %cst_42 {dimension_numbers = #tpu.dot_dimension_numbers<[2], [1], [1], [2], [0, 0, 0, 1, 1, 2], [0], [0]>} : vector<4x17x8xbf16>, vector<4x8x32xbf16>, vector<4x17x32xf32> -> vector<4x17x32xf32>
    "tpu.trace_stop"() : () -> ()
    %cst_43 = arith.constant dense<0.000000e+00> : vector<17x32xf32>
    %93 = vector.multi_reduction <add>, %92, %cst_43 [0] : vector<4x17x32xf32> to vector<17x32xf32>
    %94 = arith.addf %13, %93 : vector<17x32xf32>
    %c0_44 = arith.constant 0 : index
    %c0_45 = arith.constant 0 : index
    %c0_46 = arith.constant 0 : index
    %95 = vector.load %arg11[%c0_44, %c0_45, %c0_46] : memref<2x1x32xf32, #tpu.memory_space<vmem>>, vector<1x1x32xf32>
    %96 = vector.shape_cast %95 : vector<1x1x32xf32> to vector<1x32xf32>
    %97 = vector.broadcast %96 : vector<1x32xf32> to vector<17x32xf32>
    %98 = arith.addf %94, %97 : vector<17x32xf32>
    %c0_47 = arith.constant 0 : index
    %c0_48 = arith.constant 0 : index
    %c0_49 = arith.constant 0 : index
    %99 = vector.load %arg12[%c0_47, %c0_48, %c0_49] : memref<2x1x32xf32, #tpu.memory_space<vmem>>, vector<1x1x32xf32>
    %100 = vector.shape_cast %99 : vector<1x1x32xf32> to vector<1x32xf32>
    %c0_50 = arith.constant 0 : index
    %c0_51 = arith.constant 0 : index
    %c0_52 = arith.constant 0 : index
    %101 = vector.load %arg13[%c0_50, %c0_51, %c0_52] : memref<2x1x32xf32, #tpu.memory_space<vmem>>, vector<1x1x32xf32>
    %102 = vector.shape_cast %101 : vector<1x1x32xf32> to vector<1x32xf32>
    %cst_53 = arith.constant dense<0.000000e+00> : vector<17xf32>
    %103 = vector.multi_reduction <add>, %98, %cst_53 [1] : vector<17x32xf32> to vector<17xf32>
    %104 = vector.shape_cast %103 : vector<17xf32> to vector<17x1xf32>
    %cst_54 = arith.constant 3.200000e+01 : f32
    %105 = vector.broadcast %cst_54 : f32 to vector<17x1xf32>
    %106 = arith.divf %104, %105 : vector<17x1xf32>
    %107 = vector.broadcast %106 : vector<17x1xf32> to vector<17x32xf32>
    %108 = arith.subf %98, %107 : vector<17x32xf32>
    %109 = arith.mulf %108, %108 : vector<17x32xf32>
    %cst_55 = arith.constant dense<0.000000e+00> : vector<17xf32>
    %110 = vector.multi_reduction <add>, %109, %cst_55 [1] : vector<17x32xf32> to vector<17xf32>
    %111 = vector.shape_cast %110 : vector<17xf32> to vector<17x1xf32>
    %cst_56 = arith.constant 3.200000e+01 : f32
    %112 = vector.broadcast %cst_56 : f32 to vector<17x1xf32>
    %113 = arith.divf %111, %112 : vector<17x1xf32>
    %cst_57 = arith.constant 9.99999997E-7 : f32
    %114 = vector.broadcast %cst_57 : f32 to vector<17x1xf32>
    %115 = arith.addf %113, %114 : vector<17x1xf32>
    %116 = math.rsqrt %115 : vector<17x1xf32>
    %117 = vector.broadcast %116 : vector<17x1xf32> to vector<17x32xf32>
    %118 = arith.mulf %108, %117 : vector<17x32xf32>
    %119 = vector.broadcast %100 : vector<1x32xf32> to vector<17x32xf32>
    %120 = arith.mulf %118, %119 : vector<17x32xf32>
    %121 = vector.broadcast %102 : vector<1x32xf32> to vector<17x32xf32>
    %122 = arith.addf %120, %121 : vector<17x32xf32>
    %123 = arith.truncf %122 : vector<17x32xf32> to vector<17x32xbf16>
    %c0_58 = arith.constant 0 : index
    %c0_59 = arith.constant 0 : index
    %c0_60 = arith.constant 0 : index
    %124 = vector.load %arg14[%c0_58, %c0_59, %c0_60] : memref<2x32x64xbf16, #tpu.memory_space<vmem>>, vector<1x32x64xbf16>
    %125 = vector.shape_cast %124 : vector<1x32x64xbf16> to vector<32x64xbf16>
    %cst_61 = arith.constant dense<0.000000e+00> : vector<17x64xf32>
    %126 = tpu.matmul %123, %125, %cst_61 {dimension_numbers = #tpu.dot_dimension_numbers<[1], [0], [0], [1], [0, 0, 1, 1], [], []>} : vector<17x32xbf16>, vector<32x64xbf16>, vector<17x64xf32> -> vector<17x64xf32>
    %c0_62 = arith.constant 0 : index
    %c0_63 = arith.constant 0 : index
    %c0_64 = arith.constant 0 : index
    %127 = vector.load %arg15[%c0_62, %c0_63, %c0_64] : memref<2x1x64xf32, #tpu.memory_space<vmem>>, vector<1x1x64xf32>
    %128 = vector.shape_cast %127 : vector<1x1x64xf32> to vector<1x64xf32>
    %129 = vector.broadcast %128 : vector<1x64xf32> to vector<17x64xf32>
    %130 = arith.addf %126, %129 : vector<17x64xf32>
    %131 = arith.mulf %130, %130 : vector<17x64xf32>
    %132 = arith.mulf %130, %131 : vector<17x64xf32>
    %cst_65 = arith.constant 4.471500e-02 : f32
    %133 = vector.broadcast %cst_65 : f32 to vector<17x64xf32>
    %134 = arith.mulf %133, %132 : vector<17x64xf32>
    %135 = arith.addf %130, %134 : vector<17x64xf32>
    %cst_66 = arith.constant 0.797884583 : f32
    %136 = vector.broadcast %cst_66 : f32 to vector<17x64xf32>
    %137 = arith.mulf %136, %135 : vector<17x64xf32>
    %138 = math.tanh %137 : vector<17x64xf32>
    %cst_67 = arith.constant 1.000000e+00 : f32
    %139 = vector.broadcast %cst_67 : f32 to vector<17x64xf32>
    %140 = arith.addf %139, %138 : vector<17x64xf32>
    %cst_68 = arith.constant 5.000000e-01 : f32
    %141 = vector.broadcast %cst_68 : f32 to vector<17x64xf32>
    %142 = arith.mulf %141, %140 : vector<17x64xf32>
    %143 = arith.mulf %130, %142 : vector<17x64xf32>
    %144 = arith.truncf %143 : vector<17x64xf32> to vector<17x64xbf16>
    %c0_69 = arith.constant 0 : index
    %c0_70 = arith.constant 0 : index
    %c0_71 = arith.constant 0 : index
    %145 = vector.load %arg16[%c0_69, %c0_70, %c0_71] : memref<2x64x32xbf16, #tpu.memory_space<vmem>>, vector<1x64x32xbf16>
    %146 = vector.shape_cast %145 : vector<1x64x32xbf16> to vector<64x32xbf16>
    %cst_72 = arith.constant dense<0.000000e+00> : vector<17x32xf32>
    %147 = tpu.matmul %144, %146, %cst_72 {dimension_numbers = #tpu.dot_dimension_numbers<[1], [0], [0], [1], [0, 0, 1, 1], [], []>} : vector<17x64xbf16>, vector<64x32xbf16>, vector<17x32xf32> -> vector<17x32xf32>
    %c0_73 = arith.constant 0 : index
    %c0_74 = arith.constant 0 : index
    %c0_75 = arith.constant 0 : index
    %148 = vector.load %arg17[%c0_73, %c0_74, %c0_75] : memref<2x1x32xf32, #tpu.memory_space<vmem>>, vector<1x1x32xf32>
    %149 = vector.shape_cast %148 : vector<1x1x32xf32> to vector<1x32xf32>
    %150 = vector.broadcast %149 : vector<1x32xf32> to vector<17x32xf32>
    %151 = arith.addf %147, %150 : vector<17x32xf32>
    %152 = arith.addf %98, %151 : vector<17x32xf32>
    %c1_76 = arith.constant 1 : index
    %c0_77 = arith.constant 0 : index
    %c0_78 = arith.constant 0 : index
    %153 = vector.load %arg6[%c1_76, %c0_77, %c0_78] : memref<2x1x32xf32, #tpu.memory_space<vmem>>, vector<1x1x32xf32>
    %154 = vector.shape_cast %153 : vector<1x1x32xf32> to vector<1x32xf32>
    %c1_79 = arith.constant 1 : index
    %c0_80 = arith.constant 0 : index
    %c0_81 = arith.constant 0 : index
    %155 = vector.load %arg7[%c1_79, %c0_80, %c0_81] : memref<2x1x32xf32, #tpu.memory_space<vmem>>, vector<1x1x32xf32>
    %156 = vector.shape_cast %155 : vector<1x1x32xf32> to vector<1x32xf32>
    %cst_82 = arith.constant dense<0.000000e+00> : vector<17xf32>
    %157 = vector.multi_reduction <add>, %152, %cst_82 [1] : vector<17x32xf32> to vector<17xf32>
    %158 = vector.shape_cast %157 : vector<17xf32> to vector<17x1xf32>
    %cst_83 = arith.constant 3.200000e+01 : f32
    %159 = vector.broadcast %cst_83 : f32 to vector<17x1xf32>
    %160 = arith.divf %158, %159 : vector<17x1xf32>
    %161 = vector.broadcast %160 : vector<17x1xf32> to vector<17x32xf32>
    %162 = arith.subf %152, %161 : vector<17x32xf32>
    %163 = arith.mulf %162, %162 : vector<17x32xf32>
    %cst_84 = arith.constant dense<0.000000e+00> : vector<17xf32>
    %164 = vector.multi_reduction <add>, %163, %cst_84 [1] : vector<17x32xf32> to vector<17xf32>
    %165 = vector.shape_cast %164 : vector<17xf32> to vector<17x1xf32>
    %cst_85 = arith.constant 3.200000e+01 : f32
    %166 = vector.broadcast %cst_85 : f32 to vector<17x1xf32>
    %167 = arith.divf %165, %166 : vector<17x1xf32>
    %cst_86 = arith.constant 9.99999997E-7 : f32
    %168 = vector.broadcast %cst_86 : f32 to vector<17x1xf32>
    %169 = arith.addf %167, %168 : vector<17x1xf32>
    %170 = math.rsqrt %169 : vector<17x1xf32>
    %171 = vector.broadcast %170 : vector<17x1xf32> to vector<17x32xf32>
    %172 = arith.mulf %162, %171 : vector<17x32xf32>
    %173 = vector.broadcast %154 : vector<1x32xf32> to vector<17x32xf32>
    %174 = arith.mulf %172, %173 : vector<17x32xf32>
    %175 = vector.broadcast %156 : vector<1x32xf32> to vector<17x32xf32>
    %176 = arith.addf %174, %175 : vector<17x32xf32>
    %177 = arith.truncf %176 : vector<17x32xf32> to vector<17x32xbf16>
    %c1_87 = arith.constant 1 : index
    %c0_88 = arith.constant 0 : index
    %c0_89 = arith.constant 0 : index
    %178 = vector.load %arg8[%c1_87, %c0_88, %c0_89] : memref<2x32x96xbf16, #tpu.memory_space<vmem>>, vector<1x32x96xbf16>
    %179 = vector.shape_cast %178 : vector<1x32x96xbf16> to vector<32x96xbf16>
    %cst_90 = arith.constant dense<0.000000e+00> : vector<17x96xf32>
    %180 = tpu.matmul %177, %179, %cst_90 {dimension_numbers = #tpu.dot_dimension_numbers<[1], [0], [0], [1], [0, 0, 1, 1], [], []>} : vector<17x32xbf16>, vector<32x96xbf16>, vector<17x96xf32> -> vector<17x96xf32>
    %c1_91 = arith.constant 1 : index
    %c0_92 = arith.constant 0 : index
    %c0_93 = arith.constant 0 : index
    %181 = vector.load %arg9[%c1_91, %c0_92, %c0_93] : memref<2x1x96xf32, #tpu.memory_space<vmem>>, vector<1x1x96xf32>
    %182 = vector.shape_cast %181 : vector<1x1x96xf32> to vector<1x96xf32>
    %183 = vector.broadcast %182 : vector<1x96xf32> to vector<17x96xf32>
    %184 = arith.addf %180, %183 : vector<17x96xf32>
    %185 = arith.truncf %184 : vector<17x96xf32> to vector<17x96xbf16>
    %186 = vector.extract_strided_slice %185 {offsets = [0, 0], sizes = [17, 8], strides = [1, 1]} : vector<17x96xbf16> to vector<17x8xbf16>
    %187 = vector.extract_strided_slice %185 {offsets = [0, 8], sizes = [17, 8], strides = [1, 1]} : vector<17x96xbf16> to vector<17x8xbf16>
    %188 = vector.extract_strided_slice %185 {offsets = [0, 16], sizes = [17, 8], strides = [1, 1]} : vector<17x96xbf16> to vector<17x8xbf16>
    %189 = vector.extract_strided_slice %185 {offsets = [0, 24], sizes = [17, 8], strides = [1, 1]} : vector<17x96xbf16> to vector<17x8xbf16>
    %190 = vector.shape_cast %186 : vector<17x8xbf16> to vector<1x17x8xbf16>
    %191 = vector.shape_cast %187 : vector<17x8xbf16> to vector<1x17x8xbf16>
    %192 = vector.shape_cast %188 : vector<17x8xbf16> to vector<1x17x8xbf16>
    %193 = vector.shape_cast %189 : vector<17x8xbf16> to vector<1x17x8xbf16>
    %194 = tpu.concatenate %190, %191, %192, %193 in 0 : vector<1x17x8xbf16>, vector<1x17x8xbf16>, vector<1x17x8xbf16>, vector<1x17x8xbf16> -> vector<4x17x8xbf16>
    %195 = vector.extract_strided_slice %185 {offsets = [0, 32], sizes = [17, 8], strides = [1, 1]} : vector<17x96xbf16> to vector<17x8xbf16>
    %196 = vector.extract_strided_slice %185 {offsets = [0, 40], sizes = [17, 8], strides = [1, 1]} : vector<17x96xbf16> to vector<17x8xbf16>
    %197 = vector.extract_strided_slice %185 {offsets = [0, 48], sizes = [17, 8], strides = [1, 1]} : vector<17x96xbf16> to vector<17x8xbf16>
    %198 = vector.extract_strided_slice %185 {offsets = [0, 56], sizes = [17, 8], strides = [1, 1]} : vector<17x96xbf16> to vector<17x8xbf16>
    %199 = vector.shape_cast %195 : vector<17x8xbf16> to vector<1x17x8xbf16>
    %200 = vector.shape_cast %196 : vector<17x8xbf16> to vector<1x17x8xbf16>
    %201 = vector.shape_cast %197 : vector<17x8xbf16> to vector<1x17x8xbf16>
    %202 = vector.shape_cast %198 : vector<17x8xbf16> to vector<1x17x8xbf16>
    %203 = tpu.concatenate %199, %200, %201, %202 in 0 : vector<1x17x8xbf16>, vector<1x17x8xbf16>, vector<1x17x8xbf16>, vector<1x17x8xbf16> -> vector<4x17x8xbf16>
    %204 = vector.extract_strided_slice %185 {offsets = [0, 64], sizes = [17, 8], strides = [1, 1]} : vector<17x96xbf16> to vector<17x8xbf16>
    %205 = vector.extract_strided_slice %185 {offsets = [0, 72], sizes = [17, 8], strides = [1, 1]} : vector<17x96xbf16> to vector<17x8xbf16>
    %206 = vector.extract_strided_slice %185 {offsets = [0, 80], sizes = [17, 8], strides = [1, 1]} : vector<17x96xbf16> to vector<17x8xbf16>
    %207 = vector.extract_strided_slice %185 {offsets = [0, 88], sizes = [17, 8], strides = [1, 1]} : vector<17x96xbf16> to vector<17x8xbf16>
    %208 = vector.shape_cast %204 : vector<17x8xbf16> to vector<1x17x8xbf16>
    %209 = vector.shape_cast %205 : vector<17x8xbf16> to vector<1x17x8xbf16>
    %210 = vector.shape_cast %206 : vector<17x8xbf16> to vector<1x17x8xbf16>
    %211 = vector.shape_cast %207 : vector<17x8xbf16> to vector<1x17x8xbf16>
    %212 = tpu.concatenate %208, %209, %210, %211 in 0 : vector<1x17x8xbf16>, vector<1x17x8xbf16>, vector<1x17x8xbf16>, vector<1x17x8xbf16> -> vector<4x17x8xbf16>
    "tpu.trace_start"() <{level = 10 : i32, message = "hqd,hkd->hqk"}> : () -> ()
    %cst_94 = arith.constant dense<0.000000e+00> : vector<4x17x17xf32>
    %213 = tpu.matmul %194, %203, %cst_94 {dimension_numbers = #tpu.dot_dimension_numbers<[2], [2], [1], [1], [0, 0, 0, 1, 1, 1], [0], [0]>} : vector<4x17x8xbf16>, vector<4x17x8xbf16>, vector<4x17x17xf32> -> vector<4x17x17xf32>
    "tpu.trace_stop"() : () -> ()
    %cst_95 = arith.constant 0.353553385 : f32
    %214 = vector.broadcast %cst_95 : f32 to vector<4x17x17xf32>
    %215 = arith.mulf %213, %214 : vector<4x17x17xf32>
    %cst_96 = arith.constant dense<0xFF800000> : vector<4x17xf32>
    %216 = vector.multi_reduction <maximumf>, %215, %cst_96 [2] : vector<4x17x17xf32> to vector<4x17xf32>
    %217 = vector.shape_cast %216 : vector<4x17xf32> to vector<4x17x1xf32>
    %218 = vector.broadcast %217 : vector<4x17x1xf32> to vector<4x17x17xf32>
    %219 = arith.subf %215, %218 : vector<4x17x17xf32>
    %220 = math.exp %219 : vector<4x17x17xf32>
    %cst_97 = arith.constant dense<0.000000e+00> : vector<4x17xf32>
    %221 = vector.multi_reduction <add>, %220, %cst_97 [2] : vector<4x17x17xf32> to vector<4x17xf32>
    %222 = vector.shape_cast %221 : vector<4x17xf32> to vector<4x17x1xf32>
    %223 = tpu.reciprocal %222 {approx = true} : vector<4x17x1xf32> -> vector<4x17x1xf32>
    %224 = vector.broadcast %223 : vector<4x17x1xf32> to vector<4x17x17xf32>
    %225 = arith.mulf %220, %224 : vector<4x17x17xf32>
    %226 = arith.truncf %225 : vector<4x17x17xf32> to vector<4x17x17xbf16>
    "tpu.trace_start"() <{level = 10 : i32, message = "hqk,hkd->hqd"}> : () -> ()
    %cst_98 = arith.constant dense<0.000000e+00> : vector<4x17x8xf32>
    %227 = tpu.matmul %226, %212, %cst_98 {dimension_numbers = #tpu.dot_dimension_numbers<[2], [1], [1], [2], [0, 0, 0, 1, 1, 2], [0], [0]>} : vector<4x17x17xbf16>, vector<4x17x8xbf16>, vector<4x17x8xf32> -> vector<4x17x8xf32>
    "tpu.trace_stop"() : () -> ()
    %228 = arith.truncf %227 : vector<4x17x8xf32> to vector<4x17x8xbf16>
    %c1_99 = arith.constant 1 : index
    %c0_100 = arith.constant 0 : index
    %c0_101 = arith.constant 0 : index
    %c0_102 = arith.constant 0 : index
    %229 = vector.load %arg10[%c1_99, %c0_100, %c0_101, %c0_102] : memref<2x4x8x32xbf16, #tpu.memory_space<vmem>>, vector<1x4x8x32xbf16>
    %230 = vector.shape_cast %229 : vector<1x4x8x32xbf16> to vector<4x8x32xbf16>
    "tpu.trace_start"() <{level = 10 : i32, message = "hqd,hdo->hqo"}> : () -> ()
    %cst_103 = arith.constant dense<0.000000e+00> : vector<4x17x32xf32>
    %231 = tpu.matmul %228, %230, %cst_103 {dimension_numbers = #tpu.dot_dimension_numbers<[2], [1], [1], [2], [0, 0, 0, 1, 1, 2], [0], [0]>} : vector<4x17x8xbf16>, vector<4x8x32xbf16>, vector<4x17x32xf32> -> vector<4x17x32xf32>
    "tpu.trace_stop"() : () -> ()
    %cst_104 = arith.constant dense<0.000000e+00> : vector<17x32xf32>
    %232 = vector.multi_reduction <add>, %231, %cst_104 [0] : vector<4x17x32xf32> to vector<17x32xf32>
    %233 = arith.addf %152, %232 : vector<17x32xf32>
    %c1_105 = arith.constant 1 : index
    %c0_106 = arith.constant 0 : index
    %c0_107 = arith.constant 0 : index
    %234 = vector.load %arg11[%c1_105, %c0_106, %c0_107] : memref<2x1x32xf32, #tpu.memory_space<vmem>>, vector<1x1x32xf32>
    %235 = vector.shape_cast %234 : vector<1x1x32xf32> to vector<1x32xf32>
    %236 = vector.broadcast %235 : vector<1x32xf32> to vector<17x32xf32>
    %237 = arith.addf %233, %236 : vector<17x32xf32>
    %c1_108 = arith.constant 1 : index
    %c0_109 = arith.constant 0 : index
    %c0_110 = arith.constant 0 : index
    %238 = vector.load %arg12[%c1_108, %c0_109, %c0_110] : memref<2x1x32xf32, #tpu.memory_space<vmem>>, vector<1x1x32xf32>
    %239 = vector.shape_cast %238 : vector<1x1x32xf32> to vector<1x32xf32>
    %c1_111 = arith.constant 1 : index
    %c0_112 = arith.constant 0 : index
    %c0_113 = arith.constant 0 : index
    %240 = vector.load %arg13[%c1_111, %c0_112, %c0_113] : memref<2x1x32xf32, #tpu.memory_space<vmem>>, vector<1x1x32xf32>
    %241 = vector.shape_cast %240 : vector<1x1x32xf32> to vector<1x32xf32>
    %cst_114 = arith.constant dense<0.000000e+00> : vector<17xf32>
    %242 = vector.multi_reduction <add>, %237, %cst_114 [1] : vector<17x32xf32> to vector<17xf32>
    %243 = vector.shape_cast %242 : vector<17xf32> to vector<17x1xf32>
    %cst_115 = arith.constant 3.200000e+01 : f32
    %244 = vector.broadcast %cst_115 : f32 to vector<17x1xf32>
    %245 = arith.divf %243, %244 : vector<17x1xf32>
    %246 = vector.broadcast %245 : vector<17x1xf32> to vector<17x32xf32>
    %247 = arith.subf %237, %246 : vector<17x32xf32>
    %248 = arith.mulf %247, %247 : vector<17x32xf32>
    %cst_116 = arith.constant dense<0.000000e+00> : vector<17xf32>
    %249 = vector.multi_reduction <add>, %248, %cst_116 [1] : vector<17x32xf32> to vector<17xf32>
    %250 = vector.shape_cast %249 : vector<17xf32> to vector<17x1xf32>
    %cst_117 = arith.constant 3.200000e+01 : f32
    %251 = vector.broadcast %cst_117 : f32 to vector<17x1xf32>
    %252 = arith.divf %250, %251 : vector<17x1xf32>
    %cst_118 = arith.constant 9.99999997E-7 : f32
    %253 = vector.broadcast %cst_118 : f32 to vector<17x1xf32>
    %254 = arith.addf %252, %253 : vector<17x1xf32>
    %255 = math.rsqrt %254 : vector<17x1xf32>
    %256 = vector.broadcast %255 : vector<17x1xf32> to vector<17x32xf32>
    %257 = arith.mulf %247, %256 : vector<17x32xf32>
    %258 = vector.broadcast %239 : vector<1x32xf32> to vector<17x32xf32>
    %259 = arith.mulf %257, %258 : vector<17x32xf32>
    %260 = vector.broadcast %241 : vector<1x32xf32> to vector<17x32xf32>
    %261 = arith.addf %259, %260 : vector<17x32xf32>
    %262 = arith.truncf %261 : vector<17x32xf32> to vector<17x32xbf16>
    %c1_119 = arith.constant 1 : index
    %c0_120 = arith.constant 0 : index
    %c0_121 = arith.constant 0 : index
    %263 = vector.load %arg14[%c1_119, %c0_120, %c0_121] : memref<2x32x64xbf16, #tpu.memory_space<vmem>>, vector<1x32x64xbf16>
    %264 = vector.shape_cast %263 : vector<1x32x64xbf16> to vector<32x64xbf16>
    %cst_122 = arith.constant dense<0.000000e+00> : vector<17x64xf32>
    %265 = tpu.matmul %262, %264, %cst_122 {dimension_numbers = #tpu.dot_dimension_numbers<[1], [0], [0], [1], [0, 0, 1, 1], [], []>} : vector<17x32xbf16>, vector<32x64xbf16>, vector<17x64xf32> -> vector<17x64xf32>
    %c1_123 = arith.constant 1 : index
    %c0_124 = arith.constant 0 : index
    %c0_125 = arith.constant 0 : index
    %266 = vector.load %arg15[%c1_123, %c0_124, %c0_125] : memref<2x1x64xf32, #tpu.memory_space<vmem>>, vector<1x1x64xf32>
    %267 = vector.shape_cast %266 : vector<1x1x64xf32> to vector<1x64xf32>
    %268 = vector.broadcast %267 : vector<1x64xf32> to vector<17x64xf32>
    %269 = arith.addf %265, %268 : vector<17x64xf32>
    %270 = arith.mulf %269, %269 : vector<17x64xf32>
    %271 = arith.mulf %269, %270 : vector<17x64xf32>
    %cst_126 = arith.constant 4.471500e-02 : f32
    %272 = vector.broadcast %cst_126 : f32 to vector<17x64xf32>
    %273 = arith.mulf %272, %271 : vector<17x64xf32>
    %274 = arith.addf %269, %273 : vector<17x64xf32>
    %cst_127 = arith.constant 0.797884583 : f32
    %275 = vector.broadcast %cst_127 : f32 to vector<17x64xf32>
    %276 = arith.mulf %275, %274 : vector<17x64xf32>
    %277 = math.tanh %276 : vector<17x64xf32>
    %cst_128 = arith.constant 1.000000e+00 : f32
    %278 = vector.broadcast %cst_128 : f32 to vector<17x64xf32>
    %279 = arith.addf %278, %277 : vector<17x64xf32>
    %cst_129 = arith.constant 5.000000e-01 : f32
    %280 = vector.broadcast %cst_129 : f32 to vector<17x64xf32>
    %281 = arith.mulf %280, %279 : vector<17x64xf32>
    %282 = arith.mulf %269, %281 : vector<17x64xf32>
    %283 = arith.truncf %282 : vector<17x64xf32> to vector<17x64xbf16>
    %c1_130 = arith.constant 1 : index
    %c0_131 = arith.constant 0 : index
    %c0_132 = arith.constant 0 : index
    %284 = vector.load %arg16[%c1_130, %c0_131, %c0_132] : memref<2x64x32xbf16, #tpu.memory_space<vmem>>, vector<1x64x32xbf16>
    %285 = vector.shape_cast %284 : vector<1x64x32xbf16> to vector<64x32xbf16>
    %cst_133 = arith.constant dense<0.000000e+00> : vector<17x32xf32>
    %286 = tpu.matmul %283, %285, %cst_133 {dimension_numbers = #tpu.dot_dimension_numbers<[1], [0], [0], [1], [0, 0, 1, 1], [], []>} : vector<17x64xbf16>, vector<64x32xbf16>, vector<17x32xf32> -> vector<17x32xf32>
    %c1_134 = arith.constant 1 : index
    %c0_135 = arith.constant 0 : index
    %c0_136 = arith.constant 0 : index
    %287 = vector.load %arg17[%c1_134, %c0_135, %c0_136] : memref<2x1x32xf32, #tpu.memory_space<vmem>>, vector<1x1x32xf32>
    %288 = vector.shape_cast %287 : vector<1x1x32xf32> to vector<1x32xf32>
    %289 = vector.broadcast %288 : vector<1x32xf32> to vector<17x32xf32>
    %290 = arith.addf %286, %289 : vector<17x32xf32>
    %291 = arith.addf %237, %290 : vector<17x32xf32>
    %c0_137 = arith.constant 0 : index
    %c0_138 = arith.constant 0 : index
    %292 = vector.load %arg18[%c0_137, %c0_138] : memref<1x32xf32, #tpu.memory_space<vmem>>, vector<1x32xf32>
    %c0_139 = arith.constant 0 : index
    %c0_140 = arith.constant 0 : index
    %293 = vector.load %arg19[%c0_139, %c0_140] : memref<1x32xf32, #tpu.memory_space<vmem>>, vector<1x32xf32>
    %cst_141 = arith.constant dense<0.000000e+00> : vector<17xf32>
    %294 = vector.multi_reduction <add>, %291, %cst_141 [1] : vector<17x32xf32> to vector<17xf32>
    %295 = vector.shape_cast %294 : vector<17xf32> to vector<17x1xf32>
    %cst_142 = arith.constant 3.200000e+01 : f32
    %296 = vector.broadcast %cst_142 : f32 to vector<17x1xf32>
    %297 = arith.divf %295, %296 : vector<17x1xf32>
    %298 = vector.broadcast %297 : vector<17x1xf32> to vector<17x32xf32>
    %299 = arith.subf %291, %298 : vector<17x32xf32>
    %300 = arith.mulf %299, %299 : vector<17x32xf32>
    %cst_143 = arith.constant dense<0.000000e+00> : vector<17xf32>
    %301 = vector.multi_reduction <add>, %300, %cst_143 [1] : vector<17x32xf32> to vector<17xf32>
    %302 = vector.shape_cast %301 : vector<17xf32> to vector<17x1xf32>
    %cst_144 = arith.constant 3.200000e+01 : f32
    %303 = vector.broadcast %cst_144 : f32 to vector<17x1xf32>
    %304 = arith.divf %302, %303 : vector<17x1xf32>
    %cst_145 = arith.constant 9.99999997E-7 : f32
    %305 = vector.broadcast %cst_145 : f32 to vector<17x1xf32>
    %306 = arith.addf %304, %305 : vector<17x1xf32>
    %307 = math.rsqrt %306 : vector<17x1xf32>
    %308 = vector.broadcast %307 : vector<17x1xf32> to vector<17x32xf32>
    %309 = arith.mulf %299, %308 : vector<17x32xf32>
    %310 = vector.broadcast %292 : vector<1x32xf32> to vector<17x32xf32>
    %311 = arith.mulf %309, %310 : vector<17x32xf32>
    %312 = vector.broadcast %293 : vector<1x32xf32> to vector<17x32xf32>
    %313 = arith.addf %311, %312 : vector<17x32xf32>
    %c0_146 = arith.constant 0 : index
    %c0_147 = arith.constant 0 : index
    %c0_148 = arith.constant 0 : index
    %314 = vector.load %arg20[%c0_146, %c0_147, %c0_148] : memref<1x17x32xf32, #tpu.memory_space<vmem>>, vector<1x17x32xf32>
    %315 = vector.shape_cast %314 : vector<1x17x32xf32> to vector<17x32xf32>
    %316 = vector.shape_cast %313 : vector<17x32xf32> to vector<1x17x32xf32>
    tpu.vector_store %arg20[%c0_146, %c0_147, %c0_148], %316 {strides = array<i32>} : memref<1x17x32xf32, #tpu.memory_space<vmem>>, vector<1x17x32xf32>,
    return
  }
  func.func @transform_0(%arg0: i32) -> (i32, i32, i32) {
    %c0_i32 = arith.constant 0 : i32
    %c0_i32_0 = arith.constant 0 : i32
    %c0_i32_1 = arith.constant 0 : i32
    return %arg0, %c0_i32, %c0_i32_0 : i32, i32, i32
  }
  func.func @transform_1(%arg0: i32) -> (i32, i32) {
    %c0_i32 = arith.constant 0 : i32
    %c0_i32_0 = arith.constant 0 : i32
    %c0_i32_1 = arith.constant 0 : i32
    return %c0_i32, %c0_i32_0 : i32, i32
  }
  func.func @transform_2(%arg0: i32) -> (i32, i32) {
    %c0_i32 = arith.constant 0 : i32
    %c0_i32_0 = arith.constant 0 : i32
    %c0_i32_1 = arith.constant 0 : i32
    return %c0_i32, %c0_i32_0 : i32, i32
  }
  func.func @transform_3(%arg0: i32) -> (i32, i32) {
    %c0_i32 = arith.constant 0 : i32
    %c0_i32_0 = arith.constant 0 : i32
    %c0_i32_1 = arith.constant 0 : i32
    return %c0_i32, %c0_i32_0 : i32, i32
  }
  func.func @transform_4(%arg0: i32) -> (i32, i32) {
    %c0_i32 = arith.constant 0 : i32
    %c0_i32_0 = arith.constant 0 : i32
    %c0_i32_1 = arith.constant 0 : i32
    return %c0_i32, %c0_i32_0 : i32, i32
  }
  func.func @transform_5(%arg0: i32) -> (i32, i32, i32) {
    %c0_i32 = arith.constant 0 : i32
    %c0_i32_0 = arith.constant 0 : i32
    %c0_i32_1 = arith.constant 0 : i32
    %c0_i32_2 = arith.constant 0 : i32
    return %c0_i32, %c0_i32_0, %c0_i32_1 : i32, i32, i32
  }
  func.func @transform_6(%arg0: i32) -> (i32, i32, i32) {
    %c0_i32 = arith.constant 0 : i32
    %c0_i32_0 = arith.constant 0 : i32
    %c0_i32_1 = arith.constant 0 : i32
    %c0_i32_2 = arith.constant 0 : i32
    return %c0_i32, %c0_i32_0, %c0_i32_1 : i32, i32, i32
  }
  func.func @transform_7(%arg0: i32) -> (i32, i32, i32) {
    %c0_i32 = arith.constant 0 : i32
    %c0_i32_0 = arith.constant 0 : i32
    %c0_i32_1 = arith.constant 0 : i32
    %c0_i32_2 = arith.constant 0 : i32
    return %c0_i32, %c0_i32_0, %c0_i32_1 : i32, i32, i32
  }
  func.func @transform_8(%arg0: i32) -> (i32, i32, i32) {
    %c0_i32 = arith.constant 0 : i32
    %c0_i32_0 = arith.constant 0 : i32
    %c0_i32_1 = arith.constant 0 : i32
    %c0_i32_2 = arith.constant 0 : i32
    return %c0_i32, %c0_i32_0, %c0_i32_1 : i32, i32, i32
  }
  func.func @transform_9(%arg0: i32) -> (i32, i32, i32, i32) {
    %c0_i32 = arith.constant 0 : i32
    %c0_i32_0 = arith.constant 0 : i32
    %c0_i32_1 = arith.constant 0 : i32
    %c0_i32_2 = arith.constant 0 : i32
    %c0_i32_3 = arith.constant 0 : i32
    return %c0_i32, %c0_i32_0, %c0_i32_1, %c0_i32_2 : i32, i32, i32, i32
  }
  func.func @transform_10(%arg0: i32) -> (i32, i32, i32) {
    %c0_i32 = arith.constant 0 : i32
    %c0_i32_0 = arith.constant 0 : i32
    %c0_i32_1 = arith.constant 0 : i32
    %c0_i32_2 = arith.constant 0 : i32
    return %c0_i32, %c0_i32_0, %c0_i32_1 : i32, i32, i32
  }
  func.func @transform_11(%arg0: i32) -> (i32, i32, i32) {
    %c0_i32 = arith.constant 0 : i32
    %c0_i32_0 = arith.constant 0 : i32
    %c0_i32_1 = arith.constant 0 : i32
    %c0_i32_2 = arith.constant 0 : i32
    return %c0_i32, %c0_i32_0, %c0_i32_1 : i32, i32, i32
  }
  func.func @transform_12(%arg0: i32) -> (i32, i32, i32) {
    %c0_i32 = arith.constant 0 : i32
    %c0_i32_0 = arith.constant 0 : i32
    %c0_i32_1 = arith.constant 0 : i32
    %c0_i32_2 = arith.constant 0 : i32
    return %c0_i32, %c0_i32_0, %c0_i32_1 : i32, i32, i32
  }
  func.func @transform_13(%arg0: i32) -> (i32, i32, i32) {
    %c0_i32 = arith.constant 0 : i32
    %c0_i32_0 = arith.constant 0 : i32
    %c0_i32_1 = arith.constant 0 : i32
    %c0_i32_2 = arith.constant 0 : i32
    return %c0_i32, %c0_i32_0, %c0_i32_1 : i32, i32, i32
  }
  func.func @transform_14(%arg0: i32) -> (i32, i32, i32) {
    %c0_i32 = arith.constant 0 : i32
    %c0_i32_0 = arith.constant 0 : i32
    %c0_i32_1 = arith.constant 0 : i32
    %c0_i32_2 = arith.constant 0 : i32
    return %c0_i32, %c0_i32_0, %c0_i32_1 : i32, i32, i32
  }
  func.func @transform_15(%arg0: i32) -> (i32, i32, i32) {
    %c0_i32 = arith.constant 0 : i32
    %c0_i32_0 = arith.constant 0 : i32
    %c0_i32_1 = arith.constant 0 : i32
    %c0_i32_2 = arith.constant 0 : i32
    return %c0_i32, %c0_i32_0, %c0_i32_1 : i32, i32, i32
  }
  func.func @transform_16(%arg0: i32) -> (i32, i32, i32) {
    %c0_i32 = arith.constant 0 : i32
    %c0_i32_0 = arith.constant 0 : i32
    %c0_i32_1 = arith.constant 0 : i32
    %c0_i32_2 = arith.constant 0 : i32
    return %c0_i32, %c0_i32_0, %c0_i32_1 : i32, i32, i32
  }
  func.func @transform_17(%arg0: i32) -> (i32, i32) {
    %c0_i32 = arith.constant 0 : i32
    %c0_i32_0 = arith.constant 0 : i32
    %c0_i32_1 = arith.constant 0 : i32
    return %c0_i32, %c0_i32_0 : i32, i32
  }
  func.func @transform_18(%arg0: i32) -> (i32, i32) {
    %c0_i32 = arith.constant 0 : i32
    %c0_i32_0 = arith.constant 0 : i32
    %c0_i32_1 = arith.constant 0 : i32
    return %c0_i32, %c0_i32_0 : i32, i32
  }
  func.func @transform_19(%arg0: i32) -> (i32, i32, i32) {
    %c0_i32 = arith.constant 0 : i32
    %c0_i32_0 = arith.constant 0 : i32
    %c0_i32_1 = arith.constant 0 : i32
    return %arg0, %c0_i32, %c0_i32_0 : i32, i32, i32
  }
}

</mosaic_0001>

<bundles_post_ra>
// kernel: tpu_custom_call.1
= control target key start
LH: loop header
LB: loop body
LE: loop exit
PB: predicated region body
PF: predicated region fallthrough
CT: control target
= control target key end

     0   :  { %s5660_s0 = inlined_call_operand.vmem [shape: f32[2,16,64], index: 0, kind: input, shape index: {}]   ;;  %s5661_s1 = inlined_call_operand.vmem [shape: bf16[64,32], index: 1, kind: input, shape index: {}]   ;;  %s5662_s2 = inlined_call_operand.hbm [shape: f32[1,32], index: 2, kind: input, shape index: {}]   ;;  %s5663_s3 = inlined_call_operand.hbm [shape: f32[1,32], index: 3, kind: input, shape index: {}]   ;;  %s5664_s4 = inlined_call_operand.hbm [shape: f32[16,32], index: 4, kind: input, shape index: {}]   ;;  %s5665_s5 = inlined_call_operand.hbm [shape: f32[2,1,32], index: 5, kind: input, shape index: {}]   ;;  %s5666_s6 = inlined_call_operand.hbm [shape: f32[2,1,32], index: 6, kind: input, shape index: {}]   ;;  %s5667_s7 = inlined_call_operand.vmem [shape: bf16[2,32,96], index: 7, kind: input, shape index: {}]   ;;  %s5668_s8 = inlined_call_operand.hbm [shape: f32[2,1,96], index: 8, kind: input, shape index: {}]   ;;  %s5669_s9 = inlined_call_operand.vmem [shape: bf16[2,4,8,32], index: 9, kind: input, shape index: {}]   ;;  %s5670_s10 = inlined_call_operand.vmem [shape: f32[2,1,32], index: 10, kind: input, shape index: {}]   ;;  %s5671_s11 = inlined_call_operand.vmem [shape: f32[2,1,32], index: 11, kind: input, shape index: {}]   ;;  %s5672_s12 = inlined_call_operand.hbm [shape: f32[2,1,32], index: 12, kind: input, shape index: {}]   ;;  %s5673_s13 = inlined_call_operand.vmem [shape: bf16[2,32,64], index: 13, kind: input, shape index: {}]   ;;  %s5674_s14 = inlined_call_operand.vmem [shape: f32[2,1,64], index: 14, kind: input, shape index: {}]   ;;  %s5675_s15 = inlined_call_operand.vmem [shape: bf16[2,64,32], index: 15, kind: input, shape index: {}]   ;;  %s5676_s16 = inlined_call_operand.vmem [shape: f32[2,1,32], index: 16, kind: input, shape index: {}]   ;;  %s5677_s17 = inlined_call_operand.vmem [shape: f32[1,32], index: 17, kind: input, shape index: {}]   ;;  %s5678_s18 = inlined_call_operand.vmem [shape: f32[1,32], index: 18, kind: input, shape index: {}]   ;;  %s5679_s19 = inlined_call_operand.vmem [shape: f32[2,17,32], index: 19, kind: output, shape index: {}]  }
   0x1   :  { %5685 = sst [smem:[#allocation18_spill]] %s5660_s0 }
   0x2   :  { %5686 = sst [smem:[#allocation19_spill]] %s5661_s1 }
   0x3   :  { %5687 = sst [smem:[#allocation20_spill]] %s5662_s2 }
   0x4   :  { %5688 = sst [smem:[#allocation21_spill]] %s5663_s3 }
   0x5   :  { %5689 = sst [smem:[#allocation22_spill]] %s5665_s5 }
   0x6   :  { %24 = vsyncpa [#allocation4], 0 }
   0x7   :  { %25 = vsyncpa [#allocation6], 0 }
   0x8   :  { %26 = vsyncpa [#allocation9], 0 }
   0x9   :  { %27 = vsyncpa [#allocation12], 0  ;;  %s4815_s0 = smov 0  }
   0xa LB: > { %s4696_s30 = smov [#allocation5]   ;;  %s4821_s21 = sadd.s32 4294967295, %s4694_s0   ;;  %s4694_s0 = sphi %s4815_s0, %s33_s0  }
   0xb   : > { %s495_s20 = sshll.u32 %s4696_s30, 4  ;;  %p3704_p0 = scmp.ge.s32.totalorder %s4694_s0, 1  ;;  %s496_s20 = int_to_ptr.vmem [resolvable:$true] %s495_s20 }
   0xc   : > { %p468_p1 = scmp.lt.s32.totalorder %s4694_s0, 3  ;;  %p4291_p2 = scmp.eq.s32.totalorder %s4821_s21, 0 }
   0xd   : > { %s4697_s22 = smov [#allocation8]   ;;  %s4698_s24 = smov [#allocation11]  }
   0xe   : > { %p4826_p3 = pnand %p3704_p0, %p468_p1  ;;  %s518_s2 = sshll.u32 %s4697_s22, 4  ;;  %s4832_s2 = int_to_ptr.vmem [resolvable:$true] %s518_s2 }
   0xf   : > { %s547_s25 = sshll.u32 %s4698_s24, 4  ;;  %s4699_s3 = smov [#allocation3]   ;;  %s4840_s25 = int_to_ptr.vmem [resolvable:$true] %s547_s25 }
  0x10   : > { %p4269_p4 = pneg %p4826_p3  ;;  %s4842_s26 = sshll.u32 %s4699_s3, 4  ;;  %s485_s26 = int_to_ptr.vmem [resolvable:$true] %s4842_s26 }
  0x11   : > { %s4501_s28 = scalar_lea.vmem %s496_s20, 16  ;;  %s4508_s29 = scalar_lea.vmem %s496_s20, 32 }
  0x12   : > { %p4836_p5 = pnand %p4291_p2, %p4269_p4  ;;  %p4502_p7 = scmp.ne.s32.totalorder %s496_s20, %s4501_s28 }
  0x13   : > { %p4509_p10 = scmp.lt.s32.totalorder %s496_s20, %s496_s20  ;;  %p4510_p11 = scmp.lt.s32.totalorder %s4508_s29, %s4501_s28 }
  0x14   : > { %p4846_p6 = pneg %p4836_p5 }
  0x15   : > { %p4511_p12 = por %p4510_p11, %p4509_p10 }
  0x16   : > { %p4504_p8 = pnand %p4502_p7, %p4846_p6 }
  0x18   : > { %p4505_p9 = pneg %p4504_p8 }
  0x1a   : > { %p4512_p13 = pnand %p4511_p12, %p4505_p9 }
  0x1c   : > { %4515 = shalt.err (!%p4512_p13)
}
  0x1d   : > { %s5693_s24 = sld [smem:[#allocation21_spill]]  ;;  %s4527_s3 = scalar_lea.vmem %s4832_s2, 32 }
  0x1e   : > { %p4528_p0 = scmp.ne.s32.totalorder %s4832_s2, %s4527_s3  ;;  %p4535_p7 = scmp.lt.s32.totalorder %s4832_s2, %s4832_s2 }
  0x1f   : > { %p4536_p8 = scmp.lt.s32.totalorder %s4527_s3, %s4527_s3 }
  0x20   : > { %p4530_p1 = pnand %p4528_p0, %p4846_p6 }
  0x21   : > { %p4537_p9 = por %p4536_p8, %p4535_p7 }
  0x22   : > { %p4531_p4 = pneg %p4530_p1 }
  0x23   : > { %4275 = dma.hbm_to_vmem [thread:$0]  (!%p4836_p5), %s5693_s24, 16, %s496_s20, [#allocation6]  }
  0x24   : > { %p4538_p10 = pnand %p4537_p9, %p4531_p4 }
  0x26   : > { %4541 = shalt.err (!%p4538_p10)
}
  0x27   : > { %s5681_s28 = smov 16   ;;  %s5683_s29 = smov 1  }
  0x28   : > { %s5694_s5 = sld [smem:[#allocation22_spill]]  ;;  %s4553_s22 = scalar_lea.vmem %s4840_s25, 32 }
  0x29   : > { %p4554_p11 = scmp.ne.s32.totalorder %s4840_s25, %s4553_s22  ;;  %p4561_p0 = scmp.lt.s32.totalorder %s4840_s25, %s4840_s25 }
  0x2a   : > { %p4562_p1 = scmp.lt.s32.totalorder %s4553_s22, %s4553_s22 }
  0x2b   : > { %p4556_p12 = pnand %p4554_p11, %p4846_p6 }
  0x2c   : > { %p4563_p4 = por %p4562_p1, %p4561_p0 }
  0x2d   : > { %p4557_p13 = pneg %p4556_p12 }
  0x2e   : > { %4281 = dma.hbm_to_vmem [thread:$0]  (!%p4836_p5), %s5694_s5, 32, %s4832_s2, [#allocation9], %s5681_s28, %s5681_s28, %s5683_s29  }
  0x2f   : > { %p4564_p7 = pnand %p4563_p4, %p4557_p13 }
  0x31   : > { %4567 = shalt.err (!%p4564_p7)
}
  0x32   : > { %4287 = dma.hbm_to_vmem [thread:$0]  (!%p4836_p5), %s5668_s8, 32, %s4840_s25, [#allocation12], %s5681_s28, %s5681_s28, %s5683_s29  }
  0x33   : > { %s4579_s2 = scalar_lea.vmem %s485_s26, 16  ;;  %s4586_s20 = scalar_lea.vmem %s485_s26, 32 }
  0x34   : > { %p4580_p8 = scmp.ne.s32.totalorder %s485_s26, %s4579_s2  ;;  %p4587_p11 = scmp.lt.s32.totalorder %s485_s26, %s485_s26 }
  0x35   : > { %p4588_p12 = scmp.lt.s32.totalorder %s4586_s20, %s4579_s2 }
  0x36   : > { %p4582_p9 = pnand %p4580_p8, %p4846_p6 }
  0x37   : > { %p4589_p13 = por %p4588_p12, %p4587_p11 }
  0x38   : > { %p4583_p10 = pneg %p4582_p9 }
  0x3a   : > { %p4590_p0 = pnand %p4589_p13, %p4583_p10 }
  0x3c   : > { %4593 = shalt.err (!%p4590_p0)
}
  0x3d   : > { %s5695_s24 = sld [smem:[#allocation20_spill]]  ;;  %s4702_s25 = smov [#allocation7]  }
  0x3e   : > { %s505_s3 = sshll.u32 %s4702_s25, 4  ;;  %s506_s3 = int_to_ptr.vmem [resolvable:$true] %s505_s3 }
  0x3f   : > { %s4605_s28 = scalar_lea.vmem %s506_s3, 256  ;;  %p4613_p8 = scmp.lt.s32.totalorder %s506_s3, %s506_s3 }
  0x40   : > { %p4606_p1 = scmp.ne.s32.totalorder %s506_s3, %s4605_s28  ;;  %p4614_p9 = scmp.lt.s32.totalorder %s4605_s28, %s4605_s28 }
  0x42   : > { %p4608_p4 = pnand %p4606_p1, %p4846_p6  ;;  %p4615_p11 = por %p4614_p9, %p4613_p8 }
  0x43   : > { %4272 = dma.hbm_to_vmem [thread:$0]  (!%p4836_p5), %s5695_s24, 16, %s485_s26, [#allocation4]  }
  0x44   : > { %p4609_p7 = pneg %p4608_p4 }
  0x46   : > { %p4616_p10 = pnand %p4615_p11, %p4609_p7 }
  0x48   : > { %4619 = shalt.err (!%p4616_p10)
}
  0x49   : > { %s4703_s2 = smov 128   ;;  %s4704_s20 = smov 8  }
  0x4a   : > { %4278 = dma.hbm_to_vmem [thread:$0]  (!%p4836_p5), %s5664_s4, 256, %s506_s3, [#allocation6], %s4703_s2, %s4703_s2, %s4704_s20  }
  0x4b   : > { %s4705_s22 = smov [#allocation10]   ;;  %s4706_s25 = smov [#allocation13]  }
  0x4c   : > { %s531_s24 = sshll.u32 %s4705_s22, 4  ;;  %s569_s29 = sshll.u32 %s4706_s25, 4  ;;  %s532_s24 = int_to_ptr.vmem [resolvable:$true] %s531_s24  ;;  %s570_s29 = int_to_ptr.vmem [resolvable:$true] %s569_s29 }
  0x4d   : > { %s4631_s5 = scalar_lea.vmem %s532_s24, 32  ;;  %p4639_p1 = scmp.lt.s32.totalorder %s532_s24, %s532_s24 }
  0x4e   : > { %p4632_p12 = scmp.ne.s32.totalorder %s532_s24, %s4631_s5  ;;  %p4640_p4 = scmp.lt.s32.totalorder %s4631_s5, %s4631_s5 }
  0x50   : > { %p4634_p13 = pnand %p4632_p12, %p4846_p6  ;;  %p4641_p7 = por %p4640_p4, %p4639_p1 }
  0x52   : > { %p4635_p0 = pneg %p4634_p13 }
  0x54   : > { %p4642_p8 = pnand %p4641_p7, %p4635_p0 }
  0x56   : > { %4645 = shalt.err (!%p4642_p8)
}
  0x57   : > { %s5696_s28 = smov 1   ;;  %s5697_s3 = smov 16  }
  0x58   : > { %4284 = dma.hbm_to_vmem [thread:$0]  (!%p4836_p5), %s5666_s6, 32, %s532_s24, [#allocation9], %s5697_s3, %s5697_s3, %s5696_s28  }
  0x59   : > { %s4657_s30 = scalar_lea.vmem %s570_s29, 32  ;;  %p4665_p12 = scmp.lt.s32.totalorder %s570_s29, %s570_s29 }
  0x5a   : > { %p4658_p9 = scmp.ne.s32.totalorder %s570_s29, %s4657_s30  ;;  %p4666_p13 = scmp.lt.s32.totalorder %s4657_s30, %s4657_s30 }
  0x5c   : > { %p4660_p11 = pnand %p4658_p9, %p4846_p6  ;;  %p4667_p1 = por %p4666_p13, %p4665_p12 }
  0x5e   : > { %p4661_p10 = pneg %p4660_p11 }
  0x60   : > { %p4668_p0 = pnand %p4667_p1, %p4661_p10 }
  0x62   : > { %4671 = shalt.err (!%p4668_p0)
}
  0x63   : > { %4290 = dma.hbm_to_vmem [thread:$0]  (!%p4836_p5), %s5672_s12, 32, %s570_s29, [#allocation12], %s5697_s3, %s5697_s3, %s5696_s28  }
  0x64   : > { %611 = sbr.rel (%p4826_p3) target bundleno = 5566 (0x15be), region = 96 }
  0x69   : > { %4677 = dma.done.wait (%p4291_p2), [#allocation4], 16  }
  0x6a   : > { %4679 = vsyncadd (%p4291_p2), [#allocation4], 4294967280 }
  0x6b   : > { %4681 = dma.done.wait (%p4291_p2), [#allocation6], 272  }
  0x6c   : > { %4683 = vsyncadd (%p4291_p2), [#allocation6], 4294967024 }
  0x6d   : > { %4685 = dma.done.wait (%p4291_p2), [#allocation9], 64  }
  0x6e   : > { %4687 = vsyncadd (%p4291_p2), [#allocation9], 4294967232 }
  0x6f   : > { %4689 = dma.done.wait (%p4291_p2), [#allocation12], 64  }
  0x70   : > { %4691 = vsyncadd (%p4291_p2), [#allocation12], 4294967232  ;;  %v4707_v0 = vmov 0.0   ;;  %vm4708_vm0 = vmmov 0   ;;  %p691_p3 = scmp.lt.s32.totalorder %s4821_s21, 1  ;;  %s5698_s27 = sld [smem:[#allocation19_spill]] }
  0x71   : > { %3972 = vmatprep.subr.bf16.mxu0 %v4707_v0  ;;  %3980 = vmatprep.mubr.msk.bf16.mxu0 %vm4708_vm0, %v4707_v0  ;;  %s5699_s20 = sld [smem:[#allocation18_spill]]  ;;  %vm744_vm1 = vcmask 523264   ;;  %v789_v8 = vld [vmem:[#allocation5] sm:$0x1]  ;;  %vm790_vm2 = vcmask 253952   ;;  %v792_v11 = vld [vmem:[#allocation7] sm:$0xff] }
  0x72   : > { %s5701_s21 = smov (!%p691_p3, %s4821_s21), 1  ;;  %791 = vst.msk [vmem:[#allocation2] sm:$0x1] %vm790_vm2, %v789_v8  ;;  %v3724_v9 = vld [vmem:[#allocation3] ss:$0 sm:$0xff]  ;;  %vm796_vm3 = vcmask 261120  }
  0x73   : > { %s3850_s24 = sshll.u32 %s5701_s21, 4  ;;  %v793_v16 = vld [vmem:[#allocation7 + $0x8] sm:$0xff]  ;;  %v3730_v54 = vld [vmem:[#allocation8] ss:$0 sm:$0xff]  ;;  %v3731_v60 = vld [vmem:[#allocation10] ss:$0 sm:$0xff] }
  0x74   : > { %v4336_v41 = vld [vmem:[%s5667_s7 + $0x8] sm:$0xff]   ;;  %v4337_v42 = vld [vmem:[%s5667_s7] sm:$0xff]   ;;  %vm961_vm4 = vcmask 64512   ;;  %s4710_s25 = smov 112   ;;  %s4711_s28 = smov 96   ;;  %vm1233_vm5 = vcmask 131072  }
  0x75   : > { %3984 = vmatprep.subr.bf16.mxu1 %v4336_v41  ;;  %s4712_s3 = smov 104   ;;  %vm1226_vm6 = vcmask 138240   ;;  %s4713_s2 = smov 64   ;;  %vm1379_vm7 = vcmask 1040384   ;;  %vm1637_vm8 = vcmask 1043456  }
  0x76   : > { %v4332_v1 = vld [vmem:[%s5698_s27 + $0x18] sm:$0xff]   ;;  %v4333_v2 = vld [vmem:[%s5698_s27 + $0x10] sm:$0xff]   ;;  %v4334_v3 = vld [vmem:[%s5698_s27 + $0x8] sm:$0xff]   ;;  %3985 = vmatpush3.bf16.msra.mxu1 %v4336_v41 }
  0x77   : > { %3973 = vmatpush3.bf16.msra.mxu0 %v4332_v1  ;;  %s695_s30 = scalar_lea.vmem %s5699_s20, %s3850_s24  ;;  %v4335_v4 = vld [vmem:[%s5698_s27] sm:$0xff]   ;;  %3986 = vmatprep.subr.bf16.mxu1 %v4337_v42  ;;  %s4709_s24 = smov 120  }
  0x78   : > { %3974 = vmatprep.subr.bf16.mxu0 %v4707_v0  ;;  %v702_v5 = vld [vmem:[%s695_s30] sm:$0xff]  ;;  %v703_v6 = vld [vmem:[%s695_s30 + $0x8] sm:$0xff] }
  0x79   : > { %v704_v7 = vpack.c.bf16 %v703_v6, %v702_v5 }
  0x7a   : > { %3987 = vmatpush3.bf16.msra.mxu1 %v4337_v42 }
  0x7b   : > { %3975 = vmatpush3.bf16.msra.mxu0 %v4333_v2 }
  0x7c   : > { %3976 = vmatprep.subr.bf16.mxu0 %v4707_v0 }
  0x7f   : > { %3977 = vmatpush3.bf16.msra.mxu0 %v4334_v3 }
  0x80   : > { %3978 = vmatprep.subr.bf16.mxu0 %v4707_v0 }
  0x83   : > { %3979 = vmatpush3.bf16.msra.mxu0 %v4335_v4  ;;  %v3732_v4 = vld [vmem:[#allocation11] ss:$0 sm:$0xff] }
  0x86   : > { %3981 = vmatmul.mubr.msk.bf16.vlgmr.msra.gmra.mxu0 %vm744_vm1, %v704_v7 }
 0x146   : > { %v782_v10 = vpop.f32.mrf.mxu0 }
 0x147   : > { %v783_v12 = vadd.f32 %v3724_v9, %v782_v10 }
 0x148   : > { %v3982_v13 = vpop.f32.mrf.mxu0 }
 0x149   : > { %v794_v14 = vadd.f32 %v792_v11, %v783_v12 }
 0x14a   : > { %v785_v15 = vpop.f32.mrf.mxu0 }
 0x14b   : > { %797 = vst.msk [vmem:[#allocation2 + $0x1] sm:$0xff] %vm796_vm3, %v794_v14  ;;  %v786_v17 = vadd.f32 %v3724_v9, %v785_v15 }
 0x14c   : > { %v3983_v18 = vpop.f32.mrf.mxu0 }
 0x14d   : > { %v795_v19 = vadd.f32 %v793_v16, %v786_v17 }
 0x14f   : > { %798 = vst.msk [vmem:[#allocation2 + $0x9] sm:$0xff] %vm796_vm3, %v795_v19 }
 0x152   : > { %v4964_v20 = vld [vmem:[#allocation2] sm:$0xff] }
 0x153   : > { %v804_v21 = vsel %vm796_vm3, %v4964_v20, 0.0 }
 0x154   : > { %805 = vadd.xlane.f32.xlu0 %v804_v21 }
 0x156   : > { %v4968_v22 = vld [vmem:[#allocation2 + $0x10] sm:$0x1]  ;;  %v4970_v23 = vld [vmem:[#allocation2 + $0x8] sm:$0xff] }
 0x157   : > { %v810_v24 = vsel %vm790_vm2, %v4968_v22, 0.0  ;;  %v807_v25 = vsel %vm796_vm3, %v4970_v23, 0.0 }
 0x158   : > { %811 = vadd.xlane.f32.xlu1 %v810_v24  ;;  %808 = vadd.xlane.f32.xlu0 %v807_v25 }
 0x1dd   : > { %v806_v26 = vpop.xlane.xlu0 %805 }
 0x1de   : > { %v814_v27 = vmul.f32 0.03125, %v806_v26 }
 0x1e0   : > { %v817_v28 = vsub.f32 %v4964_v20, %v814_v27 }
 0x1e1   : > { %v812_v29 = vpop.xlane.xlu1 %811  ;;  %v809_v30 = vpop.xlane.xlu0 %808 }
 0x1e2   : > { %v816_v31 = vmul.f32 0.03125, %v812_v29  ;;  %v815_v32 = vmul.f32 0.03125, %v809_v30  ;;  %v820_v33 = vmul.f32 %v817_v28, %v817_v28 }
 0x1e4   : > { %v819_v34 = vsub.f32 %v4968_v22, %v816_v31  ;;  %v818_v35 = vsub.f32 %v4970_v23, %v815_v32  ;;  %v823_v36 = vsel %vm796_vm3, %v820_v33, 0.0 }
 0x1e5   : > { %824 = vadd.xlane.f32.xlu1 %v823_v36 }
 0x1e6   : > { %v822_v37 = vmul.f32 %v819_v34, %v819_v34  ;;  %v821_v38 = vmul.f32 %v818_v35, %v818_v35 }
 0x1e8   : > { %v829_v39 = vsel %vm790_vm2, %v822_v37, 0.0  ;;  %v826_v40 = vsel %vm796_vm3, %v821_v38, 0.0 }
 0x1e9   : > { %830 = vadd.xlane.f32.xlu1 %v829_v39  ;;  %827 = vadd.xlane.f32.xlu0 %v826_v40 }
 0x26e   : > { %v825_v43 = vpop.xlane.xlu1 %824 }
 0x26f   : > { %v832_v44 = vmul.f32 0.03125, %v825_v43 }
 0x271   : > { %v835_v45 = vadd.f32 1e-06, %v832_v44 }
 0x272   : > { %v831_v46 = vpop.xlane.xlu1 %830  ;;  %v828_v47 = vpop.xlane.xlu0 %827 }
 0x273   : > { %4352 = vrsqrt.f32 %v835_v45  ;;  %v834_v48 = vmul.f32 0.03125, %v831_v46  ;;  %v833_v49 = vmul.f32 0.03125, %v828_v47 }
 0x275   : > { %v837_v50 = vadd.f32 1e-06, %v834_v48  ;;  %v836_v51 = vadd.f32 1e-06, %v833_v49 }
 0x277   : > { %4354 = vrsqrt.f32 %v837_v50 }
 0x278   : > { %4356 = vrsqrt.f32 %v836_v51 }
 0x280   : > { %v4353_v52 = vpop.eup %4352 }
 0x281   : > { %v841_v53 = vmul.f32 %v4353_v52, %v817_v28 }
 0x283   : > { %v850_v59 = vmul.f32 %v3730_v54, %v841_v53 }
 0x284   : > { %v4355_v55 = vpop.eup %4354 }
 0x285   : > { %v4357_v56 = vpop.eup %4356  ;;  %v843_v57 = vmul.f32 %v4355_v55, %v819_v34  ;;  %v859_v0 = vadd.f32 %v3731_v60, %v850_v59 }
 0x286   : > { %v842_v58 = vmul.f32 %v4357_v56, %v818_v35 }
 0x287   : > { %v852_v61 = vmul.f32 %v3730_v54, %v843_v57 }
 0x288   : > { %v851_v62 = vmul.f32 %v3730_v54, %v842_v58 }
 0x289   : > { %v861_v63 = vadd.f32 %v3731_v60, %v852_v61 }
 0x28a   : > { %v860_v1 = vadd.f32 %v3731_v60, %v851_v62 }
 0x28b   : > { %v863_v2 = vpack.c.bf16 %v861_v63, %v861_v63 }
 0x28c   : > { %v862_v3 = vpack.c.bf16 %v860_v1, %v859_v0 }
 0x28e   : > { %3988 = vmatprep.mubr.msk.bf16.mxu1 %vm796_vm3, %v862_v3 }
 0x28f   : > { %3989 = vmatmul.mubr.msk.bf16.vlgmr.msra.gmra.mxu1 %vm796_vm3, %v863_v2 }
 0x34f   : > { %v3990_v5 = vpop.f32.mrf.mxu1 }
 0x350   : > { %v936_v6 = vadd.f32 %v3990_v5, %v3732_v4 }
 0x351   : > { %v927_v7 = vpop.f32.mrf.mxu1 }
 0x352   : > { %v4990_v8 = vpack.c.bf16 %v936_v6, %v936_v6  ;;  %v928_v11 = vadd.f32 %v3732_v4, %v927_v7 }
 0x353   : > { %v3991_v9 = vpop.f32.mrf.mxu1 }
 0x354   : > { %947 = vrot.lane.b32.xlu0 %v4990_v8, %s4709_s24 }
 0x355   : > { %v930_v10 = vpop.f32.mrf.mxu1 }
 0x356   : > { %v931_v12 = vadd.f32 %v3732_v4, %v930_v10 }
 0x358   : > { %v4994_v13 = vpack.c.bf16 %v931_v12, %v928_v11 }
 0x35a   : > { %949 = vrot.lane.b32.xlu0 %v4994_v13, %s4710_s25  ;;  %945 = vrot.lane.b32.xlu1 %v4994_v13, %s4709_s24 }
 0x35b   : > { %3996 = vmatprep.mubr.msk.bf16.mxu1 %vm961_vm4, %v4994_v13 }
 0x35e   : > { %959 = vrot.lane.b32.xlu0 %v4990_v8, %s4711_s28  ;;  %951 = vrot.lane.b32.xlu1 %v4990_v8, %s4710_s25 }
 0x362   : > { %957 = vrot.lane.b32.xlu0 %v4994_v13, %s4711_s28  ;;  %955 = vrot.lane.b32.xlu1 %v4990_v8, %s4712_s3 }
 0x366   : > { %953 = vrot.lane.b32.xlu1 %v4994_v13, %s4712_s3 }
 0x3c6   : > { %v5012_v14 = vpop.permute.xlu0 %947 }
 0x3c7   : > { %1024 = vrot.lane.b32.xlu1 %v5012_v14, %s4711_s28 }
 0x3cc   : > { %v5016_v15 = vpop.permute.xlu0 %949  ;;  %v5018_v16 = vpop.permute.xlu1 %945 }
 0x3cd   : > { %4004 = vmatprep.mubr.msk.bf16.mxu0 %vm961_vm4, %v5018_v16  ;;  %1022 = vrot.lane.b32.xlu1 %v5018_v16, %s4711_s28 }
 0x3d0   : > { %v960_v17 = vpop.permute.xlu0 %959  ;;  %v5024_v18 = vpop.permute.xlu1 %951 }
 0x3d1   : > { %4216 = vmatprep.subr.msk.bf16.mxu1 %vm961_vm4, %v960_v17  ;;  %1088 = vrot.lane.b32.xlu0 %v5024_v18, %s4711_s28  ;;  %v972_v19 = vsel %vm961_vm4, %v960_v17, 0 }
 0x3d2   : > { %3993 = vmatpush3.bf16.xpose.msra.mxu1 %v972_v19 }
 0x3d4   : > { %v958_v21 = vpop.permute.xlu0 %957  ;;  %v5030_v24 = vpop.permute.xlu1 %955 }
 0x3d5   : > { %4217 = vmatprep.subr.msk.bf16.mxu1 %vm961_vm4, %v958_v21  ;;  %1086 = vrot.lane.b32.xlu0 %v5016_v15, %s4711_s28  ;;  %v969_v26 = vsel %vm961_vm4, %v958_v21, 0 }
 0x3d6   : > { %1152 = vrot.lane.b32.xlu1 %v5030_v24, %s4711_s28 }
 0x3d8   : > { %v5037_v25 = vpop.permute.xlu1 %953 }
 0x3da   : > { %1150 = vrot.lane.b32.xlu1 %v5037_v25, %s4711_s28  ;;  %3995 = vmatpush3.bf16.xpose.msra.mxu1 %v969_v26 }
 0x3e1   : > { %3997 = vmatmul.mubr.msk.bf16.vlgmr.msra.gmra.mxu1 %vm961_vm4, %v4990_v8 }
 0x3e2   : > { %4012 = vmatprep.mubr.msk.bf16.mxu1 %vm961_vm4, %v5016_v15 }
 0x439   : > { %v1025_v27 = vpop.permute.xlu1 %1024 }
 0x43a   : > { %4218 = vmatprep.subr.msk.bf16.mxu0 %vm961_vm4, %v1025_v27  ;;  %v1036_v28 = vsel %vm961_vm4, %v1025_v27, 0 }
 0x43b   : > { %4001 = vmatpush3.bf16.xpose.msra.mxu0 %v1036_v28 }
 0x43f   : > { %v1023_v29 = vpop.permute.xlu1 %1022 }
 0x440   : > { %4219 = vmatprep.subr.msk.bf16.mxu0 %vm961_vm4, %v1023_v29  ;;  %v1033_v30 = vsel %vm961_vm4, %v1023_v29, 0 }
 0x443   : > { %v1089_v31 = vpop.permute.xlu0 %1088  ;;  %4003 = vmatpush3.bf16.xpose.msra.mxu0 %v1033_v30 }
 0x444   : > { %4220 = vmatprep.subr.msk.bf16.mxu1 %vm961_vm4, %v1089_v31  ;;  %v1100_v32 = vsel %vm961_vm4, %v1089_v31, 0 }
 0x445   : > { %4009 = vmatpush3.bf16.xpose.msra.mxu1 %v1100_v32 }
 0x447   : > { %v1087_v33 = vpop.permute.xlu0 %1086 }
 0x448   : > { %v1153_v34 = vpop.permute.xlu1 %1152  ;;  %4221 = vmatprep.subr.msk.bf16.mxu1 %vm961_vm4, %v1087_v33  ;;  %v1097_v37 = vsel %vm961_vm4, %v1087_v33, 0 }
 0x449   : > { %4222 = vmatprep.subr.msk.bf16.mxu0 %vm961_vm4, %v1153_v34  ;;  %v1164_v35 = vsel %vm961_vm4, %v1153_v34, 0 }
 0x44a   : > { %4005 = vmatmul.mubr.msk.bf16.vlgmr.msra.gmra.mxu0 %vm961_vm4, %v5012_v14 }
 0x44b   : > { %4017 = vmatpush3.bf16.xpose.msra.mxu0 %v1164_v35  ;;  %4020 = vmatprep.mubr.msk.bf16.mxu0 %vm961_vm4, %v5037_v25 }
 0x44c   : > { %v1151_v36 = vpop.permute.xlu1 %1150 }
 0x44d   : > { %4223 = vmatprep.subr.msk.bf16.mxu0 %vm961_vm4, %v1151_v36  ;;  %4011 = vmatpush3.bf16.xpose.msra.mxu1 %v1097_v37  ;;  %v1161_v38 = vsel %vm961_vm4, %v1151_v36, 0 }
 0x453   : > { %4019 = vmatpush3.bf16.xpose.msra.mxu0 %v1161_v38 }
 0x454   : > { %4013 = vmatmul.mubr.msk.bf16.vlgmr.msra.gmra.mxu1 %vm961_vm4, %v5024_v18 }
 0x45a   : > { %4021 = vmatmul.mubr.msk.bf16.vlgmr.msra.gmra.mxu0 %vm961_vm4, %v5030_v24 }
 0x4a1   : > { %v3998_v39 = vpop.f32.mrf.mxu1 }
 0x4a2   : > { %v1216_v40 = vmul.f32 0.35355338, %v3998_v39 }
 0x4a3   : > { %v1008_v41 = vpop.f32.mrf.mxu1 }
 0x4a4   : > { %v5066_v42 = vmul.f32 0.35355338, %v1008_v41  ;;  %v1234_v43 = vsel %vm1233_vm5, %v1216_v40, -inf }
 0x4a5   : > { %1235 = vmax.xlane.f32.xlu0 %v1234_v43  ;;  %v3999_v44 = vpop.f32.mrf.mxu1 }
 0x4a6   : > { %v1227_v47 = vsel %vm1226_vm6, %v5066_v42, -inf }
 0x4a7   : > { %v1011_v45 = vpop.f32.mrf.mxu1 }
 0x4a8   : > { %v1215_v46 = vmul.f32 0.35355338, %v1011_v45 }
 0x4a9   : > { %1228 = vmax.xlane.f32.xlu0 %v1227_v47 }
 0x4aa   : > { %v1230_v48 = vsel %vm1226_vm6, %v1215_v46, -inf }
 0x4ab   : > { %1231 = vmax.xlane.f32.xlu1 %v1230_v48 }
 0x50a   : > { %v4006_v49 = vpop.f32.mrf.mxu0 }
 0x50b   : > { %v5072_v50 = vmul.f32 0.35355338, %v4006_v49 }
 0x50c   : > { %v1072_v51 = vpop.f32.mrf.mxu0 }
 0x50d   : > { %v5074_v52 = vmul.f32 0.35355338, %v1072_v51  ;;  %v1243_v53 = vsel %vm1233_vm5, %v5072_v50, -inf }
 0x50e   : > { %1244 = vmax.xlane.f32.xlu1 %v1243_v53  ;;  %v4007_v54 = vpop.f32.mrf.mxu0 }
 0x50f   : > { %v1237_v55 = vsel %vm1226_vm6, %v5074_v52, -inf }
 0x510   : > { %1238 = vmax.xlane.f32.xlu0 %v1237_v55  ;;  %v1075_v56 = vpop.f32.mrf.mxu0 }
 0x511   : > { %v5080_v57 = vmul.f32 0.35355338, %v1075_v56 }
 0x513   : > { %v1240_v58 = vsel %vm1226_vm6, %v5080_v57, -inf }
 0x514   : > { %v4014_v59 = vpop.f32.mrf.mxu1  ;;  %1241 = vmax.xlane.f32.xlu0 %v1240_v58 }
 0x515   : > { %v5086_v63 = vmul.f32 0.35355338, %v4014_v59 }
 0x516   : > { %v1136_v60 = vpop.f32.mrf.mxu1 }
 0x517   : > { %v5084_v61 = vmul.f32 0.35355338, %v1136_v60  ;;  %v1252_v7 = vsel %vm1233_vm5, %v5086_v63, -inf }
 0x518   : > { %v4015_v62 = vpop.f32.mrf.mxu1 }
 0x519   : > { %v1246_v0 = vsel %vm1226_vm6, %v5084_v61, -inf }
 0x51a   : > { %v1139_v1 = vpop.f32.mrf.mxu1  ;;  %1247 = vmax.xlane.f32.xlu0 %v1246_v0  ;;  %v4022_v2 = vpop.f32.mrf.mxu0 }
 0x51b   : > { %v1221_v3 = vmul.f32 0.35355338, %v1139_v1  ;;  %v5095_v11 = vmul.f32 0.35355338, %v4022_v2 }
 0x51c   : > { %v1200_v4 = vpop.f32.mrf.mxu0 }
 0x51d   : > { %v5090_v5 = vmul.f32 0.35355338, %v1200_v4  ;;  %v1249_v6 = vsel %vm1226_vm6, %v1221_v3, -inf  ;;  %v1261_v21 = vsel %vm1233_vm5, %v5095_v11, -inf }
 0x51e   : > { %1250 = vmax.xlane.f32.xlu1 %v1249_v6  ;;  %1253 = vmax.xlane.f32.xlu0 %v1252_v7  ;;  %v4023_v9 = vpop.f32.mrf.mxu0 }
 0x51f   : > { %v1255_v17 = vsel %vm1226_vm6, %v5090_v5, -inf }
 0x520   : > { %v1203_v10 = vpop.f32.mrf.mxu0 }
 0x521   : > { %v5097_v12 = vmul.f32 0.35355338, %v1203_v10 }
 0x522   : > { %1256 = vmax.xlane.f32.xlu1 %v1255_v17 }
 0x523   : > { %v1258_v19 = vsel %vm1226_vm6, %v5097_v12, -inf }
 0x524   : > { %1259 = vmax.xlane.f32.xlu0 %v1258_v19 }
 0x526   : > { %1262 = vmax.xlane.f32.xlu1 %v1261_v21 }
 0x52e   : > { %v1236_v26 = vpop.xlane.xlu0 %1235 }
 0x52f   : > { %v1266_v27 = vsub.f32 %v1216_v40, %v1236_v26 }
 0x531   : > { %v1280_v29 = vmul.f32 1.442695, %v1266_v27 }
 0x532   : > { %v1229_v28 = vpop.xlane.xlu0 %1228 }
 0x533   : > { %4358 = vpow2.f32 %v1280_v29 }
 0x534   : > { %v1232_v30 = vpop.xlane.xlu1 %1231 }
 0x535   : > { %v1265_v31 = vsub.f32 %v1215_v46, %v1232_v30 }
 0x537   : > { %1368 = vrot.lane.b32.xlu1 %v4994_v13, %s4713_s2  ;;  %v1264_v13 = vsub.f32 %v5066_v42, %v1229_v28 }
 0x53a   : > { %1370 = vrot.lane.b32.xlu0 %v4990_v8, %s4713_s2  ;;  %v1276_v8 = vmul.f32 1.442695, %v1264_v13 }
 0x53b   : > { %1435 = vrot.lane.b32.xlu1 %v5012_v14, %s4713_s2  ;;  %v1278_v14 = vmul.f32 1.442695, %v1265_v31 }
 0x53c   : > { %4360 = vpow2.f32 %v1276_v8 }
 0x53d   : > { %4362 = vpow2.f32 %v1278_v14 }
 0x53e   : > { %1497 = vrot.lane.b32.xlu0 %v5024_v18, %s4713_s2 }
 0x53f   : > { %1433 = vrot.lane.b32.xlu1 %v5018_v16, %s4713_s2 }
 0x540   : > { %v5118_v18 = vpop.eup %4358 }
 0x541   : > { %v1306_v16 = vsel %vm1233_vm5, %v5118_v18, 0.0 }
 0x543   : > { %1559 = vrot.lane.b32.xlu1 %v5030_v24, %s4713_s2 }
 0x549   : > { %v5122_v32 = vpop.eup %4360 }
 0x54a   : > { %v1300_v24 = vsel %vm1226_vm6, %v5122_v32, 0.0  ;;  %v5126_v33 = vpop.eup %4362 }
 0x54b   : > { %v1303_v34 = vsel %vm1226_vm6, %v5126_v33, 0.0 }
 0x55d   : > { %1307 = vadd.xlane.f32.xlu0 %v1306_v16 }
 0x561   : > { %1301 = vadd.xlane.f32.xlu0 %v1300_v24 }
 0x567   : > { %1304 = vadd.xlane.f32.xlu1 %v1303_v34 }
 0x597   : > { %v1245_v35 = vpop.xlane.xlu1 %1244 }
 0x598   : > { %v1269_v36 = vsub.f32 %v5072_v50, %v1245_v35 }
 0x599   : > { %v1239_v37 = vpop.xlane.xlu0 %1238 }
 0x59a   : > { %v1286_v38 = vmul.f32 1.442695, %v1269_v36  ;;  %v1267_v39 = vsub.f32 %v5074_v52, %v1239_v37 }
 0x59c   : > { %4364 = vpow2.f32 %v1286_v38  ;;  %v1282_v40 = vmul.f32 1.442695, %v1267_v39 }
 0x59d   : > { %v1242_v41 = vpop.xlane.xlu0 %1241 }
 0x59e   : > { %4366 = vpow2.f32 %v1282_v40  ;;  %v1268_v53 = vsub.f32 %v5080_v57, %v1242_v41 }
 0x5a0   : > { %v1284_v60 = vmul.f32 1.442695, %v1268_v53 }
 0x5a3   : > { %v1248_v42 = vpop.xlane.xlu0 %1247 }
 0x5a4   : > { %v1270_v43 = vsub.f32 %v5084_v61, %v1248_v42 }
 0x5a6   : > { %v1288_v54 = vmul.f32 1.442695, %v1270_v43 }
 0x5a7   : > { %v1251_v44 = vpop.xlane.xlu1 %1250  ;;  %v1254_v45 = vpop.xlane.xlu0 %1253 }
 0x5a8   : > { %v1271_v46 = vsub.f32 %v1221_v3, %v1251_v44  ;;  %v1272_v47 = vsub.f32 %v5086_v63, %v1254_v45  ;;  %v4714_v63 = vmov 0  }
 0x5a9   : > { %v5134_v48 = vpop.eup %4364  ;;  %v5145_v57 = vsel %vm1379_vm7, 65535, %v4714_v63 }
 0x5aa   : > { %v1290_v49 = vmul.f32 1.442695, %v1271_v46  ;;  %v1292_v50 = vmul.f32 1.442695, %v1272_v47  ;;  %v1315_v51 = vsel %vm1233_vm5, %v5134_v48, 0.0 }
 0x5ab   : > { %v5138_v52 = vpop.eup %4366  ;;  %1316 = vadd.xlane.f32.xlu1 %v1315_v51  ;;  %v1257_v55 = vpop.xlane.xlu1 %1256 }
 0x5ac   : > { %4368 = vpow2.f32 %v1290_v49  ;;  %v1273_v58 = vsub.f32 %v5090_v5, %v1257_v55  ;;  %v1309_v59 = vsel %vm1226_vm6, %v5138_v52, 0.0 }
 0x5ad   : > { %4370 = vpow2.f32 %v1292_v50  ;;  %v1260_v56 = vpop.xlane.xlu0 %1259 }
 0x5ae   : > { %4372 = vpow2.f32 %v1288_v54  ;;  %v1274_v61 = vsub.f32 %v5097_v12, %v1260_v56  ;;  %v1294_v2 = vmul.f32 1.442695, %v1273_v58 }
 0x5af   : > { %1310 = vadd.xlane.f32.xlu1 %v1309_v59  ;;  %v1263_v62 = vpop.xlane.xlu1 %1262  ;;  %4374 = vpow2.f32 %v1284_v60 }
 0x5b0   : > { %v1275_v0 = vsub.f32 %v5095_v11, %v1263_v62  ;;  %v1296_v5 = vmul.f32 1.442695, %v1274_v61 }
 0x5b1   : > { %v1371_v1 = vpop.permute.xlu0 %1370 }
 0x5b2   : > { %v1298_v3 = vmul.f32 1.442695, %v1275_v0  ;;  %v1383_v4 = vand.u32 %v5145_v57, %v1371_v1 }
 0x5b3   : > { %v1369_v6 = vpop.permute.xlu1 %1368 }
 0x5b4   : > { %4376 = vpow2.f32 %v1298_v3  ;;  %4024 = vmatprep.subr.bf16.mxu1 %v1383_v4 }
 0x5b5   : > { %4025 = vmatpush3.bf16.msra.mxu1 %v1383_v4  ;;  %4378 = vpow2.f32 %v1294_v2  ;;  %v1498_v34 = vpop.permute.xlu0 %1497 }
 0x5b6   : > { %4026 = vmatprep.subr.bf16.mxu1 %v1369_v6  ;;  %4380 = vpow2.f32 %v1296_v5 }
 0x5b7   : > { %v1436_v7 = vpop.permute.xlu1 %1435 }
 0x5b8   : > { %v1445_v9 = vand.u32 %v1436_v7, %v5145_v57 }
 0x5b9   : > { %v5150_v10 = vpop.eup %4368  ;;  %4027 = vmatpush3.bf16.msra.mxu1 %v1369_v6 }
 0x5ba   : > { %v5152_v11 = vpop.eup %4370  ;;  %4032 = vmatprep.subr.bf16.mxu1 %v1445_v9  ;;  %v1321_v12 = vsel %vm1226_vm6, %v5150_v10, 0.0 }
 0x5bb   : > { %1322 = vadd.xlane.f32.xlu1 %v1321_v12  ;;  %v1434_v17 = vpop.permute.xlu1 %1433  ;;  %v1324_v19 = vsel %vm1233_vm5, %v5152_v11, 0.0  ;;  %v5158_v21 = vpop.eup %4372 }
 0x5bc   : > { %1325 = vadd.xlane.f32.xlu0 %v1324_v19  ;;  %v1318_v27 = vsel %vm1226_vm6, %v5158_v21, 0.0  ;;  %v5162_v28 = vpop.eup %4374 }
 0x5bd   : > { %v1312_v31 = vsel %vm1226_vm6, %v5162_v28, 0.0 }
 0x5bf   : > { %v1560_v26 = vpop.permute.xlu1 %1559 }
 0x5c0   : > { %v1569_v29 = vand.u32 %v1560_v26, %v5145_v57  ;;  %1319 = vadd.xlane.f32.xlu0 %v1318_v27 }
 0x5c1   : > { %v5165_v13 = vpop.eup %4376 }
 0x5c2   : > { %4048 = vmatprep.subr.bf16.mxu0 %v1569_v29  ;;  %v1333_v30 = vsel %vm1233_vm5, %v5165_v13, 0.0  ;;  %v5169_v8 = vpop.eup %4378 }
 0x5c3   : > { %1334 = vadd.xlane.f32.xlu1 %v1333_v30  ;;  %4049 = vmatpush3.bf16.msra.mxu0 %v1569_v29  ;;  %v5173_v14 = vpop.eup %4380  ;;  %v1327_v16 = vsel %vm1226_vm6, %v5169_v8, 0.0  ;;  %v1629_v29 = vld [vmem:[%s5669_s9 + $0x8] sm:$0xf] }
 0x5c4   : > { %1313 = vadd.xlane.f32.xlu0 %v1312_v31  ;;  %v1330_v24 = vsel %vm1226_vm6, %v5173_v14, 0.0 }
 0x5c7   : > { %1328 = vadd.xlane.f32.xlu1 %v1327_v16 }
 0x5c8   : > { %1331 = vadd.xlane.f32.xlu0 %v1330_v24 }
 0x5d8   : > { %1557 = vrot.lane.b32.xlu1 %v5037_v25, %s4713_s2 }
 0x5de   : > { %1495 = vrot.lane.b32.xlu0 %v5016_v15, %s4713_s2  ;;  %v1507_v15 = vand.u32 %v1498_v34, %v5145_v57  ;;  %v1753_v34 = vsel %vm1637_vm8, %v1629_v29, 0 }
 0x5e6   : > { %v1308_v35 = vpop.xlane.xlu0 %1307 }
 0x5e7   : > { %4382 = vrcp.f32 %v1308_v35 }
 0x5ea   : > { %v1302_v36 = vpop.xlane.xlu0 %1301 }
 0x5eb   : > { %4384 = vrcp.f32 %v1302_v36 }
 0x5f0   : > { %v1305_v37 = vpop.xlane.xlu1 %1304 }
 0x5f1   : > { %4386 = vrcp.f32 %v1305_v37 }
 0x5f4   : > { %v4383_v38 = vpop.eup %4382 }
 0x5f5   : > { %v1350_v41 = vmul.f32 %v4383_v38, %v5118_v18 }
 0x5f7   : > { %v1361_v44 = vpack.c.bf16 %v1350_v41, %v1350_v41 }
 0x5f8   : > { %v4385_v39 = vpop.eup %4384 }
 0x5f9   : > { %v1348_v42 = vmul.f32 %v4385_v39, %v5122_v32 }
 0x5fe   : > { %v4387_v40 = vpop.eup %4386 }
 0x5ff   : > { %v1349_v43 = vmul.f32 %v4387_v40, %v5126_v33 }
 0x601   : > { %v1360_v25 = vpack.c.bf16 %v1349_v43, %v1348_v42 }
 0x603   : > { %4028 = vmatprep.mubr.msk.bf16.mxu1 %vm1226_vm6, %v1360_v25 }
 0x604   : > { %4029 = vmatmul.mubr.msk.bf16.vlgmr.msra.gmra.mxu1 %vm1226_vm6, %v1361_v44 }
 0x605   : > { %4033 = vmatpush3.bf16.msra.mxu1 %v1445_v9 }
 0x606   : > { %4034 = vmatprep.subr.bf16.mxu1 %v1434_v17 }
 0x609   : > { %4035 = vmatpush3.bf16.msra.mxu1 %v1434_v17 }
 0x60a   : > { %4040 = vmatprep.subr.bf16.mxu1 %v1507_v15 }
 0x634   : > { %v1317_v45 = vpop.xlane.xlu1 %1316 }
 0x635   : > { %4388 = vrcp.f32 %v1317_v45 }
 0x638   : > { %v1311_v46 = vpop.xlane.xlu1 %1310 }
 0x639   : > { %4390 = vrcp.f32 %v1311_v46 }
 0x642   : > { %v4389_v54 = vpop.eup %4388 }
 0x643   : > { %v1353_v60 = vmul.f32 %v4389_v54, %v5134_v48 }
 0x644   : > { %v1323_v18 = vpop.xlane.xlu1 %1322 }
 0x645   : > { %v1326_v47 = vpop.xlane.xlu0 %1325  ;;  %v1363_v5 = vpack.c.bf16 %v1353_v60, %v1353_v60 }
 0x646   : > { %v4391_v55 = vpop.eup %4390 }
 0x647   : > { %v1351_v62 = vmul.f32 %v4391_v55, %v5138_v52 }
 0x649   : > { %v1320_v49 = vpop.xlane.xlu0 %1319 }
 0x64a   : > { %4392 = vrcp.f32 %v1320_v49 }
 0x64b   : > { %4394 = vrcp.f32 %v1323_v18 }
 0x64c   : > { %v1335_v32 = vpop.xlane.xlu1 %1334 }
 0x64d   : > { %v1314_v33 = vpop.xlane.xlu0 %1313 }
 0x64e   : > { %4396 = vrcp.f32 %v1314_v33 }
 0x64f   : > { %4398 = vrcp.f32 %v1335_v32 }
 0x650   : > { %v1329_v50 = vpop.xlane.xlu1 %1328 }
 0x651   : > { %4400 = vrcp.f32 %v1329_v50  ;;  %v1332_v51 = vpop.xlane.xlu0 %1331 }
 0x652   : > { %4402 = vrcp.f32 %v1332_v51 }
 0x653   : > { %4404 = vrcp.f32 %v1326_v47 }
 0x654   : > { %v1558_v53 = vpop.permute.xlu1 %1557 }
 0x655   : > { %4050 = vmatprep.subr.bf16.mxu0 %v1558_v53  ;;  %v1496_v12 = vpop.permute.xlu0 %1495 }
 0x656   : > { %4051 = vmatpush3.bf16.msra.mxu0 %v1558_v53 }
 0x657   : > { %v4393_v56 = vpop.eup %4392 }
 0x658   : > { %v4395_v58 = vpop.eup %4394  ;;  %v1354_v0 = vmul.f32 %v4393_v56, %v5158_v21  ;;  %v1627_v21 = vld [vmem:[%s5669_s9] sm:$0xf] }
 0x659   : > { %v1355_v3 = vmul.f32 %v4395_v58, %v5150_v10  ;;  %v1639_v27 = vsel %vm1637_vm8, %v1627_v21, 0 }
 0x65b   : > { %v4397_v59 = vpop.eup %4396  ;;  %v1364_v48 = vpack.c.bf16 %v1355_v3, %v1354_v0 }
 0x65c   : > { %v4399_v61 = vpop.eup %4398  ;;  %v1352_v63 = vmul.f32 %v4397_v59, %v5162_v28 }
 0x65d   : > { %v1359_v7 = vmul.f32 %v4399_v61, %v5165_v13  ;;  %v1630_v13 = vld [vmem:[%s5669_s9 + $0xc] sm:$0xf] }
 0x65e   : > { %v4401_v1 = vpop.eup %4400  ;;  %v1362_v2 = vpack.c.bf16 %v1352_v63, %v1351_v62  ;;  %v1810_v44 = vsel %vm1637_vm8, %v1630_v13, 0 }
 0x65f   : > { %v4403_v4 = vpop.eup %4402  ;;  %v1357_v6 = vmul.f32 %v4401_v1, %v5169_v8  ;;  %v1367_v10 = vpack.c.bf16 %v1359_v7, %v1359_v7 }
 0x660   : > { %v4405_v9 = vpop.eup %4404  ;;  %4036 = vmatprep.mubr.msk.bf16.mxu1 %vm1226_vm6, %v1362_v2  ;;  %v1358_v52 = vmul.f32 %v4403_v4, %v5173_v14 }
 0x661   : > { %4037 = vmatmul.mubr.msk.bf16.vlgmr.msra.gmra.mxu1 %vm1226_vm6, %v1363_v5  ;;  %v1356_v19 = vmul.f32 %v4405_v9, %v5152_v11  ;;  %v1628_v11 = vld [vmem:[%s5669_s9 + $0x4] sm:$0xf] }
 0x662   : > { %4041 = vmatpush3.bf16.msra.mxu1 %v1507_v15  ;;  %4044 = vmatprep.mubr.msk.bf16.mxu1 %vm1226_vm6, %v1364_v48  ;;  %v1366_v17 = vpack.c.bf16 %v1358_v52, %v1357_v6  ;;  %v1696_v28 = vsel %vm1637_vm8, %v1628_v11, 0 }
 0x663   : > { %4042 = vmatprep.subr.bf16.mxu1 %v1496_v12  ;;  %v1365_v26 = vpack.c.bf16 %v1356_v19, %v1356_v19  ;;  %4225 = vmatprep.subr.msk.bf16.mxu0 %vm1637_vm8, %v1628_v11 }
 0x664   : > { %4052 = vmatprep.mubr.msk.bf16.mxu0 %vm1226_vm6, %v1366_v17 }
 0x665   : > { %4053 = vmatmul.mubr.msk.bf16.vlgmr.msra.gmra.mxu0 %vm1226_vm6, %v1367_v10 }
 0x666   : > { %4043 = vmatpush3.bf16.msra.mxu1 %v1496_v12  ;;  %4063 = vmatpush3.bf16.msra.mxu0 %v1696_v28 }
 0x667   : > { %4224 = vmatprep.subr.msk.bf16.mxu1 %vm1637_vm8, %v1627_v21  ;;  %4227 = vmatprep.subr.msk.bf16.mxu0 %vm1637_vm8, %v1630_v13 }
 0x669   : > { %4045 = vmatmul.mubr.msk.bf16.vlgmr.msra.gmra.mxu1 %vm1226_vm6, %v1365_v26 }
 0x66a   : > { %4057 = vmatpush3.bf16.msra.mxu1 %v1639_v27 }
 0x66b   : > { %4226 = vmatprep.subr.msk.bf16.mxu1 %vm1637_vm8, %v1629_v29 }
 0x6c4   : > { %v4030_v30 = vpop.f32.mrf.mxu1 }
 0x6c5   : > { %v1620_v24 = vpack.c.bf16 %v4030_v30, %v4030_v30 }
 0x6c6   : > { %v1419_v8 = vpop.f32.mrf.mxu1 }
 0x6c8   : > { %v4031_v31 = vpop.f32.mrf.mxu1 }
 0x6ca   : > { %v1422_v14 = vpop.f32.mrf.mxu1 }
 0x6cb   : > { %v1619_v16 = vpack.c.bf16 %v1422_v14, %v1419_v8 }
 0x6cd   : > { %4058 = vmatprep.mubr.msk.bf16.mxu1 %vm961_vm4, %v1619_v16  ;;  %v3761_v16 = vld [vmem:[%s5670_s10] ss:$0 sm:$0xff] }
 0x6ce   : > { %4059 = vmatmul.mubr.msk.bf16.vlgmr.msra.gmra.mxu1 %vm961_vm4, %v1620_v24 }
 0x6cf   : > { %4069 = vmatpush3.bf16.msra.mxu1 %v1753_v34 }
 0x721   : > { %v4038_v35 = vpop.f32.mrf.mxu1 }
 0x722   : > { %v1622_v42 = vpack.c.bf16 %v4038_v35, %v4038_v35 }
 0x723   : > { %v1481_v36 = vpop.f32.mrf.mxu1 }
 0x725   : > { %v4039_v37 = vpop.f32.mrf.mxu1  ;;  %v4054_v38 = vpop.f32.mrf.mxu0 }
 0x726   : > { %v1626_v32 = vpack.c.bf16 %v4054_v38, %v4054_v38 }
 0x727   : > { %v1484_v39 = vpop.f32.mrf.mxu1  ;;  %v1605_v40 = vpop.f32.mrf.mxu0 }
 0x728   : > { %v1621_v41 = vpack.c.bf16 %v1484_v39, %v1481_v36 }
 0x729   : > { %v4046_v43 = vpop.f32.mrf.mxu1  ;;  %v4055_v25 = vpop.f32.mrf.mxu0 }
 0x72a   : > { %4064 = vmatprep.mubr.msk.bf16.mxu0 %vm961_vm4, %v1621_v41  ;;  %v1624_v33 = vpack.c.bf16 %v4046_v43, %v4046_v43 }
 0x72b   : > { %v1543_v15 = vpop.f32.mrf.mxu1  ;;  %v1608_v45 = vpop.f32.mrf.mxu0  ;;  %4065 = vmatmul.mubr.msk.bf16.vlgmr.msra.gmra.mxu0 %vm961_vm4, %v1622_v42 }
 0x72c   : > { %v1625_v46 = vpack.c.bf16 %v1608_v45, %v1605_v40  ;;  %4075 = vmatpush3.bf16.msra.mxu0 %v1810_v44 }
 0x72d   : > { %v4047_v47 = vpop.f32.mrf.mxu1 }
 0x72e   : > { %4076 = vmatprep.mubr.msk.bf16.mxu0 %vm961_vm4, %v1625_v46 }
 0x72f   : > { %v1546_v18 = vpop.f32.mrf.mxu1 }
 0x730   : > { %v1623_v49 = vpack.c.bf16 %v1546_v18, %v1543_v15 }
 0x732   : > { %4070 = vmatprep.mubr.msk.bf16.mxu1 %vm961_vm4, %v1623_v49 }
 0x733   : > { %4071 = vmatmul.mubr.msk.bf16.vlgmr.msra.gmra.mxu1 %vm961_vm4, %v1624_v33  ;;  %4077 = vmatmul.mubr.msk.bf16.vlgmr.msra.gmra.mxu0 %vm961_vm4, %v1626_v32  ;;  %v4338_v33 = vld [vmem:[%s5673_s13 + $0x8] sm:$0xff]  }
 0x734   : > { %4080 = vmatprep.subr.bf16.mxu1 %v4338_v33 }
 0x735   : > { %4081 = vmatpush3.bf16.msra.mxu1 %v4338_v33 }
 0x78e   : > { %v4060_v50 = vpop.f32.mrf.mxu1 }
 0x78f   : > { %v1874_v61 = vsel %vm790_vm2, %v4060_v50, 0.0  ;;  %v4339_v50 = vld [vmem:[%s5673_s13] sm:$0xff]  }
 0x790   : > { %v1675_v51 = vpop.f32.mrf.mxu1  ;;  %4082 = vmatprep.subr.bf16.mxu1 %v4339_v50 }
 0x791   : > { %v1860_v2 = vsel %vm796_vm3, %v1675_v51, 0.0  ;;  %4083 = vmatpush3.bf16.msra.mxu1 %v4339_v50 }
 0x792   : > { %v4061_v53 = vpop.f32.mrf.mxu1 }
 0x794   : > { %v1678_v59 = vpop.f32.mrf.mxu1 }
 0x795   : > { %v1867_v21 = vsel %vm796_vm3, %v1678_v59, 0.0 }
 0x7eb   : > { %v4066_v54 = vpop.f32.mrf.mxu0 }
 0x7ec   : > { %v1875_v58 = vsel %vm790_vm2, %v4066_v54, 0.0 }
 0x7ed   : > { %v1732_v55 = vpop.f32.mrf.mxu0  ;;  %v1876_v63 = vadd.f32 %v1875_v58, %v1874_v61 }
 0x7ee   : > { %v1861_v62 = vsel %vm796_vm3, %v1732_v55, 0.0 }
 0x7ef   : > { %v4067_v56 = vpop.f32.mrf.mxu0  ;;  %v1862_v4 = vadd.f32 %v1861_v62, %v1860_v2 }
 0x7f1   : > { %v1735_v60 = vpop.f32.mrf.mxu0 }
 0x7f2   : > { %v1868_v9 = vsel %vm796_vm3, %v1735_v60, 0.0 }
 0x7f3   : > { %v4072_v0 = vpop.f32.mrf.mxu1  ;;  %v4078_v1 = vpop.f32.mrf.mxu0  ;;  %v1869_v27 = vadd.f32 %v1868_v9, %v1867_v21  ;;  %v4341_v21 = vld [vmem:[%s5675_s15 + $0x10] sm:$0xff]  }
 0x7f4   : > { %v1877_v3 = vsel %vm790_vm2, %v4072_v0, 0.0  ;;  %v1879_v48 = vsel %vm790_vm2, %v4078_v1, 0.0  ;;  %v3762_v0 = vld [vmem:[%s5671_s11] ss:$0 sm:$0xff] }
 0x7f5   : > { %v1878_v5 = vadd.f32 %v1877_v3, %v1876_v63  ;;  %v1789_v6 = vpop.f32.mrf.mxu1  ;;  %v1846_v7 = vpop.f32.mrf.mxu0 }
 0x7f6   : > { %v1863_v52 = vsel %vm796_vm3, %v1789_v6, 0.0  ;;  %v1865_v26 = vsel %vm796_vm3, %v1846_v7, 0.0  ;;  %v3763_v6 = vld [vmem:[#allocation13] ss:$0 sm:$0xff] }
 0x7f7   : > { %v1880_v12 = vadd.f32 %v1879_v48, %v1878_v5  ;;  %v1864_v17 = vadd.f32 %v1863_v52, %v1862_v4  ;;  %v4073_v10 = vpop.f32.mrf.mxu1  ;;  %v4079_v19 = vpop.f32.mrf.mxu0 }
 0x7f8   : > { %v4340_v19 = vld [vmem:[%s5675_s15 + $0x18] sm:$0xff]  }
 0x7f9   : > { %v1866_v11 = vadd.f32 %v1865_v26, %v1864_v17  ;;  %v1792_v28 = vpop.f32.mrf.mxu1  ;;  %v1849_v29 = vpop.f32.mrf.mxu0  ;;  %v1883_v30 = vadd.f32 %v1880_v12, %v4968_v22  ;;  %4088 = vmatprep.subr.bf16.mxu0 %v4340_v19  ;;  %v4342_v26 = vld [vmem:[%s5675_s15 + $0x8] sm:$0xff]  }
 0x7fa   : > { %v1870_v13 = vsel %vm796_vm3, %v1792_v28, 0.0  ;;  %v1872_v14 = vsel %vm796_vm3, %v1849_v29, 0.0  ;;  %4089 = vmatpush3.bf16.msra.mxu0 %v4340_v19 }
 0x7fb   : > { %v1881_v8 = vadd.f32 %v1866_v11, %v4964_v20  ;;  %v1871_v31 = vadd.f32 %v1870_v13, %v1869_v27  ;;  %v5254_v37 = vadd.f32 %v3761_v16, %v1883_v30  ;;  %4090 = vmatprep.subr.bf16.mxu0 %v4341_v21  ;;  %v4343_v27 = vld [vmem:[%s5675_s15] sm:$0xff]  }
 0x7fc   : > { %v3764_v11 = vld [vmem:[%s5674_s14] ss:$0 sm:$0xff] }
 0x7fd   : > { %v1873_v24 = vadd.f32 %v1872_v14, %v1871_v31  ;;  %v5249_v34 = vadd.f32 %v3761_v16, %v1881_v8  ;;  %v1902_v20 = vsel %vm790_vm2, %v5254_v37, 0.0 }
 0x7fe   : > { %4091 = vmatpush3.bf16.msra.mxu0 %v4341_v21 }
 0x7ff   : > { %v1882_v35 = vadd.f32 %v1873_v24, %v4970_v23  ;;  %v1896_v36 = vsel %vm796_vm3, %v5249_v34, 0.0  ;;  %4092 = vmatprep.subr.bf16.mxu0 %v4342_v26 }
 0x800   : > { %1897 = vadd.xlane.f32.xlu0 %v1896_v36 }
 0x801   : > { %v5256_v22 = vadd.f32 %v3761_v16, %v1882_v35 }
 0x802   : > { %4093 = vmatpush3.bf16.msra.mxu0 %v4342_v26 }
 0x803   : > { %v1899_v38 = vsel %vm796_vm3, %v5256_v22, 0.0  ;;  %4094 = vmatprep.subr.bf16.mxu0 %v4343_v27 }
 0x804   : > { %1903 = vadd.xlane.f32.xlu0 %v1902_v20  ;;  %1900 = vadd.xlane.f32.xlu1 %v1899_v38 }
 0x806   : > { %4095 = vmatpush3.bf16.msra.mxu0 %v4343_v27 }
 0x889   : > { %v1898_v39 = vpop.xlane.xlu0 %1897 }
 0x88a   : > { %v1905_v40 = vmul.f32 0.03125, %v1898_v39 }
 0x88c   : > { %v1908_v23 = vsub.f32 %v5249_v34, %v1905_v40 }
 0x88d   : > { %v1904_v41 = vpop.xlane.xlu0 %1903  ;;  %v1901_v42 = vpop.xlane.xlu1 %1900 }
 0x88e   : > { %v1907_v43 = vmul.f32 0.03125, %v1904_v41  ;;  %v1906_v25 = vmul.f32 0.03125, %v1901_v42  ;;  %v1911_v44 = vmul.f32 %v1908_v23, %v1908_v23 }
 0x890   : > { %v1910_v15 = vsub.f32 %v5254_v37, %v1907_v43  ;;  %v1909_v45 = vsub.f32 %v5256_v22, %v1906_v25  ;;  %v1914_v46 = vsel %vm796_vm3, %v1911_v44, 0.0 }
 0x891   : > { %1915 = vadd.xlane.f32.xlu0 %v1914_v46 }
 0x892   : > { %v1913_v47 = vmul.f32 %v1910_v15, %v1910_v15  ;;  %v1912_v18 = vmul.f32 %v1909_v45, %v1909_v45 }
 0x894   : > { %v1920_v49 = vsel %vm790_vm2, %v1913_v47, 0.0  ;;  %v1917_v32 = vsel %vm796_vm3, %v1912_v18, 0.0 }
 0x895   : > { %1921 = vadd.xlane.f32.xlu1 %v1920_v49  ;;  %1918 = vadd.xlane.f32.xlu0 %v1917_v32 }
 0x91a   : > { %v1916_v51 = vpop.xlane.xlu0 %1915 }
 0x91b   : > { %v1923_v53 = vmul.f32 0.03125, %v1916_v51 }
 0x91d   : > { %v1926_v54 = vadd.f32 1e-06, %v1923_v53 }
 0x91e   : > { %v1919_v55 = vpop.xlane.xlu0 %1918  ;;  %v1922_v56 = vpop.xlane.xlu1 %1921 }
 0x91f   : > { %4406 = vrsqrt.f32 %v1926_v54  ;;  %v1924_v58 = vmul.f32 0.03125, %v1919_v55  ;;  %v1925_v59 = vmul.f32 0.03125, %v1922_v56 }
 0x921   : > { %v1927_v60 = vadd.f32 1e-06, %v1924_v58  ;;  %v1928_v61 = vadd.f32 1e-06, %v1925_v59 }
 0x923   : > { %4408 = vrsqrt.f32 %v1927_v60  ;;  %v3769_v60 = vld [vmem:[%s5676_s16] ss:$0 sm:$0xff] }
 0x924   : > { %4410 = vrsqrt.f32 %v1928_v61 }
 0x92c   : > { %v4407_v62 = vpop.eup %4406 }
 0x92d   : > { %v1932_v63 = vmul.f32 %v4407_v62, %v1908_v23 }
 0x92f   : > { %v1941_v4 = vmul.f32 %v3762_v0, %v1932_v63 }
 0x930   : > { %v4409_v1 = vpop.eup %4408 }
 0x931   : > { %v4411_v2 = vpop.eup %4410  ;;  %v1933_v3 = vmul.f32 %v4409_v1, %v1909_v45  ;;  %v1950_v48 = vadd.f32 %v3763_v6, %v1941_v4 }
 0x932   : > { %v1934_v5 = vmul.f32 %v4411_v2, %v1910_v15 }
 0x933   : > { %v1942_v7 = vmul.f32 %v3762_v0, %v1933_v3 }
 0x934   : > { %v1943_v9 = vmul.f32 %v3762_v0, %v1934_v5 }
 0x935   : > { %v1951_v52 = vadd.f32 %v3763_v6, %v1942_v7 }
 0x936   : > { %v1952_v12 = vadd.f32 %v3763_v6, %v1943_v9 }
 0x937   : > { %v1953_v17 = vpack.c.bf16 %v1951_v52, %v1950_v48 }
 0x938   : > { %v1954_v10 = vpack.c.bf16 %v1952_v12, %v1952_v12 }
 0x939   : > { %4084 = vmatprep.mubr.msk.bf16.mxu1 %vm796_vm3, %v1953_v17 }
 0x93a   : > { %4085 = vmatmul.mubr.msk.bf16.vlgmr.msra.gmra.mxu1 %vm796_vm3, %v1954_v10 }
 0x9fa   : > { %v4086_v28 = vpop.f32.mrf.mxu1 }
 0x9fb   : > { %v2027_v29 = vadd.f32 %v4086_v28, %v3764_v11 }
 0x9fc   : > { %v2018_v13 = vpop.f32.mrf.mxu1 }
 0x9fd   : > { %v2034_v30 = vmul.f32 %v2027_v29, %v2027_v29  ;;  %v2019_v8 = vadd.f32 %v3764_v11, %v2018_v13  ;;  %v4344_v13 = vld [vmem:[%s5667_s7 + $0x18] sm:$0xff]  }
 0x9fe   : > { %v4087_v31 = vpop.f32.mrf.mxu1  ;;  %4100 = vmatprep.subr.bf16.mxu1 %v4344_v13 }
 0x9ff   : > { %v2037_v14 = vmul.f32 %v2034_v30, %v2027_v29  ;;  %v2032_v16 = vmul.f32 %v2019_v8, %v2019_v8  ;;  %v4345_v30 = vld [vmem:[%s5667_s7 + $0x10] sm:$0xff]   ;;  %4101 = vmatpush3.bf16.msra.mxu1 %v4344_v13 }
 0xa00   : > { %v2021_v24 = vpop.f32.mrf.mxu1  ;;  %4102 = vmatprep.subr.bf16.mxu1 %v4345_v30 }
 0xa01   : > { %v2040_v35 = vmul.f32 0.044715, %v2037_v14  ;;  %v2035_v36 = vmul.f32 %v2032_v16, %v2019_v8  ;;  %v2022_v20 = vadd.f32 %v3764_v11, %v2021_v24 }
 0xa03   : > { %v2043_v38 = vadd.f32 %v2040_v35, %v2027_v29  ;;  %v2038_v39 = vmul.f32 0.044715, %v2035_v36  ;;  %v2033_v40 = vmul.f32 %v2022_v20, %v2022_v20  ;;  %4103 = vmatpush3.bf16.msra.mxu1 %v4345_v30 }
 0xa05   : > { %v2046_v23 = vmul.f32 0.7978846, %v2043_v38  ;;  %v2041_v41 = vadd.f32 %v2038_v39, %v2019_v8  ;;  %v2036_v42 = vmul.f32 %v2033_v40, %v2022_v20 }
 0xa07   : > { %4412 = vtanh.f32 %v2046_v23  ;;  %v2044_v43 = vmul.f32 0.7978846, %v2041_v41  ;;  %v2039_v25 = vmul.f32 0.044715, %v2036_v42  ;;  %v3776_v23 = vld [vmem:[#allocation8 + $0x1] ss:$0 sm:$0xff] }
 0xa09   : > { %4414 = vtanh.f32 %v2044_v43  ;;  %v2042_v44 = vadd.f32 %v2039_v25, %v2022_v20 }
 0xa0b   : > { %v2045_v15 = vmul.f32 0.7978846, %v2042_v44 }
 0xa0d   : > { %4416 = vtanh.f32 %v2045_v15  ;;  %v3777_v15 = vld [vmem:[#allocation10 + $0x1] ss:$0 sm:$0xff] }
 0xa14   : > { %v4413_v45 = vpop.eup %4412 }
 0xa15   : > { %v2052_v47 = vadd.f32 1.0, %v4413_v45 }
 0xa16   : > { %v4415_v46 = vpop.eup %4414 }
 0xa17   : > { %v2050_v18 = vadd.f32 1.0, %v4415_v46  ;;  %v2055_v32 = vmul.f32 0.5, %v2052_v47 }
 0xa19   : > { %v2053_v33 = vmul.f32 0.5, %v2050_v18  ;;  %v2058_v53 = vmul.f32 %v2055_v32, %v2027_v29 }
 0xa1a   : > { %v4417_v49 = vpop.eup %4416 }
 0xa1b   : > { %v2051_v50 = vadd.f32 1.0, %v4417_v49  ;;  %v2056_v54 = vmul.f32 %v2053_v33, %v2019_v8  ;;  %v2060_v58 = vpack.c.bf16 %v2058_v53, %v2058_v53 }
 0xa1d   : > { %v2054_v51 = vmul.f32 0.5, %v2051_v50  ;;  %v3782_v50 = vld [vmem:[#allocation11 + $0x1] ss:$0 sm:$0xff] }
 0xa1f   : > { %v2057_v55 = vmul.f32 %v2054_v51, %v2022_v20 }
 0xa21   : > { %v2059_v56 = vpack.c.bf16 %v2057_v55, %v2056_v54 }
 0xa23   : > { %4096 = vmatprep.mubr.msk.bf16.mxu0 %vm744_vm1, %v2059_v56 }
 0xa24   : > { %4097 = vmatmul.mubr.msk.bf16.vlgmr.msra.gmra.mxu0 %vm744_vm1, %v2060_v58 }
 0xae4   : > { %v4098_v59 = vpop.f32.mrf.mxu0 }
 0xae5   : > { %v2149_v62 = vadd.f32 %v4098_v59, %v3769_v60 }
 0xae6   : > { %v2140_v61 = vpop.f32.mrf.mxu0 }
 0xae7   : > { %v2141_v63 = vadd.f32 %v3769_v60, %v2140_v61  ;;  %v5303_v3 = vadd.f32 %v2149_v62, %v5254_v37 }
 0xae8   : > { %v4099_v0 = vpop.f32.mrf.mxu0 }
 0xae9   : > { %v5300_v1 = vadd.f32 %v2141_v63, %v5249_v34  ;;  %v2167_v9 = vsel %vm790_vm2, %v5303_v3, 0.0 }
 0xaea   : > { %v2143_v2 = vpop.f32.mrf.mxu0 }
 0xaeb   : > { %v2144_v4 = vadd.f32 %v3769_v60, %v2143_v2  ;;  %v2161_v5 = vsel %vm796_vm3, %v5300_v1, 0.0 }
 0xaec   : > { %2162 = vadd.xlane.f32.xlu0 %v2161_v5 }
 0xaed   : > { %v5308_v6 = vadd.f32 %v2144_v4, %v5256_v22 }
 0xaef   : > { %v2164_v7 = vsel %vm796_vm3, %v5308_v6, 0.0 }
 0xaf0   : > { %2165 = vadd.xlane.f32.xlu1 %v2164_v7  ;;  %2168 = vadd.xlane.f32.xlu0 %v2167_v9 }
 0xb75   : > { %v2163_v34 = vpop.xlane.xlu0 %2162 }
 0xb76   : > { %v2170_v48 = vmul.f32 0.03125, %v2163_v34 }
 0xb78   : > { %v2173_v37 = vsub.f32 %v5300_v1, %v2170_v48 }
 0xb79   : > { %v2166_v52 = vpop.xlane.xlu1 %2165  ;;  %v2169_v12 = vpop.xlane.xlu0 %2168 }
 0xb7a   : > { %v2171_v17 = vmul.f32 0.03125, %v2166_v52  ;;  %v2172_v10 = vmul.f32 0.03125, %v2169_v12  ;;  %v2176_v19 = vmul.f32 %v2173_v37, %v2173_v37 }
 0xb7c   : > { %v2174_v22 = vsub.f32 %v5308_v6, %v2171_v17  ;;  %v2175_v21 = vsub.f32 %v5303_v3, %v2172_v10  ;;  %v2179_v26 = vsel %vm796_vm3, %v2176_v19, 0.0 }
 0xb7d   : > { %2180 = vadd.xlane.f32.xlu1 %v2179_v26 }
 0xb7e   : > { %v2177_v27 = vmul.f32 %v2174_v22, %v2174_v22  ;;  %v2178_v11 = vmul.f32 %v2175_v21, %v2175_v21 }
 0xb80   : > { %v2182_v28 = vsel %vm796_vm3, %v2177_v27, 0.0  ;;  %v2185_v29 = vsel %vm790_vm2, %v2178_v11, 0.0 }
 0xb81   : > { %2183 = vadd.xlane.f32.xlu0 %v2182_v28  ;;  %2186 = vadd.xlane.f32.xlu1 %v2185_v29 }
 0xc06   : > { %v2181_v8 = vpop.xlane.xlu1 %2180 }
 0xc07   : > { %v2188_v31 = vmul.f32 0.03125, %v2181_v8 }
 0xc09   : > { %v2191_v14 = vadd.f32 1e-06, %v2188_v31 }
 0xc0a   : > { %v2187_v16 = vpop.xlane.xlu1 %2186  ;;  %v2184_v24 = vpop.xlane.xlu0 %2183 }
 0xc0b   : > { %4418 = vrsqrt.f32 %v2191_v14  ;;  %v2190_v35 = vmul.f32 0.03125, %v2187_v16  ;;  %v2189_v36 = vmul.f32 0.03125, %v2184_v24 }
 0xc0d   : > { %v2193_v20 = vadd.f32 1e-06, %v2190_v35  ;;  %v2192_v38 = vadd.f32 1e-06, %v2189_v36 }
 0xc0f   : > { %4420 = vrsqrt.f32 %v2193_v20 }
 0xc10   : > { %4422 = vrsqrt.f32 %v2192_v38 }
 0xc18   : > { %v4419_v39 = vpop.eup %4418 }
 0xc19   : > { %v2197_v40 = vmul.f32 %v4419_v39, %v2173_v37 }
 0xc1b   : > { %v2206_v44 = vmul.f32 %v3776_v23, %v2197_v40 }
 0xc1c   : > { %v4421_v41 = vpop.eup %4420 }
 0xc1d   : > { %v4423_v42 = vpop.eup %4422  ;;  %v2199_v43 = vmul.f32 %v4421_v41, %v2175_v21  ;;  %v2215_v18 = vadd.f32 %v3777_v15, %v2206_v44 }
 0xc1e   : > { %v2198_v25 = vmul.f32 %v4423_v42, %v2174_v22 }
 0xc1f   : > { %v2208_v45 = vmul.f32 %v3776_v23, %v2199_v43 }
 0xc20   : > { %v2207_v46 = vmul.f32 %v3776_v23, %v2198_v25 }
 0xc21   : > { %v2217_v47 = vadd.f32 %v3777_v15, %v2208_v45 }
 0xc22   : > { %v2216_v49 = vadd.f32 %v3777_v15, %v2207_v46 }
 0xc23   : > { %v2219_v32 = vpack.c.bf16 %v2217_v47, %v2217_v47 }
 0xc24   : > { %v2218_v33 = vpack.c.bf16 %v2216_v49, %v2215_v18 }
 0xc26   : > { %4104 = vmatprep.mubr.msk.bf16.mxu1 %vm796_vm3, %v2218_v33 }
 0xc27   : > { %4105 = vmatmul.mubr.msk.bf16.vlgmr.msra.gmra.mxu1 %vm796_vm3, %v2219_v32 }
 0xce7   : > { %v4106_v51 = vpop.f32.mrf.mxu1 }
 0xce8   : > { %v2294_v53 = vadd.f32 %v4106_v51, %v3782_v50 }
 0xce9   : > { %v2285_v54 = vpop.f32.mrf.mxu1 }
 0xcea   : > { %v5328_v55 = vpack.c.bf16 %v2294_v53, %v2294_v53  ;;  %v2286_v59 = vadd.f32 %v3782_v50, %v2285_v54 }
 0xceb   : > { %v4107_v56 = vpop.f32.mrf.mxu1 }
 0xcec   : > { %2305 = vrot.lane.b32.xlu0 %v5328_v55, %s4709_s24 }
 0xced   : > { %v2288_v58 = vpop.f32.mrf.mxu1 }
 0xcee   : > { %v2289_v60 = vadd.f32 %v3782_v50, %v2288_v58 }
 0xcf0   : > { %v5332_v61 = vpack.c.bf16 %v2289_v60, %v2286_v59 }
 0xcf2   : > { %2307 = vrot.lane.b32.xlu0 %v5332_v61, %s4710_s25  ;;  %2303 = vrot.lane.b32.xlu1 %v5332_v61, %s4709_s24 }
 0xcf3   : > { %4112 = vmatprep.mubr.msk.bf16.mxu1 %vm961_vm4, %v5332_v61 }
 0xcf6   : > { %2317 = vrot.lane.b32.xlu0 %v5328_v55, %s4711_s28  ;;  %2309 = vrot.lane.b32.xlu1 %v5328_v55, %s4710_s25 }
 0xcfa   : > { %2315 = vrot.lane.b32.xlu0 %v5332_v61, %s4711_s28  ;;  %2313 = vrot.lane.b32.xlu1 %v5328_v55, %s4712_s3 }
 0xcfe   : > { %2311 = vrot.lane.b32.xlu1 %v5332_v61, %s4712_s3 }
 0xd5e   : > { %v5350_v62 = vpop.permute.xlu0 %2305 }
 0xd5f   : > { %2381 = vrot.lane.b32.xlu1 %v5350_v62, %s4711_s28 }
 0xd64   : > { %v5354_v63 = vpop.permute.xlu0 %2307  ;;  %v5356_v0 = vpop.permute.xlu1 %2303 }
 0xd65   : > { %4120 = vmatprep.mubr.msk.bf16.mxu0 %vm961_vm4, %v5356_v0  ;;  %2379 = vrot.lane.b32.xlu1 %v5356_v0, %s4711_s28 }
 0xd68   : > { %v2318_v2 = vpop.permute.xlu0 %2317  ;;  %v5362_v4 = vpop.permute.xlu1 %2309 }
 0xd69   : > { %v2329_v5 = vsel %vm961_vm4, %v2318_v2, 0  ;;  %4228 = vmatprep.subr.msk.bf16.mxu1 %vm961_vm4, %v2318_v2  ;;  %2445 = vrot.lane.b32.xlu0 %v5362_v4, %s4711_s28 }
 0xd6a   : > { %4109 = vmatpush3.bf16.xpose.msra.mxu1 %v2329_v5 }
 0xd6c   : > { %v2316_v7 = vpop.permute.xlu0 %2315  ;;  %v5368_v9 = vpop.permute.xlu1 %2313 }
 0xd6d   : > { %4229 = vmatprep.subr.msk.bf16.mxu1 %vm961_vm4, %v2316_v7  ;;  %2443 = vrot.lane.b32.xlu0 %v5354_v63, %s4711_s28  ;;  %v2326_v48 = vsel %vm961_vm4, %v2316_v7, 0 }
 0xd6e   : > { %2509 = vrot.lane.b32.xlu1 %v5368_v9, %s4711_s28 }
 0xd70   : > { %v5375_v34 = vpop.permute.xlu1 %2311 }
 0xd72   : > { %2507 = vrot.lane.b32.xlu1 %v5375_v34, %s4711_s28  ;;  %4111 = vmatpush3.bf16.xpose.msra.mxu1 %v2326_v48  ;;  %s4240_s28 = smul.u32 24, %s5701_s21 }
 0xd74   : > { %s700_s1 = scalar_lea.vmem %s5679_s19, %s4240_s28 }
 0xd79   : > { %4113 = vmatmul.mubr.msk.bf16.vlgmr.msra.gmra.mxu1 %vm961_vm4, %v5328_v55 }
 0xd7a   : > { %4128 = vmatprep.mubr.msk.bf16.mxu1 %vm961_vm4, %v5354_v63 }
 0xdd1   : > { %v2382_v37 = vpop.permute.xlu1 %2381 }
 0xdd2   : > { %v2393_v52 = vsel %vm961_vm4, %v2382_v37, 0  ;;  %4230 = vmatprep.subr.msk.bf16.mxu0 %vm961_vm4, %v2382_v37 }
 0xdd3   : > { %4117 = vmatpush3.bf16.xpose.msra.mxu0 %v2393_v52 }
 0xdd7   : > { %v2380_v12 = vpop.permute.xlu1 %2379 }
 0xdd8   : > { %4231 = vmatprep.subr.msk.bf16.mxu0 %vm961_vm4, %v2380_v12  ;;  %v2390_v17 = vsel %vm961_vm4, %v2380_v12, 0 }
 0xddb   : > { %v2446_v10 = vpop.permute.xlu0 %2445  ;;  %4119 = vmatpush3.bf16.xpose.msra.mxu0 %v2390_v17 }
 0xddc   : > { %v2457_v19 = vsel %vm961_vm4, %v2446_v10, 0  ;;  %4232 = vmatprep.subr.msk.bf16.mxu1 %vm961_vm4, %v2446_v10 }
 0xddd   : > { %4125 = vmatpush3.bf16.xpose.msra.mxu1 %v2457_v19 }
 0xddf   : > { %v2444_v22 = vpop.permute.xlu0 %2443 }
 0xde0   : > { %v2510_v21 = vpop.permute.xlu1 %2509  ;;  %4233 = vmatprep.subr.msk.bf16.mxu1 %vm961_vm4, %v2444_v22  ;;  %v2454_v27 = vsel %vm961_vm4, %v2444_v22, 0 }
 0xde1   : > { %4234 = vmatprep.subr.msk.bf16.mxu0 %vm961_vm4, %v2510_v21  ;;  %v2521_v26 = vsel %vm961_vm4, %v2510_v21, 0 }
 0xde2   : > { %4121 = vmatmul.mubr.msk.bf16.vlgmr.msra.gmra.mxu0 %vm961_vm4, %v5350_v62 }
 0xde3   : > { %4133 = vmatpush3.bf16.xpose.msra.mxu0 %v2521_v26  ;;  %4136 = vmatprep.mubr.msk.bf16.mxu0 %vm961_vm4, %v5375_v34 }
 0xde4   : > { %v2508_v11 = vpop.permute.xlu1 %2507 }
 0xde5   : > { %4235 = vmatprep.subr.msk.bf16.mxu0 %vm961_vm4, %v2508_v11  ;;  %4127 = vmatpush3.bf16.xpose.msra.mxu1 %v2454_v27  ;;  %v2518_v28 = vsel %vm961_vm4, %v2508_v11, 0 }
 0xdeb   : > { %4135 = vmatpush3.bf16.xpose.msra.mxu0 %v2518_v28 }
 0xdec   : > { %4129 = vmatmul.mubr.msk.bf16.vlgmr.msra.gmra.mxu1 %vm961_vm4, %v5362_v4 }
 0xdf2   : > { %4137 = vmatmul.mubr.msk.bf16.vlgmr.msra.gmra.mxu0 %vm961_vm4, %v5368_v9 }
 0xe39   : > { %v4114_v29 = vpop.f32.mrf.mxu1 }
 0xe3a   : > { %v2573_v13 = vmul.f32 0.35355338, %v4114_v29 }
 0xe3b   : > { %v2365_v30 = vpop.f32.mrf.mxu1 }
 0xe3c   : > { %v2571_v8 = vmul.f32 0.35355338, %v2365_v30  ;;  %v2589_v31 = vsel %vm1233_vm5, %v2573_v13, -inf }
 0xe3d   : > { %2590 = vmax.xlane.f32.xlu0 %v2589_v31  ;;  %v4115_v14 = vpop.f32.mrf.mxu1 }
 0xe3e   : > { %v2583_v35 = vsel %vm1226_vm6, %v2571_v8, -inf }
 0xe3f   : > { %v2368_v16 = vpop.f32.mrf.mxu1 }
 0xe40   : > { %v2572_v24 = vmul.f32 0.35355338, %v2368_v16 }
 0xe41   : > { %2584 = vmax.xlane.f32.xlu0 %v2583_v35 }
 0xe42   : > { %v2586_v36 = vsel %vm1226_vm6, %v2572_v24, -inf }
 0xe43   : > { %2587 = vmax.xlane.f32.xlu1 %v2586_v36 }
 0xea2   : > { %v4122_v20 = vpop.f32.mrf.mxu0 }
 0xea3   : > { %v5407_v38 = vmul.f32 0.35355338, %v4122_v20 }
 0xea4   : > { %v2429_v39 = vpop.f32.mrf.mxu0 }
 0xea5   : > { %v5409_v40 = vmul.f32 0.35355338, %v2429_v39  ;;  %v2598_v23 = vsel %vm1233_vm5, %v5407_v38, -inf }
 0xea6   : > { %v4123_v41 = vpop.f32.mrf.mxu0  ;;  %2599 = vmax.xlane.f32.xlu1 %v2598_v23 }
 0xea7   : > { %v2592_v42 = vsel %vm1226_vm6, %v5409_v40, -inf }
 0xea8   : > { %2593 = vmax.xlane.f32.xlu0 %v2592_v42  ;;  %v2432_v25 = vpop.f32.mrf.mxu0 }
 0xea9   : > { %v5417_v46 = vmul.f32 0.35355338, %v2432_v25 }
 0xeab   : > { %v2595_v53 = vsel %vm1226_vm6, %v5417_v46, -inf }
 0xeac   : > { %v4130_v43 = vpop.f32.mrf.mxu1 }
 0xead   : > { %v5421_v50 = vmul.f32 0.35355338, %v4130_v43 }
 0xeae   : > { %v2493_v44 = vpop.f32.mrf.mxu1 }
 0xeaf   : > { %v5415_v15 = vmul.f32 0.35355338, %v2493_v44  ;;  %v2607_v2 = vsel %vm1233_vm5, %v5421_v50, -inf }
 0xeb0   : > { %v4131_v45 = vpop.f32.mrf.mxu1 }
 0xeb1   : > { %v2601_v47 = vsel %vm1226_vm6, %v5415_v15, -inf }
 0xeb2   : > { %v4138_v18 = vpop.f32.mrf.mxu0  ;;  %2602 = vmax.xlane.f32.xlu0 %v2601_v47  ;;  %v2496_v49 = vpop.f32.mrf.mxu1 }
 0xeb3   : > { %v2578_v32 = vmul.f32 0.35355338, %v2496_v49  ;;  %v5428_v59 = vmul.f32 0.35355338, %v4138_v18 }
 0xeb4   : > { %v2557_v33 = vpop.f32.mrf.mxu0 }
 0xeb5   : > { %v5423_v51 = vmul.f32 0.35355338, %v2557_v33  ;;  %v2604_v54 = vsel %vm1226_vm6, %v2578_v32, -inf  ;;  %v2616_v48 = vsel %vm1233_vm5, %v5428_v59, -inf }
 0xeb6   : > { %v4139_v56 = vpop.f32.mrf.mxu0  ;;  %2596 = vmax.xlane.f32.xlu0 %v2595_v53  ;;  %2605 = vmax.xlane.f32.xlu1 %v2604_v54 }
 0xeb7   : > { %v2610_v5 = vsel %vm1226_vm6, %v5423_v51, -inf }
 0xeb8   : > { %v2560_v58 = vpop.f32.mrf.mxu0 }
 0xeb9   : > { %v5430_v60 = vmul.f32 0.35355338, %v2560_v58 }
 0xeba   : > { %2608 = vmax.xlane.f32.xlu0 %v2607_v2  ;;  %2611 = vmax.xlane.f32.xlu1 %v2610_v5 }
 0xebb   : > { %v2613_v7 = vsel %vm1226_vm6, %v5430_v60, -inf }
 0xebe   : > { %2614 = vmax.xlane.f32.xlu0 %v2613_v7  ;;  %2617 = vmax.xlane.f32.xlu1 %v2616_v48 }
 0xec6   : > { %v2591_v37 = vpop.xlane.xlu0 %2590 }
 0xec7   : > { %v2621_v52 = vsub.f32 %v2573_v13, %v2591_v37 }
 0xec9   : > { %v2635_v17 = vmul.f32 1.442695, %v2621_v52 }
 0xeca   : > { %v2585_v12 = vpop.xlane.xlu0 %2584 }
 0xecb   : > { %4424 = vpow2.f32 %v2635_v17 }
 0xecc   : > { %v2588_v10 = vpop.xlane.xlu1 %2587 }
 0xecd   : > { %v2620_v19 = vsub.f32 %v2572_v24, %v2588_v10 }
 0xecf   : > { %2787 = vrot.lane.b32.xlu1 %v5350_v62, %s4713_s2  ;;  %v2619_v62 = vsub.f32 %v2571_v8, %v2585_v12 }
 0xed3   : > { %2723 = vrot.lane.b32.xlu1 %v5332_v61, %s4713_s2  ;;  %v2631_v61 = vmul.f32 1.442695, %v2619_v62 }
 0xed4   : > { %2725 = vrot.lane.b32.xlu0 %v5328_v55, %s4713_s2  ;;  %v2633_v55 = vmul.f32 1.442695, %v2620_v19 }
 0xed5   : > { %4426 = vpow2.f32 %v2631_v61 }
 0xed6   : > { %4428 = vpow2.f32 %v2633_v55 }
 0xed7   : > { %2785 = vrot.lane.b32.xlu1 %v5356_v0, %s4713_s2 }
 0xed8   : > { %2849 = vrot.lane.b32.xlu0 %v5362_v4, %s4713_s2  ;;  %v5452_v22 = vpop.eup %4424 }
 0xed9   : > { %v2661_v0 = vsel %vm1233_vm5, %v5452_v22, 0.0 }
 0xedb   : > { %2911 = vrot.lane.b32.xlu1 %v5368_v9, %s4713_s2 }
 0xee2   : > { %v5456_v4 = vpop.eup %4426 }
 0xee3   : > { %v2655_v9 = vsel %vm1226_vm6, %v5456_v4, 0.0  ;;  %v5460_v21 = vpop.eup %4428 }
 0xee4   : > { %v2658_v26 = vsel %vm1226_vm6, %v5460_v21, 0.0 }
 0xef7   : > { %2662 = vadd.xlane.f32.xlu0 %v2661_v0 }
 0xefb   : > { %2656 = vadd.xlane.f32.xlu0 %v2655_v9 }
 0xeff   : > { %2659 = vadd.xlane.f32.xlu1 %v2658_v26 }
 0xf2f   : > { %v2600_v27 = vpop.xlane.xlu1 %2599 }
 0xf30   : > { %v2624_v11 = vsub.f32 %v5407_v38, %v2600_v27 }
 0xf31   : > { %v2594_v28 = vpop.xlane.xlu0 %2593 }
 0xf32   : > { %v2641_v29 = vmul.f32 1.442695, %v2624_v11  ;;  %v2622_v13 = vsub.f32 %v5409_v40, %v2594_v28 }
 0xf34   : > { %4430 = vpow2.f32 %v2641_v29  ;;  %v2637_v30 = vmul.f32 1.442695, %v2622_v13 }
 0xf36   : > { %4432 = vpow2.f32 %v2637_v30 }
 0xf3b   : > { %v2603_v8 = vpop.xlane.xlu0 %2602 }
 0xf3c   : > { %v2625_v35 = vsub.f32 %v5415_v15, %v2603_v8 }
 0xf3e   : > { %v2643_v41 = vmul.f32 1.442695, %v2625_v35 }
 0xf3f   : > { %v2597_v31 = vpop.xlane.xlu0 %2596  ;;  %v2606_v14 = vpop.xlane.xlu1 %2605 }
 0xf40   : > { %v2626_v16 = vsub.f32 %v2578_v32, %v2606_v14  ;;  %v2623_v42 = vsub.f32 %v5417_v46, %v2597_v31 }
 0xf41   : > { %v5466_v24 = vpop.eup %4430 }
 0xf42   : > { %v2645_v36 = vmul.f32 1.442695, %v2626_v16  ;;  %v2670_v20 = vsel %vm1233_vm5, %v5466_v24, 0.0  ;;  %v2639_v18 = vmul.f32 1.442695, %v2623_v42 }
 0xf43   : > { %v5471_v38 = vpop.eup %4432  ;;  %v2609_v39 = vpop.xlane.xlu0 %2608  ;;  %2671 = vadd.xlane.f32.xlu1 %v2670_v20  ;;  %v3803_v42 = vld [vmem:[%s5669_s9 + $0x10] sm:$0xf] }
 0xf44   : > { %v2612_v40 = vpop.xlane.xlu1 %2611  ;;  %v2627_v23 = vsub.f32 %v5421_v50, %v2609_v39  ;;  %4434 = vpow2.f32 %v2645_v36  ;;  %v2664_v25 = vsel %vm1226_vm6, %v5471_v38, 0.0 }
 0xf45   : > { %v2628_v44 = vsub.f32 %v5423_v51, %v2612_v40 }
 0xf46   : > { %v2647_v43 = vmul.f32 1.442695, %v2627_v23 }
 0xf47   : > { %v2615_v15 = vpop.xlane.xlu0 %2614  ;;  %2665 = vadd.xlane.f32.xlu1 %v2664_v25  ;;  %v2649_v33 = vmul.f32 1.442695, %v2628_v44 }
 0xf48   : > { %v2618_v45 = vpop.xlane.xlu1 %2617  ;;  %4436 = vpow2.f32 %v2647_v43  ;;  %v2629_v49 = vsub.f32 %v5430_v60, %v2615_v15 }
 0xf49   : > { %v2630_v47 = vsub.f32 %v5428_v59, %v2618_v45  ;;  %4438 = vpow2.f32 %v2643_v41 }
 0xf4a   : > { %v2651_v51 = vmul.f32 1.442695, %v2629_v49 }
 0xf4b   : > { %v2653_v32 = vmul.f32 1.442695, %v2630_v47  ;;  %v2726_v50 = vpop.permute.xlu0 %2725 }
 0xf4c   : > { %v2788_v46 = vpop.permute.xlu1 %2787  ;;  %v2735_v53 = vand.u32 %v2726_v50, %v5145_v57  ;;  %v2991_v50 = vsel %vm1637_vm8, %v3803_v42, 0 }
 0xf4d   : > { %v2797_v54 = vand.u32 %v2788_v46, %v5145_v57  ;;  %4440 = vpow2.f32 %v2653_v32 }
 0xf4e   : > { %4442 = vpow2.f32 %v2639_v18  ;;  %4140 = vmatprep.subr.bf16.mxu1 %v2735_v53 }
 0xf4f   : > { %4148 = vmatprep.subr.bf16.mxu0 %v2797_v54  ;;  %4444 = vpow2.f32 %v2649_v33  ;;  %4141 = vmatpush3.bf16.msra.mxu1 %v2735_v53  ;;  %v2850_v58 = vpop.permute.xlu0 %2849 }
 0xf50   : > { %4149 = vmatpush3.bf16.msra.mxu0 %v2797_v54  ;;  %v2724_v56 = vpop.permute.xlu1 %2723  ;;  %4446 = vpow2.f32 %v2651_v51  ;;  %v2859_v60 = vand.u32 %v2850_v58, %v5145_v57 }
 0xf51   : > { %4142 = vmatprep.subr.bf16.mxu1 %v2724_v56  ;;  %v5482_v59 = vpop.eup %4434 }
 0xf52   : > { %v2676_v2 = vsel %vm1226_vm6, %v5482_v59, 0.0 }
 0xf53   : > { %4143 = vmatpush3.bf16.msra.mxu1 %v2724_v56  ;;  %2677 = vadd.xlane.f32.xlu1 %v2676_v2 }
 0xf54   : > { %v2786_v5 = vpop.permute.xlu1 %2785  ;;  %4156 = vmatprep.subr.bf16.mxu1 %v2859_v60 }
 0xf55   : > { %4150 = vmatprep.subr.bf16.mxu0 %v2786_v5  ;;  %v5487_v7 = vpop.eup %4436 }
 0xf56   : > { %4151 = vmatpush3.bf16.msra.mxu0 %v2786_v5  ;;  %v2679_v48 = vsel %vm1233_vm5, %v5487_v7, 0.0  ;;  %v5491_v37 = vpop.eup %4438 }
 0xf57   : > { %2680 = vadd.xlane.f32.xlu0 %v2679_v48  ;;  %v2673_v62 = vsel %vm1226_vm6, %v5491_v37, 0.0  ;;  %v3804_v48 = vld [vmem:[%s5669_s9 + $0x14] sm:$0xf] }
 0xf58   : > { %v2912_v52 = vpop.permute.xlu1 %2911 }
 0xf59   : > { %v5494_v12 = vand.u32 %v2912_v52, %v5145_v57  ;;  %v3048_v52 = vsel %vm1637_vm8, %v3804_v48, 0 }
 0xf5a   : > { %v5496_v17 = vpop.eup %4440 }
 0xf5b   : > { %4164 = vmatprep.subr.bf16.mxu0 %v5494_v12  ;;  %v5501_v10 = vpop.eup %4442  ;;  %2674 = vadd.xlane.f32.xlu0 %v2673_v62  ;;  %v2688_v61 = vsel %vm1233_vm5, %v5496_v17, 0.0 }
 0xf5c   : > { %v5505_v19 = vpop.eup %4444  ;;  %2689 = vadd.xlane.f32.xlu1 %v2688_v61  ;;  %v2667_v57 = vsel %vm1226_vm6, %v5501_v10, 0.0 }
 0xf5d   : > { %v5509_v55 = vpop.eup %4446  ;;  %v2682_v0 = vsel %vm1226_vm6, %v5505_v19, 0.0 }
 0xf5e   : > { %v2685_v9 = vsel %vm1226_vm6, %v5509_v55, 0.0 }
 0xf5f   : > { %2668 = vadd.xlane.f32.xlu0 %v2667_v57 }
 0xf60   : > { %2683 = vadd.xlane.f32.xlu1 %v2682_v0 }
 0xf63   : > { %2686 = vadd.xlane.f32.xlu0 %v2685_v9 }
 0xf71   : > { %2909 = vrot.lane.b32.xlu1 %v5375_v34, %s4713_s2 }
 0xf79   : > { %2847 = vrot.lane.b32.xlu0 %v5354_v63, %s4713_s2 }
 0xf80   : > { %v2663_v26 = vpop.xlane.xlu0 %2662 }
 0xf81   : > { %4448 = vrcp.f32 %v2663_v26 }
 0xf84   : > { %v2657_v27 = vpop.xlane.xlu0 %2656 }
 0xf85   : > { %4450 = vrcp.f32 %v2657_v27 }
 0xf88   : > { %v2660_v11 = vpop.xlane.xlu1 %2659 }
 0xf89   : > { %4452 = vrcp.f32 %v2660_v11 }
 0xf8e   : > { %v4449_v28 = vpop.eup %4448 }
 0xf8f   : > { %v2705_v30 = vmul.f32 %v4449_v28, %v5452_v22 }
 0xf91   : > { %v2716_v34 = vpack.c.bf16 %v2705_v30, %v2705_v30 }
 0xf92   : > { %v4451_v29 = vpop.eup %4450 }
 0xf93   : > { %v2703_v8 = vmul.f32 %v4451_v29, %v5456_v4 }
 0xf96   : > { %v4453_v13 = vpop.eup %4452 }
 0xf97   : > { %v2704_v31 = vmul.f32 %v4453_v13, %v5460_v21 }
 0xf99   : > { %v2715_v14 = vpack.c.bf16 %v2704_v31, %v2703_v8 }
 0xf9b   : > { %4144 = vmatprep.mubr.msk.bf16.mxu1 %vm1226_vm6, %v2715_v14 }
 0xf9c   : > { %4145 = vmatmul.mubr.msk.bf16.vlgmr.msra.gmra.mxu1 %vm1226_vm6, %v2716_v34 }
 0xf9d   : > { %4157 = vmatpush3.bf16.msra.mxu1 %v2859_v60 }
 0xfcc   : > { %v2672_v63 = vpop.xlane.xlu1 %2671 }
 0xfd0   : > { %v2666_v16 = vpop.xlane.xlu1 %2665 }
 0xfdc   : > { %v2678_v35 = vpop.xlane.xlu1 %2677 }
 0xfe0   : > { %v2681_v36 = vpop.xlane.xlu0 %2680 }
 0xfe1   : > { %4454 = vrcp.f32 %v2681_v36 }
 0xfe2   : > { %4456 = vrcp.f32 %v2678_v35 }
 0xfe4   : > { %v2675_v20 = vpop.xlane.xlu0 %2674 }
 0xfe5   : > { %4458 = vrcp.f32 %v2675_v20  ;;  %v2690_v22 = vpop.xlane.xlu1 %2689 }
 0xfe6   : > { %4460 = vrcp.f32 %v2672_v63 }
 0xfe7   : > { %4462 = vrcp.f32 %v2666_v16 }
 0xfe8   : > { %v2669_v4 = vpop.xlane.xlu0 %2668 }
 0xfe9   : > { %4464 = vrcp.f32 %v2669_v4  ;;  %v2684_v21 = vpop.xlane.xlu1 %2683 }
 0xfea   : > { %4466 = vrcp.f32 %v2684_v21 }
 0xfec   : > { %v2687_v39 = vpop.xlane.xlu0 %2686 }
 0xfed   : > { %4468 = vrcp.f32 %v2687_v39  ;;  %v2910_v2 = vpop.permute.xlu1 %2909 }
 0xfee   : > { %4470 = vrcp.f32 %v2690_v22  ;;  %v4455_v40 = vpop.eup %4454 }
 0xfef   : > { %v4457_v23 = vpop.eup %4456  ;;  %v2711_v25 = vmul.f32 %v4455_v40, %v5487_v7 }
 0xff0   : > { %v2848_v41 = vpop.permute.xlu0 %2847  ;;  %v2710_v45 = vmul.f32 %v4457_v23, %v5482_v59 }
 0xff1   : > { %4158 = vmatprep.subr.bf16.mxu1 %v2848_v41  ;;  %v2720_v32 = vpack.c.bf16 %v2711_v25, %v2711_v25 }
 0xff2   : > { %v4459_v43 = vpop.eup %4458  ;;  %4159 = vmatpush3.bf16.msra.mxu1 %v2848_v41 }
 0xff3   : > { %v4461_v44 = vpop.eup %4460  ;;  %v2709_v15 = vmul.f32 %v4459_v43, %v5491_v37  ;;  %4236 = vmatprep.subr.msk.bf16.mxu1 %vm1637_vm8, %v3803_v42  ;;  %v3805_v37 = vld [vmem:[%s5669_s9 + $0x18] sm:$0xf] }
 0xff4   : > { %v4463_v47 = vpop.eup %4462  ;;  %v2708_v33 = vmul.f32 %v4461_v44, %v5466_v24 }
 0xff5   : > { %v2719_v18 = vpack.c.bf16 %v2710_v45, %v2709_v15  ;;  %v2706_v46 = vmul.f32 %v4463_v47, %v5471_v38 }
 0xff6   : > { %v4465_v49 = vpop.eup %4464  ;;  %v2718_v58 = vpack.c.bf16 %v2708_v33, %v2708_v33 }
 0xff7   : > { %4160 = vmatprep.mubr.msk.bf16.mxu1 %vm1226_vm6, %v2719_v18  ;;  %v2707_v53 = vmul.f32 %v4465_v49, %v5501_v10  ;;  %v4467_v54 = vpop.eup %4466 }
 0xff8   : > { %4161 = vmatmul.mubr.msk.bf16.vlgmr.msra.gmra.mxu1 %vm1226_vm6, %v2720_v32  ;;  %v2712_v24 = vmul.f32 %v4467_v54, %v5505_v19 }
 0xff9   : > { %v2717_v51 = vpack.c.bf16 %v2707_v53, %v2706_v46  ;;  %4173 = vmatpush3.bf16.msra.mxu1 %v2991_v50 }
 0xffa   : > { %v4469_v56 = vpop.eup %4468  ;;  %4238 = vmatprep.subr.msk.bf16.mxu1 %vm1637_vm8, %v3805_v37 }
 0xffb   : > { %v4471_v59 = vpop.eup %4470  ;;  %4152 = vmatprep.mubr.msk.bf16.mxu0 %vm1226_vm6, %v2717_v51  ;;  %v2713_v60 = vmul.f32 %v4469_v56, %v5509_v55  ;;  %v3105_v55 = vsel %vm1637_vm8, %v3805_v37, 0 }
 0xffc   : > { %4153 = vmatmul.mubr.msk.bf16.vlgmr.msra.gmra.mxu0 %vm1226_vm6, %v2718_v58  ;;  %v2714_v5 = vmul.f32 %v4471_v59, %v5496_v17 }
 0xffd   : > { %4165 = vmatpush3.bf16.msra.mxu0 %v5494_v12  ;;  %v2721_v38 = vpack.c.bf16 %v2713_v60, %v2712_v24  ;;  %v3806_v12 = vld [vmem:[%s5669_s9 + $0x1c] sm:$0xf] }
 0xffe   : > { %4166 = vmatprep.subr.bf16.mxu0 %v2910_v2  ;;  %v2722_v7 = vpack.c.bf16 %v2714_v5, %v2714_v5  ;;  %v3162_v63 = vsel %vm1637_vm8, %v3806_v12, 0 }
 0xfff   : > { %4168 = vmatprep.mubr.msk.bf16.mxu0 %vm1226_vm6, %v2721_v38 }
0x1001   : > { %4167 = vmatpush3.bf16.msra.mxu0 %v2910_v2 }
0x1002   : > { %4237 = vmatprep.subr.msk.bf16.mxu0 %vm1637_vm8, %v3804_v48 }
0x1004   : > { %4169 = vmatmul.mubr.msk.bf16.vlgmr.msra.gmra.mxu0 %vm1226_vm6, %v2722_v7 }
0x1005   : > { %4179 = vmatpush3.bf16.msra.mxu0 %v3048_v52 }
0x1006   : > { %4239 = vmatprep.subr.msk.bf16.mxu0 %vm1637_vm8, %v3806_v12 }
0x105c   : > { %v4146_v17 = vpop.f32.mrf.mxu1 }
0x105d   : > { %v2972_v57 = vpack.c.bf16 %v4146_v17, %v4146_v17 }
0x105e   : > { %v2771_v62 = vpop.f32.mrf.mxu1 }
0x1060   : > { %v4147_v10 = vpop.f32.mrf.mxu1 }
0x1061   : > { %v3816_v10 = vld [vmem:[%s5670_s10 + $0x1] ss:$0 sm:$0xff] }
0x1062   : > { %v2774_v61 = vpop.f32.mrf.mxu1 }
0x1063   : > { %v2971_v19 = vpack.c.bf16 %v2774_v61, %v2771_v62 }
0x1065   : > { %4174 = vmatprep.mubr.msk.bf16.mxu1 %vm961_vm4, %v2971_v19 }
0x1066   : > { %4175 = vmatmul.mubr.msk.bf16.vlgmr.msra.gmra.mxu1 %vm961_vm4, %v2972_v57 }
0x1067   : > { %4185 = vmatpush3.bf16.msra.mxu1 %v3105_v55 }
0x10b8   : > { %v4162_v0 = vpop.f32.mrf.mxu1 }
0x10b9   : > { %v2976_v13 = vpack.c.bf16 %v4162_v0, %v4162_v0 }
0x10ba   : > { %v2895_v9 = vpop.f32.mrf.mxu1 }
0x10bc   : > { %v4154_v26 = vpop.f32.mrf.mxu0  ;;  %v4163_v27 = vpop.f32.mrf.mxu1 }
0x10bd   : > { %v2974_v14 = vpack.c.bf16 %v4154_v26, %v4154_v26 }
0x10be   : > { %v2833_v11 = vpop.f32.mrf.mxu0  ;;  %v2898_v28 = vpop.f32.mrf.mxu1 }
0x10bf   : > { %v2975_v29 = vpack.c.bf16 %v2898_v28, %v2895_v9 }
0x10c0   : > { %v4155_v30 = vpop.f32.mrf.mxu0 }
0x10c1   : > { %4186 = vmatprep.mubr.msk.bf16.mxu1 %vm961_vm4, %v2975_v29 }
0x10c2   : > { %v2836_v8 = vpop.f32.mrf.mxu0  ;;  %4187 = vmatmul.mubr.msk.bf16.vlgmr.msra.gmra.mxu1 %vm961_vm4, %v2976_v13 }
0x10c3   : > { %v2973_v31 = vpack.c.bf16 %v2836_v8, %v2833_v11 }
0x10c4   : > { %v4170_v34 = vpop.f32.mrf.mxu0 }
0x10c5   : > { %4180 = vmatprep.mubr.msk.bf16.mxu0 %vm961_vm4, %v2973_v31  ;;  %v2978_v22 = vpack.c.bf16 %v4170_v34, %v4170_v34 }
0x10c6   : > { %v2957_v16 = vpop.f32.mrf.mxu0  ;;  %4181 = vmatmul.mubr.msk.bf16.vlgmr.msra.gmra.mxu0 %vm961_vm4, %v2974_v14 }
0x10c7   : > { %4191 = vmatpush3.bf16.msra.mxu0 %v3162_v63 }
0x10c8   : > { %v4171_v35 = vpop.f32.mrf.mxu0 }
0x10ca   : > { %v2960_v36 = vpop.f32.mrf.mxu0 }
0x10cb   : > { %v2977_v20 = vpack.c.bf16 %v2960_v36, %v2957_v16 }
0x10cd   : > { %4192 = vmatprep.mubr.msk.bf16.mxu0 %vm961_vm4, %v2977_v20  ;;  %v4346_v20 = vld [vmem:[%s5673_s13 + $0x18] sm:$0xff]  }
0x10ce   : > { %4193 = vmatmul.mubr.msk.bf16.vlgmr.msra.gmra.mxu0 %vm961_vm4, %v2978_v22  ;;  %v4347_v22 = vld [vmem:[%s5673_s13 + $0x10] sm:$0xff]   ;;  %4196 = vmatprep.subr.bf16.mxu1 %v4346_v20 }
0x10cf   : > { %4197 = vmatpush3.bf16.msra.mxu1 %v4346_v20 }
0x10d0   : > { %4198 = vmatprep.subr.bf16.mxu1 %v4347_v22 }
0x10d3   : > { %4199 = vmatpush3.bf16.msra.mxu1 %v4347_v22 }
0x1126   : > { %v4176_v4 = vpop.f32.mrf.mxu1 }
0x1127   : > { %v3226_v15 = vsel %vm790_vm2, %v4176_v4, 0.0 }
0x1128   : > { %v3027_v21 = vpop.f32.mrf.mxu1 }
0x1129   : > { %v3212_v49 = vsel %vm796_vm3, %v3027_v21, 0.0 }
0x112a   : > { %v4177_v39 = vpop.f32.mrf.mxu1 }
0x112c   : > { %v3030_v40 = vpop.f32.mrf.mxu1 }
0x112d   : > { %v3219_v51 = vsel %vm796_vm3, %v3030_v40, 0.0 }
0x1182   : > { %v4188_v23 = vpop.f32.mrf.mxu1 }
0x1183   : > { %v3229_v50 = vsel %vm790_vm2, %v4188_v23, 0.0 }
0x1184   : > { %v3141_v41 = vpop.f32.mrf.mxu1 }
0x1185   : > { %v3215_v56 = vsel %vm796_vm3, %v3141_v41, 0.0 }
0x1186   : > { %v4182_v42 = vpop.f32.mrf.mxu0  ;;  %v4189_v43 = vpop.f32.mrf.mxu1 }
0x1187   : > { %v3227_v25 = vsel %vm790_vm2, %v4182_v42, 0.0 }
0x1188   : > { %v3084_v44 = vpop.f32.mrf.mxu0  ;;  %v3228_v47 = vadd.f32 %v3227_v25, %v3226_v15  ;;  %v3144_v59 = vpop.f32.mrf.mxu1 }
0x1189   : > { %v3213_v45 = vsel %vm796_vm3, %v3084_v44, 0.0  ;;  %v3222_v37 = vsel %vm796_vm3, %v3144_v59, 0.0 }
0x118a   : > { %v4183_v18 = vpop.f32.mrf.mxu0  ;;  %v3214_v32 = vadd.f32 %v3213_v45, %v3212_v49  ;;  %v3230_v54 = vadd.f32 %v3229_v50, %v3228_v47  ;;  %v3818_v45 = vld [vmem:[%s5671_s11 + $0x1] ss:$0 sm:$0xff]  ;;  %v3819_v50 = vld [vmem:[#allocation13 + $0x1] ss:$0 sm:$0xff] }
0x118c   : > { %v3087_v33 = vpop.f32.mrf.mxu0  ;;  %v3216_v38 = vadd.f32 %v3215_v56, %v3214_v32 }
0x118d   : > { %v3220_v46 = vsel %vm796_vm3, %v3087_v33, 0.0 }
0x118e   : > { %v4194_v53 = vpop.f32.mrf.mxu0  ;;  %v3221_v24 = vadd.f32 %v3220_v46, %v3219_v51 }
0x118f   : > { %v3231_v58 = vsel %vm790_vm2, %v4194_v53, 0.0 }
0x1190   : > { %v3232_v60 = vadd.f32 %v3231_v58, %v3230_v54  ;;  %v3198_v2 = vpop.f32.mrf.mxu0  ;;  %v3223_v62 = vadd.f32 %v3222_v37, %v3221_v24  ;;  %v4348_v24 = vld [vmem:[%s5675_s15 + $0x38] sm:$0xff]  }
0x1191   : > { %v3217_v5 = vsel %vm796_vm3, %v3198_v2, 0.0  ;;  %4204 = vmatprep.subr.bf16.mxu0 %v4348_v24  ;;  %v4350_v2 = vld [vmem:[%s5675_s15 + $0x28] sm:$0xff]  }
0x1192   : > { %v3218_v7 = vadd.f32 %v3217_v5, %v3216_v38  ;;  %v4195_v48 = vpop.f32.mrf.mxu0  ;;  %v3235_v52 = vadd.f32 %v3232_v60, %v5303_v3  ;;  %4205 = vmatpush3.bf16.msra.mxu0 %v4348_v24  ;;  %v4349_v60 = vld [vmem:[%s5675_s15 + $0x30] sm:$0xff]   ;;  %v4351_v38 = vld [vmem:[%s5675_s15 + $0x20] sm:$0xff]  }
0x1193   : > { %4206 = vmatprep.subr.bf16.mxu0 %v4349_v60  ;;  %v3825_v5 = vld [vmem:[%s5674_s14 + $0x1] ss:$0 sm:$0xff] }
0x1194   : > { %v3233_v12 = vadd.f32 %v3218_v7, %v5300_v1  ;;  %v3201_v17 = vpop.f32.mrf.mxu0  ;;  %v5587_v55 = vadd.f32 %v3816_v10, %v3235_v52 }
0x1195   : > { %v3224_v61 = vsel %vm796_vm3, %v3201_v17, 0.0 }
0x1196   : > { %v5585_v19 = vadd.f32 %v3816_v10, %v3233_v12  ;;  %v3225_v57 = vadd.f32 %v3224_v61, %v3223_v62  ;;  %v3257_v9 = vsel %vm790_vm2, %v5587_v55, 0.0  ;;  %4207 = vmatpush3.bf16.msra.mxu0 %v4349_v60 }
0x1197   : > { %4208 = vmatprep.subr.bf16.mxu0 %v4350_v2 }
0x1198   : > { %v3234_v0 = vadd.f32 %v3225_v57, %v5308_v6  ;;  %v3251_v3 = vsel %vm796_vm3, %v5585_v19, 0.0 }
0x1199   : > { %3252 = vadd.xlane.f32.xlu0 %v3251_v3 }
0x119a   : > { %v5592_v1 = vadd.f32 %v3816_v10, %v3234_v0  ;;  %4209 = vmatpush3.bf16.msra.mxu0 %v4350_v2 }
0x119b   : > { %4210 = vmatprep.subr.bf16.mxu0 %v4351_v38 }
0x119c   : > { %v3254_v26 = vsel %vm796_vm3, %v5592_v1, 0.0 }
0x119d   : > { %3258 = vadd.xlane.f32.xlu0 %v3257_v9  ;;  %3255 = vadd.xlane.f32.xlu1 %v3254_v26 }
0x119e   : > { %4211 = vmatpush3.bf16.msra.mxu0 %v4351_v38 }
0x1222   : > { %v3253_v27 = vpop.xlane.xlu0 %3252 }
0x1223   : > { %v3260_v11 = vmul.f32 0.03125, %v3253_v27 }
0x1225   : > { %v3263_v28 = vsub.f32 %v5585_v19, %v3260_v11 }
0x1226   : > { %v3259_v29 = vpop.xlane.xlu0 %3258  ;;  %v3256_v6 = vpop.xlane.xlu1 %3255 }
0x1227   : > { %v3262_v13 = vmul.f32 0.03125, %v3259_v29  ;;  %v3261_v30 = vmul.f32 0.03125, %v3256_v6  ;;  %v3266_v8 = vmul.f32 %v3263_v28, %v3263_v28 }
0x1229   : > { %v3265_v31 = vsub.f32 %v5587_v55, %v3262_v13  ;;  %v3264_v14 = vsub.f32 %v5592_v1, %v3261_v30  ;;  %v3269_v34 = vsel %vm796_vm3, %v3266_v8, 0.0 }
0x122a   : > { %3270 = vadd.xlane.f32.xlu0 %v3269_v34 }
0x122b   : > { %v3268_v63 = vmul.f32 %v3265_v31, %v3265_v31  ;;  %v3267_v16 = vmul.f32 %v3264_v14, %v3264_v14 }
0x122d   : > { %v3275_v35 = vsel %vm790_vm2, %v3268_v63, 0.0  ;;  %v3272_v36 = vsel %vm796_vm3, %v3267_v16, 0.0 }
0x122e   : > { %3276 = vadd.xlane.f32.xlu1 %v3275_v35  ;;  %3273 = vadd.xlane.f32.xlu0 %v3272_v36 }
0x12b3   : > { %v3271_v4 = vpop.xlane.xlu0 %3270 }
0x12b4   : > { %v3278_v21 = vmul.f32 0.03125, %v3271_v4 }
0x12b6   : > { %v3281_v39 = vadd.f32 1e-06, %v3278_v21 }
0x12b7   : > { %v3274_v40 = vpop.xlane.xlu0 %3273  ;;  %v3277_v23 = vpop.xlane.xlu1 %3276 }
0x12b8   : > { %4472 = vrsqrt.f32 %v3281_v39  ;;  %v3279_v41 = vmul.f32 0.03125, %v3274_v40  ;;  %v3280_v42 = vmul.f32 0.03125, %v3277_v23 }
0x12ba   : > { %v3282_v43 = vadd.f32 1e-06, %v3279_v41  ;;  %v3283_v25 = vadd.f32 1e-06, %v3280_v42  ;;  %v3839_v42 = vld [vmem:[%s5676_s16 + $0x1] ss:$0 sm:$0xff] }
0x12bc   : > { %4474 = vrsqrt.f32 %v3282_v43 }
0x12bd   : > { %4476 = vrsqrt.f32 %v3283_v25 }
0x12c5   : > { %v4473_v44 = vpop.eup %4472 }
0x12c6   : > { %v3287_v15 = vmul.f32 %v4473_v44, %v3263_v28 }
0x12c8   : > { %v3296_v32 = vmul.f32 %v3818_v45, %v3287_v15 }
0x12c9   : > { %v4475_v47 = vpop.eup %4474 }
0x12ca   : > { %v4477_v18 = vpop.eup %4476  ;;  %v3288_v49 = vmul.f32 %v4475_v47, %v3264_v14  ;;  %v3305_v54 = vadd.f32 %v3819_v50, %v3296_v32 }
0x12cb   : > { %v3289_v33 = vmul.f32 %v4477_v18, %v3265_v31 }
0x12cc   : > { %v3297_v46 = vmul.f32 %v3818_v45, %v3288_v49 }
0x12cd   : > { %v3298_v53 = vmul.f32 %v3818_v45, %v3289_v33 }
0x12ce   : > { %v3306_v51 = vadd.f32 %v3819_v50, %v3297_v46 }
0x12cf   : > { %v3307_v56 = vadd.f32 %v3819_v50, %v3298_v53 }
0x12d0   : > { %v3308_v58 = vpack.c.bf16 %v3306_v51, %v3305_v54 }
0x12d1   : > { %v3309_v59 = vpack.c.bf16 %v3307_v56, %v3307_v56 }
0x12d2   : > { %4200 = vmatprep.mubr.msk.bf16.mxu1 %vm796_vm3, %v3308_v58 }
0x12d3   : > { %4201 = vmatmul.mubr.msk.bf16.vlgmr.msra.gmra.mxu1 %vm796_vm3, %v3309_v59 }
0x1393   : > { %v4202_v7 = vpop.f32.mrf.mxu1 }
0x1394   : > { %v3384_v48 = vadd.f32 %v4202_v7, %v3825_v5 }
0x1395   : > { %v3375_v37 = vpop.f32.mrf.mxu1 }
0x1396   : > { %v3391_v52 = vmul.f32 %v3384_v48, %v3384_v48  ;;  %v3376_v12 = vadd.f32 %v3825_v5, %v3375_v37 }
0x1397   : > { %v4203_v17 = vpop.f32.mrf.mxu1 }
0x1398   : > { %v3394_v62 = vmul.f32 %v3391_v52, %v3384_v48  ;;  %v3389_v10 = vmul.f32 %v3376_v12, %v3376_v12 }
0x1399   : > { %v3378_v61 = vpop.f32.mrf.mxu1 }
0x139a   : > { %v3397_v57 = vmul.f32 0.044715, %v3394_v62  ;;  %v3392_v0 = vmul.f32 %v3389_v10, %v3376_v12  ;;  %v3379_v3 = vadd.f32 %v3825_v5, %v3378_v61 }
0x139c   : > { %v3400_v9 = vadd.f32 %v3397_v57, %v3384_v48  ;;  %v3395_v26 = vmul.f32 0.044715, %v3392_v0  ;;  %v3390_v27 = vmul.f32 %v3379_v3, %v3379_v3 }
0x139e   : > { %v3403_v11 = vmul.f32 0.7978846, %v3400_v9  ;;  %v3398_v28 = vadd.f32 %v3395_v26, %v3376_v12  ;;  %v3393_v29 = vmul.f32 %v3390_v27, %v3379_v3  ;;  %v3847_v26 = vld [vmem:[%s5678_s18] ss:$0 sm:$0xff] }
0x13a0   : > { %4478 = vtanh.f32 %v3403_v11  ;;  %v3401_v6 = vmul.f32 0.7978846, %v3398_v28  ;;  %v3396_v13 = vmul.f32 0.044715, %v3393_v29 }
0x13a2   : > { %4480 = vtanh.f32 %v3401_v6  ;;  %v3399_v30 = vadd.f32 %v3396_v13, %v3379_v3 }
0x13a4   : > { %v3402_v8 = vmul.f32 0.7978846, %v3399_v30 }
0x13a6   : > { %4482 = vtanh.f32 %v3402_v8 }
0x13ad   : > { %v4479_v31 = vpop.eup %4478 }
0x13ae   : > { %v3409_v34 = vadd.f32 1.0, %v4479_v31 }
0x13af   : > { %v4481_v14 = vpop.eup %4480 }
0x13b0   : > { %v3407_v63 = vadd.f32 1.0, %v4481_v14  ;;  %v3412_v35 = vmul.f32 0.5, %v3409_v34 }
0x13b2   : > { %v3410_v36 = vmul.f32 0.5, %v3407_v63  ;;  %v3415_v4 = vmul.f32 %v3412_v35, %v3384_v48 }
0x13b3   : > { %v4483_v16 = vpop.eup %4482 }
0x13b4   : > { %v3408_v20 = vadd.f32 1.0, %v4483_v16  ;;  %v3413_v21 = vmul.f32 %v3410_v36, %v3376_v12  ;;  %v3417_v23 = vpack.c.bf16 %v3415_v4, %v3415_v4 }
0x13b6   : > { %v3411_v22 = vmul.f32 0.5, %v3408_v20 }
0x13b8   : > { %v3414_v39 = vmul.f32 %v3411_v22, %v3379_v3  ;;  %v3846_v3 = vld [vmem:[%s5677_s17] ss:$0 sm:$0xff] }
0x13ba   : > { %v3416_v40 = vpack.c.bf16 %v3414_v39, %v3413_v21 }
0x13bc   : > { %4212 = vmatprep.mubr.msk.bf16.mxu0 %vm744_vm1, %v3416_v40 }
0x13bd   : > { %4213 = vmatmul.mubr.msk.bf16.vlgmr.msra.gmra.mxu0 %vm744_vm1, %v3417_v23 }
0x147d   : > { %v4214_v41 = vpop.f32.mrf.mxu0 }
0x147e   : > { %v3508_v25 = vadd.f32 %v4214_v41, %v3839_v42 }
0x147f   : > { %v3499_v43 = vpop.f32.mrf.mxu0 }
0x1480   : > { %v3500_v44 = vadd.f32 %v3839_v42, %v3499_v43  ;;  %v3515_v18 = vadd.f32 %v3508_v25, %v5587_v55 }
0x1481   : > { %v4215_v15 = vpop.f32.mrf.mxu0 }
0x1482   : > { %v3513_v45 = vadd.f32 %v3500_v44, %v5585_v19  ;;  %v3524_v46 = vsel %vm790_vm2, %v3515_v18, 0.0 }
0x1483   : > { %v3502_v47 = vpop.f32.mrf.mxu0 }
0x1484   : > { %v3503_v49 = vadd.f32 %v3839_v42, %v3502_v47  ;;  %v3518_v32 = vsel %vm796_vm3, %v3513_v45, 0.0 }
0x1485   : > { %3519 = vadd.xlane.f32.xlu0 %v3518_v32 }
0x1486   : > { %v3514_v33 = vadd.f32 %v3503_v49, %v5592_v1 }
0x1488   : > { %v3521_v50 = vsel %vm796_vm3, %v3514_v33, 0.0 }
0x1489   : > { %3522 = vadd.xlane.f32.xlu1 %v3521_v50  ;;  %3525 = vadd.xlane.f32.xlu0 %v3524_v46 }
0x150e   : > { %v3520_v53 = vpop.xlane.xlu0 %3519 }
0x150f   : > { %v3527_v54 = vmul.f32 0.03125, %v3520_v53 }
0x1511   : > { %v3530_v51 = vsub.f32 %v3513_v45, %v3527_v54 }
0x1512   : > { %v3523_v56 = vpop.xlane.xlu1 %3522  ;;  %v3526_v19 = vpop.xlane.xlu0 %3525 }
0x1513   : > { %v3528_v58 = vmul.f32 0.03125, %v3523_v56  ;;  %v3529_v59 = vmul.f32 0.03125, %v3526_v19  ;;  %v3533_v55 = vmul.f32 %v3530_v51, %v3530_v51 }
0x1515   : > { %v3531_v24 = vsub.f32 %v3514_v33, %v3528_v58  ;;  %v3532_v60 = vsub.f32 %v3515_v18, %v3529_v59  ;;  %v3536_v2 = vsel %vm796_vm3, %v3533_v55, 0.0 }
0x1516   : > { %3537 = vadd.xlane.f32.xlu1 %v3536_v2 }
0x1517   : > { %v3534_v1 = vmul.f32 %v3531_v24, %v3531_v24  ;;  %v3535_v38 = vmul.f32 %v3532_v60, %v3532_v60 }
0x1519   : > { %v3539_v5 = vsel %vm796_vm3, %v3534_v1, 0.0  ;;  %v3542_v7 = vsel %vm790_vm2, %v3535_v38, 0.0 }
0x151a   : > { %3540 = vadd.xlane.f32.xlu0 %v3539_v5  ;;  %3543 = vadd.xlane.f32.xlu1 %v3542_v7 }
0x159f   : > { %v3538_v48 = vpop.xlane.xlu1 %3537 }
0x15a0   : > { %v3545_v37 = vmul.f32 0.03125, %v3538_v48 }
0x15a2   : > { %v3548_v52 = vadd.f32 1e-06, %v3545_v37 }
0x15a3   : > { %v3544_v12 = vpop.xlane.xlu1 %3543  ;;  %v3541_v17 = vpop.xlane.xlu0 %3540 }
0x15a4   : > { %4484 = vrsqrt.f32 %v3548_v52  ;;  %v3547_v62 = vmul.f32 0.03125, %v3544_v12  ;;  %v3546_v10 = vmul.f32 0.03125, %v3541_v17 }
0x15a6   : > { %v3550_v61 = vadd.f32 1e-06, %v3547_v62  ;;  %v3549_v57 = vadd.f32 1e-06, %v3546_v10 }
0x15a8   : > { %4486 = vrsqrt.f32 %v3550_v61 }
0x15a9   : > { %4488 = vrsqrt.f32 %v3549_v57 }
0x15b1   : > { %v4485_v0 = vpop.eup %4484 }
0x15b2   : > { %v3554_v9 = vmul.f32 %v4485_v0, %v3530_v51 }
0x15b4   : > { %v3563_v27 = vmul.f32 %v3846_v3, %v3554_v9 }
0x15b5   : > { %v4487_v11 = vpop.eup %4486 }
0x15b6   : > { %v4489_v28 = vpop.eup %4488  ;;  %v3572_v29 = vadd.f32 %v3847_v26, %v3563_v27  ;;  %v3556_v6 = vmul.f32 %v4487_v11, %v3532_v60 }
0x15b7   : > { %v3555_v13 = vmul.f32 %v4489_v28, %v3531_v24 }
0x15b8   : > { %3575 = vst.msk [vmem:[%s700_s1] sm:$0xff] %vm796_vm3, %v3572_v29  ;;  %v3565_v30 = vmul.f32 %v3846_v3, %v3556_v6 }
0x15b9   : > { %v3564_v8 = vmul.f32 %v3846_v3, %v3555_v13 }
0x15ba   : > { %v3574_v31 = vadd.f32 %v3847_v26, %v3565_v30 }
0x15bb   : > { %v3573_v14 = vadd.f32 %v3847_v26, %v3564_v8 }
0x15bc   : > { %3577 = vst.msk [vmem:[%s700_s1 + $0x10] sm:$0x1] %vm790_vm2, %v3574_v31 }
0x15bd   : > { %3576 = vst.msk [vmem:[%s700_s1 + $0x8] sm:$0xff] %vm796_vm3, %v3573_v14 }
0x15be PF: > { %s33_s0 = sadd.s32 1, %s4694_s0  }
0x15bf   : > { %p30_p2 = scmp.ge.s32.totalorder %s33_s0, 4  }
0x15c1   :  { %32 = sbr.rel (!%p30_p2) target bundleno = 10 (0xa), region = 167 }
0x15c6   :  { %3599 = vsyncpa [#allocation4], 1 }
0x15c7   :  { %3601 = vsyncpa [#allocation4 + $0x1], 1 }
0x15c8   :  { %3602 = vsyncpa [#allocation6], 1 }
0x15c9   :  { %3603 = vsyncpa [#allocation9], 1 }
0x15ca   :  { %3604 = vsyncpa [#allocation12], 1 }

</bundles_post_ra>
